<compile_context>
chip_gen: v5e
topology: v5e:2x2
jax: 0.10.0
libtpu: 0.0.40
codegen_flags: <defaults>
</compile_context>

<pallas_src>
import functools

import jax
import jax.numpy as jnp
from jax.experimental import pallas as pl
from jax.experimental.pallas import tpu as pltpu


# ----------------------------------------------------------------------------
# Fused kernel: 2 x BiLSTM layers + SE attention + max-pool + classifier
# ----------------------------------------------------------------------------
def _rr_lstm_kernel(x_ref, win1_ref, b1_ref, whh1_ref,
                    win2_ref, b2_ref, whh2_ref,
                    wse1_ref, bse1_ref, wse2_ref, bse2_ref,
                    wcl1_ref, bcl1_ref, wcl2_ref, bcl2_ref,
                    out_ref,
                    a1_ref, act1_ref, a2_ref,
                    *, seq_len, batch, h1, h2):
    S, B, H1, H2 = seq_len, batch, h1, h2
    G1, G2 = 8 * H1, 8 * H2      # packed gate width per layer

    def cell(h, c, gates, H):
        # packed gate layout: [i(2H) | f(2H) | g(2H) | o(2H)], each [fwd H | bwd H]
        i = jax.nn.sigmoid(gates[:, 0 * 2 * H:1 * 2 * H])
        f = jax.nn.sigmoid(gates[:, 1 * 2 * H:2 * 2 * H])
        g = jnp.tanh(gates[:, 2 * 2 * H:3 * 2 * H])
        o = jax.nn.sigmoid(gates[:, 3 * 2 * H:4 * 2 * H])
        c_new = f * c + i * g
        h_new = o * jnp.tanh(c_new)
        return h_new, c_new

    # ------------------------- BiLSTM layer 1 --------------------------------
    # Hoisted input projection (+ combined b_ih+b_hh biases) for all timesteps.
    a1_ref[...] = (jnp.dot(x_ref[...], win1_ref[...],
                           preferred_element_type=jnp.float32) + b1_ref[...])

    whh1 = whh1_ref[...]                               # (2H1, 8H1) block-diagonal
    h = jnp.zeros((B, 2 * H1), jnp.float32)
    c = jnp.zeros((B, 2 * H1), jnp.float32)
    for t in range(S):                                 # fully unrolled, static idx
        r = S - 1 - t
        inp = (a1_ref[t * B:(t + 1) * B, 0:G1]             # fwd proj of x[t]
               + a1_ref[r * B:(r + 1) * B, G1:2 * G1])     # bwd proj of x[S-1-t]
        gates = jnp.dot(h, whh1, preferred_element_type=jnp.float32) + inp
        h, c = cell(h, c, gates, H1)
        act1_ref[t * B:(t + 1) * B, 0:H1] = h[:, 0:H1]            # fwd @ time t
        act1_ref[r * B:(r + 1) * B, H1:2 * H1] = h[:, H1:2 * H1]  # bwd @ time r

    # ------------------------- BiLSTM layer 2 --------------------------------
    a2_ref[...] = (jnp.dot(act1_ref[...], win2_ref[...],
                           preferred_element_type=jnp.float32) + b2_ref[...])

    whh2 = whh2_ref[...]                               # (2H2, 8H2)
    h = jnp.zeros((B, 2 * H2), jnp.float32)
    c = jnp.zeros((B, 2 * H2), jnp.float32)
    sum_h = jnp.zeros((B, 2 * H2), jnp.float32)
    max_h = jnp.full((B, 2 * H2), -jnp.inf, jnp.float32)
    for t in range(S):
        r = S - 1 - t
        inp = (a2_ref[t * B:(t + 1) * B, 0:G2]
               + a2_ref[r * B:(r + 1) * B, G2:2 * G2])
        gates = jnp.dot(h, whh2, preferred_element_type=jnp.float32) + inp
        h, c = cell(h, c, gates, H2)
        sum_h = sum_h + h               # running seq-mean numerator (SE pooling)
        max_h = jnp.maximum(max_h, h)   # running seq-max (AdaptiveMaxPool1d)

    # -------- Head: SEBlock attention + global max pool + SeqLin classifier --
    m = sum_h * (1.0 / S)                                               # (B, C)
    y = jnp.maximum(
        jnp.dot(m, wse1_ref[...], preferred_element_type=jnp.float32)
        + bse1_ref[...], 0.0)                                           # ReLU
    s = jax.nn.sigmoid(
        jnp.dot(y, wse2_ref[...], preferred_element_type=jnp.float32)
        + bse2_ref[...])                                                # (B, C)
    p = max_h * s          # == max over seq of (x * s): s > 0 per channel
    hcl = (jnp.dot(p, wcl1_ref[...], preferred_element_type=jnp.float32)
           + bcl1_ref[...])
    hcl = hcl * jnp.tanh(jax.nn.softplus(hcl))                          # Mish
    out_ref[...] = (jnp.dot(hcl, wcl2_ref[...],
                            preferred_element_type=jnp.float32)
                    + bcl2_ref[...])                                    # logits


# ----------------------------------------------------------------------------
# Weight packing (host/XLA side, done once): block-diagonal bidirectional pack
# ----------------------------------------------------------------------------
def _scatter_gate_cols(w_t, H, direction):
    """Scatter transposed per-direction weight (X, 4H) [i|f|g|o gate blocks]
    into the packed layout (X, 8H) [i_f i_b | f_f f_b | g_f g_b | o_f o_b]."""
    X = w_t.shape[0]
    out = jnp.zeros((X, 8 * H), jnp.float32)
    for g in range(4):
        lo = g * 2 * H + direction * H
        out = out.at[:, lo:lo + H].set(w_t[:, g * H:(g + 1) * H])
    return out


def _pack_bilstm(p, H):
    f32 = lambda a: jnp.asarray(a, jnp.float32)
    # input projection: [fwd-packed (zeros in bwd cols) || bwd-packed] -> (Cin, 16H)
    w_in = jnp.concatenate(
        [_scatter_gate_cols(f32(p["w_ih_f"]).T, H, 0),
         _scatter_gate_cols(f32(p["w_ih_b"]).T, H, 1)], axis=1)
    bias = jnp.concatenate(
        [_scatter_gate_cols(f32(p["b_ih_f"] + p["b_hh_f"]).reshape(1, -1), H, 0),
         _scatter_gate_cols(f32(p["b_ih_b"] + p["b_hh_b"]).reshape(1, -1), H, 1)],
        axis=1)                                                       # (1, 16H)
    # recurrent: block-diagonal (2H, 8H); fwd rows feed fwd cols, bwd rows bwd cols
    w_hh = jnp.concatenate(
        [_scatter_gate_cols(f32(p["w_hh_f"]).T, H, 0),
         _scatter_gate_cols(f32(p["w_hh_b"]).T, H, 1)], axis=0)
    return w_in, bias, w_hh


def pack_params(params):
    H1 = params["lstm0"]["w_hh_f"].shape[1]
    H2 = params["lstm1"]["w_hh_f"].shape[1]
    win1, b1, whh1 = _pack_bilstm(params["lstm0"], H1)
    win2, b2, whh2 = _pack_bilstm(params["lstm1"], H2)
    hd = params["head"]
    f32 = lambda a: jnp.asarray(a, jnp.float32)
    return {
        "win1": win1, "b1": b1, "whh1": whh1,
        "win2": win2, "b2": b2, "whh2": whh2,
        "w_se1": f32(hd["w_se1"]).T, "b_se1": f32(hd["b_se1"]).reshape(1, -1),
        "w_se2": f32(hd["w_se2"]).T, "b_se2": f32(hd["b_se2"]).reshape(1, -1),
        "w_cl1": f32(hd["w_cl1"]).T, "b_cl1": f32(hd["b_cl1"]).reshape(1, -1),
        "w_cl2": f32(hd["w_cl2"]).T, "b_cl2": f32(hd["b_cl2"]).reshape(1, -1),
    }


# ----------------------------------------------------------------------------
# Full RR_LSTM forward (single pallas_call)
# ----------------------------------------------------------------------------
@jax.jit
def rr_lstm_forward(inp, packed):
    """inp: (seq_len, batch, n_channels=1) -> logits (batch, n_classes)."""
    S, B, I = inp.shape
    H1 = packed["whh1"].shape[0] // 2
    H2 = packed["whh2"].shape[0] // 2
    NC = packed["w_cl2"].shape[1]

    x2d = jnp.asarray(inp, jnp.float32).reshape(S * B, I)

    args = (x2d,
            packed["win1"], packed["b1"], packed["whh1"],
            packed["win2"], packed["b2"], packed["whh2"],
            packed["w_se1"], packed["b_se1"],
            packed["w_se2"], packed["b_se2"],
            packed["w_cl1"], packed["b_cl1"],
            packed["w_cl2"], packed["b_cl2"])

    in_specs = [pl.BlockSpec(a.shape, lambda i: (0, 0)) for a in args]
    kernel = functools.partial(_rr_lstm_kernel, seq_len=S, batch=B, h1=H1, h2=H2)

    return pl.pallas_call(
        kernel,
        out_shape=jax.ShapeDtypeStruct((B, NC), jnp.float32),
        grid=(1,),
        in_specs=in_specs,
        out_specs=pl.BlockSpec((B, NC), lambda i: (0, 0)),
        scratch_shapes=[
            pltpu.VMEM((S * B, 16 * H1), jnp.float32),   # layer-1 input projection
            pltpu.VMEM((S * B, 2 * H1), jnp.float32),    # layer-1 sequence output
            pltpu.VMEM((S * B, 16 * H2), jnp.float32),   # layer-2 input projection
        ],
        compiler_params=pltpu.CompilerParams(
            dimension_semantics=("arbitrary",),
            vmem_limit_bytes=8 * 1024 * 1024),
    )(*args)


# ----------------------------------------------------------------------------
# Deterministic parameter construction (PyTorch-layout raw weights)
# ----------------------------------------------------------------------------
def _uniform(key, shape, scale=0.1):
    return jax.random.uniform(key, shape, jnp.float32, -scale, scale)


def make_params(key, *, in_ch, hidden_sizes, se_reduction, clf_hidden, n_classes):
    keys = iter(jax.random.split(key, 64))
    params = {}

    def lstm_dir_params(I, H):
        return {
            "w_ih": _uniform(next(keys), (4 * H, I)),
            "w_hh": _uniform(next(keys), (4 * H, H)),
            "b_ih": _uniform(next(keys), (4 * H,)),
            "b_hh": _uniform(next(keys), (4 * H,)),
        }

    layer_in = in_ch
    for li, H in enumerate(hidden_sizes):
        f = lstm_dir_params(layer_in, H)
        b = lstm_dir_params(layer_in, H)
        params[f"lstm{li}"] = {
            "w_ih_f": f["w_ih"], "w_hh_f": f["w_hh"],
            "b_ih_f": f["b_ih"], "b_hh_f": f["b_hh"],
            "w_ih_b": b["w_ih"], "w_hh_b": b["w_hh"],
            "b_ih_b": b["b_ih"], "b_hh_b": b["b_hh"],
        }
        layer_in = 2 * H                       # bidirectional

    C = layer_in
    Cr = C // se_reduction
    params["head"] = {
        "w_se1": _uniform(next(keys), (Cr, C)),
        "b_se1": _uniform(next(keys), (Cr,)),
        "w_se2": _uniform(next(keys), (C, Cr)),
        "b_se2": _uniform(next(keys), (C,)),
        "w_cl1": _uniform(next(keys), (clf_hidden, C)),
        "b_cl1": _uniform(next(keys), (clf_hidden,)),
        "w_cl2": _uniform(next(keys), (n_classes, clf_hidden)),
        "b_cl2": _uniform(next(keys), (n_classes,)),
    }
    return params


if __name__ == "__main__":
    SEQ_LEN, BATCH, IN_CH = 16, 2, 1
    HIDDEN_SIZES = [16, 16]       # StackedLSTM hidden sizes (bidirectional)
    SE_REDUCTION = 8
    CLF_HIDDEN = 8
    N_CLASSES = 2

    key = jax.random.PRNGKey(0)
    k_in, k_par = jax.random.split(key)

    # input of shape (seq_len, batch_size, n_channels) as in RR_LSTM.forward
    inp = jax.random.normal(k_in, (SEQ_LEN, BATCH, IN_CH), jnp.float32)

    params = make_params(k_par, in_ch=IN_CH, hidden_sizes=HIDDEN_SIZES,
                         se_reduction=SE_REDUCTION, clf_hidden=CLF_HIDDEN,
                         n_classes=N_CLASSES)
    packed = pack_params(params)   # one-time weight packing (block-diag bi-dir)

    logits = rr_lstm_forward(inp, packed)
    logits = jax.block_until_ready(logits)
    assert logits.shape == (BATCH, N_CLASSES)
    print("KERNEL_OK")
</pallas_src>

<mosaic_0001>
module attributes {stable_mosaic.version = 11 : i64} {
  func.func @_rr_lstm_kernel(%arg0: i32, %arg1: memref<32x1xf32, #tpu.memory_space<vmem>>, %arg2: memref<1x256xf32, #tpu.memory_space<vmem>>, %arg3: memref<1x256xf32, #tpu.memory_space<vmem>>, %arg4: memref<32x128xf32, #tpu.memory_space<vmem>>, %arg5: memref<32x256xf32, #tpu.memory_space<vmem>>, %arg6: memref<1x256xf32, #tpu.memory_space<vmem>>, %arg7: memref<32x128xf32, #tpu.memory_space<vmem>>, %arg8: memref<32x4xf32, #tpu.memory_space<vmem>>, %arg9: memref<1x4xf32, #tpu.memory_space<vmem>>, %arg10: memref<4x32xf32, #tpu.memory_space<vmem>>, %arg11: memref<1x32xf32, #tpu.memory_space<vmem>>, %arg12: memref<32x8xf32, #tpu.memory_space<vmem>>, %arg13: memref<1x8xf32, #tpu.memory_space<vmem>>, %arg14: memref<8x2xf32, #tpu.memory_space<vmem>>, %arg15: memref<1x2xf32, #tpu.memory_space<vmem>>, %arg16: memref<2x2xf32, #tpu.memory_space<vmem>>, %arg17: memref<32x256xf32, #tpu.memory_space<vmem>>, %arg18: memref<32x32xf32, #tpu.memory_space<vmem>>, %arg19: memref<32x256xf32, #tpu.memory_space<vmem>>) attributes {dimension_semantics = [#tpu.dimension_semantics<arbitrary>], iteration_bounds = array<i64: 1>, scalar_prefetch = 0 : i64, scratch_operands = 3 : i64, tpu.core_type = #tpu.core_type<tc>, window_params = [{pipeline_mode = #tpu.pipeline_mode<synchronous>, transform_indices = @transform_0, window_bounds = array<i64: 32, 1>}, {pipeline_mode = #tpu.pipeline_mode<synchronous>, transform_indices = @transform_1, window_bounds = array<i64: 1, 256>}, {pipeline_mode = #tpu.pipeline_mode<synchronous>, transform_indices = @transform_2, window_bounds = array<i64: 1, 256>}, {pipeline_mode = #tpu.pipeline_mode<synchronous>, transform_indices = @transform_3, window_bounds = array<i64: 32, 128>}, {pipeline_mode = #tpu.pipeline_mode<synchronous>, transform_indices = @transform_4, window_bounds = array<i64: 32, 256>}, {pipeline_mode = #tpu.pipeline_mode<synchronous>, transform_indices = @transform_5, window_bounds = array<i64: 1, 256>}, {pipeline_mode = #tpu.pipeline_mode<synchronous>, transform_indices = @transform_6, window_bounds = array<i64: 32, 128>}, {pipeline_mode = #tpu.pipeline_mode<synchronous>, transform_indices = @transform_7, window_bounds = array<i64: 32, 4>}, {pipeline_mode = #tpu.pipeline_mode<synchronous>, transform_indices = @transform_8, window_bounds = array<i64: 1, 4>}, {pipeline_mode = #tpu.pipeline_mode<synchronous>, transform_indices = @transform_9, window_bounds = array<i64: 4, 32>}, {pipeline_mode = #tpu.pipeline_mode<synchronous>, transform_indices = @transform_10, window_bounds = array<i64: 1, 32>}, {pipeline_mode = #tpu.pipeline_mode<synchronous>, transform_indices = @transform_11, window_bounds = array<i64: 32, 8>}, {pipeline_mode = #tpu.pipeline_mode<synchronous>, transform_indices = @transform_12, window_bounds = array<i64: 1, 8>}, {pipeline_mode = #tpu.pipeline_mode<synchronous>, transform_indices = @transform_13, window_bounds = array<i64: 8, 2>}, {pipeline_mode = #tpu.pipeline_mode<synchronous>, transform_indices = @transform_14, window_bounds = array<i64: 1, 2>}, {pipeline_mode = #tpu.pipeline_mode<synchronous>, transform_indices = @transform_15, window_bounds = array<i64: 2, 2>}]} {
    %c0 = arith.constant 0 : index
    %c0_0 = arith.constant 0 : index
    %0 = vector.load %arg1[%c0, %c0_0] : memref<32x1xf32, #tpu.memory_space<vmem>>, vector<32x1xf32>
    %c0_1 = arith.constant 0 : index
    %c0_2 = arith.constant 0 : index
    %1 = vector.load %arg2[%c0_1, %c0_2] : memref<1x256xf32, #tpu.memory_space<vmem>>, vector<1x256xf32>
    %cst = arith.constant dense<0.000000e+00> : vector<32x256xf32>
    %2 = tpu.matmul %0, %1, %cst {dimension_numbers = #tpu.dot_dimension_numbers<[1], [0], [0], [1], [0, 0, 1, 1], [], []>} : vector<32x1xf32>, vector<1x256xf32>, vector<32x256xf32> -> vector<32x256xf32>
    %c0_3 = arith.constant 0 : index
    %c0_4 = arith.constant 0 : index
    %3 = vector.load %arg3[%c0_3, %c0_4] : memref<1x256xf32, #tpu.memory_space<vmem>>, vector<1x256xf32>
    %4 = vector.broadcast %3 : vector<1x256xf32> to vector<32x256xf32>
    %5 = arith.addf %2, %4 : vector<32x256xf32>
    %c0_5 = arith.constant 0 : index
    %c0_6 = arith.constant 0 : index
    %6 = vector.load %arg17[%c0_5, %c0_6] : memref<32x256xf32, #tpu.memory_space<vmem>>, vector<32x256xf32>
    tpu.vector_store %arg17[%c0_5, %c0_6], %5 {strides = array<i32>} : memref<32x256xf32, #tpu.memory_space<vmem>>, vector<32x256xf32>,
    %c0_7 = arith.constant 0 : index
    %c0_8 = arith.constant 0 : index
    %7 = vector.load %arg4[%c0_7, %c0_8] : memref<32x128xf32, #tpu.memory_space<vmem>>, vector<32x128xf32>
    %cst_9 = arith.constant 0.000000e+00 : f32
    %8 = vector.broadcast %cst_9 : f32 to vector<2x32xf32>
    %cst_10 = arith.constant 0.000000e+00 : f32
    %9 = vector.broadcast %cst_10 : f32 to vector<2x32xf32>
    %c0_11 = arith.constant 0 : index
    %c0_12 = arith.constant 0 : index
    %10 = vector.load %arg17[%c0_11, %c0_12] : memref<32x256xf32, #tpu.memory_space<vmem>>, vector<2x128xf32>
    %c30 = arith.constant 30 : index
    %c128 = arith.constant 128 : index
    %11 = vector.load %arg17[%c30, %c128] : memref<32x256xf32, #tpu.memory_space<vmem>>, vector<2x128xf32>
    %12 = arith.addf %10, %11 : vector<2x128xf32>
    %cst_13 = arith.constant dense<0.000000e+00> : vector<2x128xf32>
    %13 = tpu.matmul %8, %7, %cst_13 {dimension_numbers = #tpu.dot_dimension_numbers<[1], [0], [0], [1], [0, 0, 1, 1], [], []>} : vector<2x32xf32>, vector<32x128xf32>, vector<2x128xf32> -> vector<2x128xf32>
    %14 = arith.addf %13, %12 : vector<2x128xf32>
    %15 = vector.extract_strided_slice %14 {offsets = [0, 0], sizes = [2, 32], strides = [1, 1]} : vector<2x128xf32> to vector<2x32xf32>
    %16 = arith.negf %15 : vector<2x32xf32>
    %17 = math.exp %16 : vector<2x32xf32>
    %cst_14 = arith.constant 1.000000e+00 : f32
    %18 = vector.broadcast %cst_14 : f32 to vector<2x32xf32>
    %19 = arith.addf %18, %17 : vector<2x32xf32>
    %20 = arith.divf %18, %19 : vector<2x32xf32>
    %21 = vector.extract_strided_slice %14 {offsets = [0, 32], sizes = [2, 32], strides = [1, 1]} : vector<2x128xf32> to vector<2x32xf32>
    %22 = arith.negf %21 : vector<2x32xf32>
    %23 = math.exp %22 : vector<2x32xf32>
    %cst_15 = arith.constant 1.000000e+00 : f32
    %24 = vector.broadcast %cst_15 : f32 to vector<2x32xf32>
    %25 = arith.addf %24, %23 : vector<2x32xf32>
    %26 = arith.divf %24, %25 : vector<2x32xf32>
    %27 = vector.extract_strided_slice %14 {offsets = [0, 64], sizes = [2, 32], strides = [1, 1]} : vector<2x128xf32> to vector<2x32xf32>
    %28 = math.tanh %27 : vector<2x32xf32>
    %29 = vector.extract_strided_slice %14 {offsets = [0, 96], sizes = [2, 32], strides = [1, 1]} : vector<2x128xf32> to vector<2x32xf32>
    %30 = arith.negf %29 : vector<2x32xf32>
    %31 = math.exp %30 : vector<2x32xf32>
    %cst_16 = arith.constant 1.000000e+00 : f32
    %32 = vector.broadcast %cst_16 : f32 to vector<2x32xf32>
    %33 = arith.addf %32, %31 : vector<2x32xf32>
    %34 = arith.divf %32, %33 : vector<2x32xf32>
    %35 = arith.mulf %26, %9 : vector<2x32xf32>
    %36 = arith.mulf %20, %28 : vector<2x32xf32>
    %37 = arith.addf %35, %36 : vector<2x32xf32>
    %38 = math.tanh %37 : vector<2x32xf32>
    %39 = arith.mulf %34, %38 : vector<2x32xf32>
    %40 = vector.extract_strided_slice %39 {offsets = [0, 0], sizes = [2, 16], strides = [1, 1]} : vector<2x32xf32> to vector<2x16xf32>
    %c0_17 = arith.constant 0 : index
    %c0_18 = arith.constant 0 : index
    %41 = vector.load %arg18[%c0_17, %c0_18] : memref<32x32xf32, #tpu.memory_space<vmem>>, vector<2x16xf32>
    tpu.vector_store %arg18[%c0_17, %c0_18], %40 {strides = array<i32>} : memref<32x32xf32, #tpu.memory_space<vmem>>, vector<2x16xf32>,
    %42 = vector.extract_strided_slice %39 {offsets = [0, 16], sizes = [2, 16], strides = [1, 1]} : vector<2x32xf32> to vector<2x16xf32>
    %c30_19 = arith.constant 30 : index
    %c16 = arith.constant 16 : index
    %43 = vector.load %arg18[%c30_19, %c16] : memref<32x32xf32, #tpu.memory_space<vmem>>, vector<2x16xf32>
    tpu.vector_store %arg18[%c30_19, %c16], %42 {strides = array<i32>} : memref<32x32xf32, #tpu.memory_space<vmem>>, vector<2x16xf32>,
    %c2 = arith.constant 2 : index
    %c0_20 = arith.constant 0 : index
    %44 = vector.load %arg17[%c2, %c0_20] : memref<32x256xf32, #tpu.memory_space<vmem>>, vector<2x128xf32>
    %c28 = arith.constant 28 : index
    %c128_21 = arith.constant 128 : index
    %45 = vector.load %arg17[%c28, %c128_21] : memref<32x256xf32, #tpu.memory_space<vmem>>, vector<2x128xf32>
    %46 = arith.addf %44, %45 : vector<2x128xf32>
    %cst_22 = arith.constant dense<0.000000e+00> : vector<2x128xf32>
    %47 = tpu.matmul %39, %7, %cst_22 {dimension_numbers = #tpu.dot_dimension_numbers<[1], [0], [0], [1], [0, 0, 1, 1], [], []>} : vector<2x32xf32>, vector<32x128xf32>, vector<2x128xf32> -> vector<2x128xf32>
    %48 = arith.addf %47, %46 : vector<2x128xf32>
    %49 = vector.extract_strided_slice %48 {offsets = [0, 0], sizes = [2, 32], strides = [1, 1]} : vector<2x128xf32> to vector<2x32xf32>
    %50 = arith.negf %49 : vector<2x32xf32>
    %51 = math.exp %50 : vector<2x32xf32>
    %cst_23 = arith.constant 1.000000e+00 : f32
    %52 = vector.broadcast %cst_23 : f32 to vector<2x32xf32>
    %53 = arith.addf %52, %51 : vector<2x32xf32>
    %54 = arith.divf %52, %53 : vector<2x32xf32>
    %55 = vector.extract_strided_slice %48 {offsets = [0, 32], sizes = [2, 32], strides = [1, 1]} : vector<2x128xf32> to vector<2x32xf32>
    %56 = arith.negf %55 : vector<2x32xf32>
    %57 = math.exp %56 : vector<2x32xf32>
    %cst_24 = arith.constant 1.000000e+00 : f32
    %58 = vector.broadcast %cst_24 : f32 to vector<2x32xf32>
    %59 = arith.addf %58, %57 : vector<2x32xf32>
    %60 = arith.divf %58, %59 : vector<2x32xf32>
    %61 = vector.extract_strided_slice %48 {offsets = [0, 64], sizes = [2, 32], strides = [1, 1]} : vector<2x128xf32> to vector<2x32xf32>
    %62 = math.tanh %61 : vector<2x32xf32>
    %63 = vector.extract_strided_slice %48 {offsets = [0, 96], sizes = [2, 32], strides = [1, 1]} : vector<2x128xf32> to vector<2x32xf32>
    %64 = arith.negf %63 : vector<2x32xf32>
    %65 = math.exp %64 : vector<2x32xf32>
    %cst_25 = arith.constant 1.000000e+00 : f32
    %66 = vector.broadcast %cst_25 : f32 to vector<2x32xf32>
    %67 = arith.addf %66, %65 : vector<2x32xf32>
    %68 = arith.divf %66, %67 : vector<2x32xf32>
    %69 = arith.mulf %60, %37 : vector<2x32xf32>
    %70 = arith.mulf %54, %62 : vector<2x32xf32>
    %71 = arith.addf %69, %70 : vector<2x32xf32>
    %72 = math.tanh %71 : vector<2x32xf32>
    %73 = arith.mulf %68, %72 : vector<2x32xf32>
    %74 = vector.extract_strided_slice %73 {offsets = [0, 0], sizes = [2, 16], strides = [1, 1]} : vector<2x32xf32> to vector<2x16xf32>
    %c2_26 = arith.constant 2 : index
    %c0_27 = arith.constant 0 : index
    %75 = vector.load %arg18[%c2_26, %c0_27] : memref<32x32xf32, #tpu.memory_space<vmem>>, vector<2x16xf32>
    tpu.vector_store %arg18[%c2_26, %c0_27], %74 {strides = array<i32>} : memref<32x32xf32, #tpu.memory_space<vmem>>, vector<2x16xf32>,
    %76 = vector.extract_strided_slice %73 {offsets = [0, 16], sizes = [2, 16], strides = [1, 1]} : vector<2x32xf32> to vector<2x16xf32>
    %c28_28 = arith.constant 28 : index
    %c16_29 = arith.constant 16 : index
    %77 = vector.load %arg18[%c28_28, %c16_29] : memref<32x32xf32, #tpu.memory_space<vmem>>, vector<2x16xf32>
    tpu.vector_store %arg18[%c28_28, %c16_29], %76 {strides = array<i32>} : memref<32x32xf32, #tpu.memory_space<vmem>>, vector<2x16xf32>,
    %c4 = arith.constant 4 : index
    %c0_30 = arith.constant 0 : index
    %78 = vector.load %arg17[%c4, %c0_30] : memref<32x256xf32, #tpu.memory_space<vmem>>, vector<2x128xf32>
    %c26 = arith.constant 26 : index
    %c128_31 = arith.constant 128 : index
    %79 = vector.load %arg17[%c26, %c128_31] : memref<32x256xf32, #tpu.memory_space<vmem>>, vector<2x128xf32>
    %80 = arith.addf %78, %79 : vector<2x128xf32>
    %cst_32 = arith.constant dense<0.000000e+00> : vector<2x128xf32>
    %81 = tpu.matmul %73, %7, %cst_32 {dimension_numbers = #tpu.dot_dimension_numbers<[1], [0], [0], [1], [0, 0, 1, 1], [], []>} : vector<2x32xf32>, vector<32x128xf32>, vector<2x128xf32> -> vector<2x128xf32>
    %82 = arith.addf %81, %80 : vector<2x128xf32>
    %83 = vector.extract_strided_slice %82 {offsets = [0, 0], sizes = [2, 32], strides = [1, 1]} : vector<2x128xf32> to vector<2x32xf32>
    %84 = arith.negf %83 : vector<2x32xf32>
    %85 = math.exp %84 : vector<2x32xf32>
    %cst_33 = arith.constant 1.000000e+00 : f32
    %86 = vector.broadcast %cst_33 : f32 to vector<2x32xf32>
    %87 = arith.addf %86, %85 : vector<2x32xf32>
    %88 = arith.divf %86, %87 : vector<2x32xf32>
    %89 = vector.extract_strided_slice %82 {offsets = [0, 32], sizes = [2, 32], strides = [1, 1]} : vector<2x128xf32> to vector<2x32xf32>
    %90 = arith.negf %89 : vector<2x32xf32>
    %91 = math.exp %90 : vector<2x32xf32>
    %cst_34 = arith.constant 1.000000e+00 : f32
    %92 = vector.broadcast %cst_34 : f32 to vector<2x32xf32>
    %93 = arith.addf %92, %91 : vector<2x32xf32>
    %94 = arith.divf %92, %93 : vector<2x32xf32>
    %95 = vector.extract_strided_slice %82 {offsets = [0, 64], sizes = [2, 32], strides = [1, 1]} : vector<2x128xf32> to vector<2x32xf32>
    %96 = math.tanh %95 : vector<2x32xf32>
    %97 = vector.extract_strided_slice %82 {offsets = [0, 96], sizes = [2, 32], strides = [1, 1]} : vector<2x128xf32> to vector<2x32xf32>
    %98 = arith.negf %97 : vector<2x32xf32>
    %99 = math.exp %98 : vector<2x32xf32>
    %cst_35 = arith.constant 1.000000e+00 : f32
    %100 = vector.broadcast %cst_35 : f32 to vector<2x32xf32>
    %101 = arith.addf %100, %99 : vector<2x32xf32>
    %102 = arith.divf %100, %101 : vector<2x32xf32>
    %103 = arith.mulf %94, %71 : vector<2x32xf32>
    %104 = arith.mulf %88, %96 : vector<2x32xf32>
    %105 = arith.addf %103, %104 : vector<2x32xf32>
    %106 = math.tanh %105 : vector<2x32xf32>
    %107 = arith.mulf %102, %106 : vector<2x32xf32>
    %108 = vector.extract_strided_slice %107 {offsets = [0, 0], sizes = [2, 16], strides = [1, 1]} : vector<2x32xf32> to vector<2x16xf32>
    %c4_36 = arith.constant 4 : index
    %c0_37 = arith.constant 0 : index
    %109 = vector.load %arg18[%c4_36, %c0_37] : memref<32x32xf32, #tpu.memory_space<vmem>>, vector<2x16xf32>
    tpu.vector_store %arg18[%c4_36, %c0_37], %108 {strides = array<i32>} : memref<32x32xf32, #tpu.memory_space<vmem>>, vector<2x16xf32>,
    %110 = vector.extract_strided_slice %107 {offsets = [0, 16], sizes = [2, 16], strides = [1, 1]} : vector<2x32xf32> to vector<2x16xf32>
    %c26_38 = arith.constant 26 : index
    %c16_39 = arith.constant 16 : index
    %111 = vector.load %arg18[%c26_38, %c16_39] : memref<32x32xf32, #tpu.memory_space<vmem>>, vector<2x16xf32>
    tpu.vector_store %arg18[%c26_38, %c16_39], %110 {strides = array<i32>} : memref<32x32xf32, #tpu.memory_space<vmem>>, vector<2x16xf32>,
    %c6 = arith.constant 6 : index
    %c0_40 = arith.constant 0 : index
    %112 = vector.load %arg17[%c6, %c0_40] : memref<32x256xf32, #tpu.memory_space<vmem>>, vector<2x128xf32>
    %c24 = arith.constant 24 : index
    %c128_41 = arith.constant 128 : index
    %113 = vector.load %arg17[%c24, %c128_41] : memref<32x256xf32, #tpu.memory_space<vmem>>, vector<2x128xf32>
    %114 = arith.addf %112, %113 : vector<2x128xf32>
    %cst_42 = arith.constant dense<0.000000e+00> : vector<2x128xf32>
    %115 = tpu.matmul %107, %7, %cst_42 {dimension_numbers = #tpu.dot_dimension_numbers<[1], [0], [0], [1], [0, 0, 1, 1], [], []>} : vector<2x32xf32>, vector<32x128xf32>, vector<2x128xf32> -> vector<2x128xf32>
    %116 = arith.addf %115, %114 : vector<2x128xf32>
    %117 = vector.extract_strided_slice %116 {offsets = [0, 0], sizes = [2, 32], strides = [1, 1]} : vector<2x128xf32> to vector<2x32xf32>
    %118 = arith.negf %117 : vector<2x32xf32>
    %119 = math.exp %118 : vector<2x32xf32>
    %cst_43 = arith.constant 1.000000e+00 : f32
    %120 = vector.broadcast %cst_43 : f32 to vector<2x32xf32>
    %121 = arith.addf %120, %119 : vector<2x32xf32>
    %122 = arith.divf %120, %121 : vector<2x32xf32>
    %123 = vector.extract_strided_slice %116 {offsets = [0, 32], sizes = [2, 32], strides = [1, 1]} : vector<2x128xf32> to vector<2x32xf32>
    %124 = arith.negf %123 : vector<2x32xf32>
    %125 = math.exp %124 : vector<2x32xf32>
    %cst_44 = arith.constant 1.000000e+00 : f32
    %126 = vector.broadcast %cst_44 : f32 to vector<2x32xf32>
    %127 = arith.addf %126, %125 : vector<2x32xf32>
    %128 = arith.divf %126, %127 : vector<2x32xf32>
    %129 = vector.extract_strided_slice %116 {offsets = [0, 64], sizes = [2, 32], strides = [1, 1]} : vector<2x128xf32> to vector<2x32xf32>
    %130 = math.tanh %129 : vector<2x32xf32>
    %131 = vector.extract_strided_slice %116 {offsets = [0, 96], sizes = [2, 32], strides = [1, 1]} : vector<2x128xf32> to vector<2x32xf32>
    %132 = arith.negf %131 : vector<2x32xf32>
    %133 = math.exp %132 : vector<2x32xf32>
    %cst_45 = arith.constant 1.000000e+00 : f32
    %134 = vector.broadcast %cst_45 : f32 to vector<2x32xf32>
    %135 = arith.addf %134, %133 : vector<2x32xf32>
    %136 = arith.divf %134, %135 : vector<2x32xf32>
    %137 = arith.mulf %128, %105 : vector<2x32xf32>
    %138 = arith.mulf %122, %130 : vector<2x32xf32>
    %139 = arith.addf %137, %138 : vector<2x32xf32>
    %140 = math.tanh %139 : vector<2x32xf32>
    %141 = arith.mulf %136, %140 : vector<2x32xf32>
    %142 = vector.extract_strided_slice %141 {offsets = [0, 0], sizes = [2, 16], strides = [1, 1]} : vector<2x32xf32> to vector<2x16xf32>
    %c6_46 = arith.constant 6 : index
    %c0_47 = arith.constant 0 : index
    %143 = vector.load %arg18[%c6_46, %c0_47] : memref<32x32xf32, #tpu.memory_space<vmem>>, vector<2x16xf32>
    tpu.vector_store %arg18[%c6_46, %c0_47], %142 {strides = array<i32>} : memref<32x32xf32, #tpu.memory_space<vmem>>, vector<2x16xf32>,
    %144 = vector.extract_strided_slice %141 {offsets = [0, 16], sizes = [2, 16], strides = [1, 1]} : vector<2x32xf32> to vector<2x16xf32>
    %c24_48 = arith.constant 24 : index
    %c16_49 = arith.constant 16 : index
    %145 = vector.load %arg18[%c24_48, %c16_49] : memref<32x32xf32, #tpu.memory_space<vmem>>, vector<2x16xf32>
    tpu.vector_store %arg18[%c24_48, %c16_49], %144 {strides = array<i32>} : memref<32x32xf32, #tpu.memory_space<vmem>>, vector<2x16xf32>,
    %c8 = arith.constant 8 : index
    %c0_50 = arith.constant 0 : index
    %146 = vector.load %arg17[%c8, %c0_50] : memref<32x256xf32, #tpu.memory_space<vmem>>, vector<2x128xf32>
    %c22 = arith.constant 22 : index
    %c128_51 = arith.constant 128 : index
    %147 = vector.load %arg17[%c22, %c128_51] : memref<32x256xf32, #tpu.memory_space<vmem>>, vector<2x128xf32>
    %148 = arith.addf %146, %147 : vector<2x128xf32>
    %cst_52 = arith.constant dense<0.000000e+00> : vector<2x128xf32>
    %149 = tpu.matmul %141, %7, %cst_52 {dimension_numbers = #tpu.dot_dimension_numbers<[1], [0], [0], [1], [0, 0, 1, 1], [], []>} : vector<2x32xf32>, vector<32x128xf32>, vector<2x128xf32> -> vector<2x128xf32>
    %150 = arith.addf %149, %148 : vector<2x128xf32>
    %151 = vector.extract_strided_slice %150 {offsets = [0, 0], sizes = [2, 32], strides = [1, 1]} : vector<2x128xf32> to vector<2x32xf32>
    %152 = arith.negf %151 : vector<2x32xf32>
    %153 = math.exp %152 : vector<2x32xf32>
    %cst_53 = arith.constant 1.000000e+00 : f32
    %154 = vector.broadcast %cst_53 : f32 to vector<2x32xf32>
    %155 = arith.addf %154, %153 : vector<2x32xf32>
    %156 = arith.divf %154, %155 : vector<2x32xf32>
    %157 = vector.extract_strided_slice %150 {offsets = [0, 32], sizes = [2, 32], strides = [1, 1]} : vector<2x128xf32> to vector<2x32xf32>
    %158 = arith.negf %157 : vector<2x32xf32>
    %159 = math.exp %158 : vector<2x32xf32>
    %cst_54 = arith.constant 1.000000e+00 : f32
    %160 = vector.broadcast %cst_54 : f32 to vector<2x32xf32>
    %161 = arith.addf %160, %159 : vector<2x32xf32>
    %162 = arith.divf %160, %161 : vector<2x32xf32>
    %163 = vector.extract_strided_slice %150 {offsets = [0, 64], sizes = [2, 32], strides = [1, 1]} : vector<2x128xf32> to vector<2x32xf32>
    %164 = math.tanh %163 : vector<2x32xf32>
    %165 = vector.extract_strided_slice %150 {offsets = [0, 96], sizes = [2, 32], strides = [1, 1]} : vector<2x128xf32> to vector<2x32xf32>
    %166 = arith.negf %165 : vector<2x32xf32>
    %167 = math.exp %166 : vector<2x32xf32>
    %cst_55 = arith.constant 1.000000e+00 : f32
    %168 = vector.broadcast %cst_55 : f32 to vector<2x32xf32>
    %169 = arith.addf %168, %167 : vector<2x32xf32>
    %170 = arith.divf %168, %169 : vector<2x32xf32>
    %171 = arith.mulf %162, %139 : vector<2x32xf32>
    %172 = arith.mulf %156, %164 : vector<2x32xf32>
    %173 = arith.addf %171, %172 : vector<2x32xf32>
    %174 = math.tanh %173 : vector<2x32xf32>
    %175 = arith.mulf %170, %174 : vector<2x32xf32>
    %176 = vector.extract_strided_slice %175 {offsets = [0, 0], sizes = [2, 16], strides = [1, 1]} : vector<2x32xf32> to vector<2x16xf32>
    %c8_56 = arith.constant 8 : index
    %c0_57 = arith.constant 0 : index
    %177 = vector.load %arg18[%c8_56, %c0_57] : memref<32x32xf32, #tpu.memory_space<vmem>>, vector<2x16xf32>
    tpu.vector_store %arg18[%c8_56, %c0_57], %176 {strides = array<i32>} : memref<32x32xf32, #tpu.memory_space<vmem>>, vector<2x16xf32>,
    %178 = vector.extract_strided_slice %175 {offsets = [0, 16], sizes = [2, 16], strides = [1, 1]} : vector<2x32xf32> to vector<2x16xf32>
    %c22_58 = arith.constant 22 : index
    %c16_59 = arith.constant 16 : index
    %179 = vector.load %arg18[%c22_58, %c16_59] : memref<32x32xf32, #tpu.memory_space<vmem>>, vector<2x16xf32>
    tpu.vector_store %arg18[%c22_58, %c16_59], %178 {strides = array<i32>} : memref<32x32xf32, #tpu.memory_space<vmem>>, vector<2x16xf32>,
    %c10 = arith.constant 10 : index
    %c0_60 = arith.constant 0 : index
    %180 = vector.load %arg17[%c10, %c0_60] : memref<32x256xf32, #tpu.memory_space<vmem>>, vector<2x128xf32>
    %c20 = arith.constant 20 : index
    %c128_61 = arith.constant 128 : index
    %181 = vector.load %arg17[%c20, %c128_61] : memref<32x256xf32, #tpu.memory_space<vmem>>, vector<2x128xf32>
    %182 = arith.addf %180, %181 : vector<2x128xf32>
    %cst_62 = arith.constant dense<0.000000e+00> : vector<2x128xf32>
    %183 = tpu.matmul %175, %7, %cst_62 {dimension_numbers = #tpu.dot_dimension_numbers<[1], [0], [0], [1], [0, 0, 1, 1], [], []>} : vector<2x32xf32>, vector<32x128xf32>, vector<2x128xf32> -> vector<2x128xf32>
    %184 = arith.addf %183, %182 : vector<2x128xf32>
    %185 = vector.extract_strided_slice %184 {offsets = [0, 0], sizes = [2, 32], strides = [1, 1]} : vector<2x128xf32> to vector<2x32xf32>
    %186 = arith.negf %185 : vector<2x32xf32>
    %187 = math.exp %186 : vector<2x32xf32>
    %cst_63 = arith.constant 1.000000e+00 : f32
    %188 = vector.broadcast %cst_63 : f32 to vector<2x32xf32>
    %189 = arith.addf %188, %187 : vector<2x32xf32>
    %190 = arith.divf %188, %189 : vector<2x32xf32>
    %191 = vector.extract_strided_slice %184 {offsets = [0, 32], sizes = [2, 32], strides = [1, 1]} : vector<2x128xf32> to vector<2x32xf32>
    %192 = arith.negf %191 : vector<2x32xf32>
    %193 = math.exp %192 : vector<2x32xf32>
    %cst_64 = arith.constant 1.000000e+00 : f32
    %194 = vector.broadcast %cst_64 : f32 to vector<2x32xf32>
    %195 = arith.addf %194, %193 : vector<2x32xf32>
    %196 = arith.divf %194, %195 : vector<2x32xf32>
    %197 = vector.extract_strided_slice %184 {offsets = [0, 64], sizes = [2, 32], strides = [1, 1]} : vector<2x128xf32> to vector<2x32xf32>
    %198 = math.tanh %197 : vector<2x32xf32>
    %199 = vector.extract_strided_slice %184 {offsets = [0, 96], sizes = [2, 32], strides = [1, 1]} : vector<2x128xf32> to vector<2x32xf32>
    %200 = arith.negf %199 : vector<2x32xf32>
    %201 = math.exp %200 : vector<2x32xf32>
    %cst_65 = arith.constant 1.000000e+00 : f32
    %202 = vector.broadcast %cst_65 : f32 to vector<2x32xf32>
    %203 = arith.addf %202, %201 : vector<2x32xf32>
    %204 = arith.divf %202, %203 : vector<2x32xf32>
    %205 = arith.mulf %196, %173 : vector<2x32xf32>
    %206 = arith.mulf %190, %198 : vector<2x32xf32>
    %207 = arith.addf %205, %206 : vector<2x32xf32>
    %208 = math.tanh %207 : vector<2x32xf32>
    %209 = arith.mulf %204, %208 : vector<2x32xf32>
    %210 = vector.extract_strided_slice %209 {offsets = [0, 0], sizes = [2, 16], strides = [1, 1]} : vector<2x32xf32> to vector<2x16xf32>
    %c10_66 = arith.constant 10 : index
    %c0_67 = arith.constant 0 : index
    %211 = vector.load %arg18[%c10_66, %c0_67] : memref<32x32xf32, #tpu.memory_space<vmem>>, vector<2x16xf32>
    tpu.vector_store %arg18[%c10_66, %c0_67], %210 {strides = array<i32>} : memref<32x32xf32, #tpu.memory_space<vmem>>, vector<2x16xf32>,
    %212 = vector.extract_strided_slice %209 {offsets = [0, 16], sizes = [2, 16], strides = [1, 1]} : vector<2x32xf32> to vector<2x16xf32>
    %c20_68 = arith.constant 20 : index
    %c16_69 = arith.constant 16 : index
    %213 = vector.load %arg18[%c20_68, %c16_69] : memref<32x32xf32, #tpu.memory_space<vmem>>, vector<2x16xf32>
    tpu.vector_store %arg18[%c20_68, %c16_69], %212 {strides = array<i32>} : memref<32x32xf32, #tpu.memory_space<vmem>>, vector<2x16xf32>,
    %c12 = arith.constant 12 : index
    %c0_70 = arith.constant 0 : index
    %214 = vector.load %arg17[%c12, %c0_70] : memref<32x256xf32, #tpu.memory_space<vmem>>, vector<2x128xf32>
    %c18 = arith.constant 18 : index
    %c128_71 = arith.constant 128 : index
    %215 = vector.load %arg17[%c18, %c128_71] : memref<32x256xf32, #tpu.memory_space<vmem>>, vector<2x128xf32>
    %216 = arith.addf %214, %215 : vector<2x128xf32>
    %cst_72 = arith.constant dense<0.000000e+00> : vector<2x128xf32>
    %217 = tpu.matmul %209, %7, %cst_72 {dimension_numbers = #tpu.dot_dimension_numbers<[1], [0], [0], [1], [0, 0, 1, 1], [], []>} : vector<2x32xf32>, vector<32x128xf32>, vector<2x128xf32> -> vector<2x128xf32>
    %218 = arith.addf %217, %216 : vector<2x128xf32>
    %219 = vector.extract_strided_slice %218 {offsets = [0, 0], sizes = [2, 32], strides = [1, 1]} : vector<2x128xf32> to vector<2x32xf32>
    %220 = arith.negf %219 : vector<2x32xf32>
    %221 = math.exp %220 : vector<2x32xf32>
    %cst_73 = arith.constant 1.000000e+00 : f32
    %222 = vector.broadcast %cst_73 : f32 to vector<2x32xf32>
    %223 = arith.addf %222, %221 : vector<2x32xf32>
    %224 = arith.divf %222, %223 : vector<2x32xf32>
    %225 = vector.extract_strided_slice %218 {offsets = [0, 32], sizes = [2, 32], strides = [1, 1]} : vector<2x128xf32> to vector<2x32xf32>
    %226 = arith.negf %225 : vector<2x32xf32>
    %227 = math.exp %226 : vector<2x32xf32>
    %cst_74 = arith.constant 1.000000e+00 : f32
    %228 = vector.broadcast %cst_74 : f32 to vector<2x32xf32>
    %229 = arith.addf %228, %227 : vector<2x32xf32>
    %230 = arith.divf %228, %229 : vector<2x32xf32>
    %231 = vector.extract_strided_slice %218 {offsets = [0, 64], sizes = [2, 32], strides = [1, 1]} : vector<2x128xf32> to vector<2x32xf32>
    %232 = math.tanh %231 : vector<2x32xf32>
    %233 = vector.extract_strided_slice %218 {offsets = [0, 96], sizes = [2, 32], strides = [1, 1]} : vector<2x128xf32> to vector<2x32xf32>
    %234 = arith.negf %233 : vector<2x32xf32>
    %235 = math.exp %234 : vector<2x32xf32>
    %cst_75 = arith.constant 1.000000e+00 : f32
    %236 = vector.broadcast %cst_75 : f32 to vector<2x32xf32>
    %237 = arith.addf %236, %235 : vector<2x32xf32>
    %238 = arith.divf %236, %237 : vector<2x32xf32>
    %239 = arith.mulf %230, %207 : vector<2x32xf32>
    %240 = arith.mulf %224, %232 : vector<2x32xf32>
    %241 = arith.addf %239, %240 : vector<2x32xf32>
    %242 = math.tanh %241 : vector<2x32xf32>
    %243 = arith.mulf %238, %242 : vector<2x32xf32>
    %244 = vector.extract_strided_slice %243 {offsets = [0, 0], sizes = [2, 16], strides = [1, 1]} : vector<2x32xf32> to vector<2x16xf32>
    %c12_76 = arith.constant 12 : index
    %c0_77 = arith.constant 0 : index
    %245 = vector.load %arg18[%c12_76, %c0_77] : memref<32x32xf32, #tpu.memory_space<vmem>>, vector<2x16xf32>
    tpu.vector_store %arg18[%c12_76, %c0_77], %244 {strides = array<i32>} : memref<32x32xf32, #tpu.memory_space<vmem>>, vector<2x16xf32>,
    %246 = vector.extract_strided_slice %243 {offsets = [0, 16], sizes = [2, 16], strides = [1, 1]} : vector<2x32xf32> to vector<2x16xf32>
    %c18_78 = arith.constant 18 : index
    %c16_79 = arith.constant 16 : index
    %247 = vector.load %arg18[%c18_78, %c16_79] : memref<32x32xf32, #tpu.memory_space<vmem>>, vector<2x16xf32>
    tpu.vector_store %arg18[%c18_78, %c16_79], %246 {strides = array<i32>} : memref<32x32xf32, #tpu.memory_space<vmem>>, vector<2x16xf32>,
    %c14 = arith.constant 14 : index
    %c0_80 = arith.constant 0 : index
    %248 = vector.load %arg17[%c14, %c0_80] : memref<32x256xf32, #tpu.memory_space<vmem>>, vector<2x128xf32>
    %c16_81 = arith.constant 16 : index
    %c128_82 = arith.constant 128 : index
    %249 = vector.load %arg17[%c16_81, %c128_82] : memref<32x256xf32, #tpu.memory_space<vmem>>, vector<2x128xf32>
    %250 = arith.addf %248, %249 : vector<2x128xf32>
    %cst_83 = arith.constant dense<0.000000e+00> : vector<2x128xf32>
    %251 = tpu.matmul %243, %7, %cst_83 {dimension_numbers = #tpu.dot_dimension_numbers<[1], [0], [0], [1], [0, 0, 1, 1], [], []>} : vector<2x32xf32>, vector<32x128xf32>, vector<2x128xf32> -> vector<2x128xf32>
    %252 = arith.addf %251, %250 : vector<2x128xf32>
    %253 = vector.extract_strided_slice %252 {offsets = [0, 0], sizes = [2, 32], strides = [1, 1]} : vector<2x128xf32> to vector<2x32xf32>
    %254 = arith.negf %253 : vector<2x32xf32>
    %255 = math.exp %254 : vector<2x32xf32>
    %cst_84 = arith.constant 1.000000e+00 : f32
    %256 = vector.broadcast %cst_84 : f32 to vector<2x32xf32>
    %257 = arith.addf %256, %255 : vector<2x32xf32>
    %258 = arith.divf %256, %257 : vector<2x32xf32>
    %259 = vector.extract_strided_slice %252 {offsets = [0, 32], sizes = [2, 32], strides = [1, 1]} : vector<2x128xf32> to vector<2x32xf32>
    %260 = arith.negf %259 : vector<2x32xf32>
    %261 = math.exp %260 : vector<2x32xf32>
    %cst_85 = arith.constant 1.000000e+00 : f32
    %262 = vector.broadcast %cst_85 : f32 to vector<2x32xf32>
    %263 = arith.addf %262, %261 : vector<2x32xf32>
    %264 = arith.divf %262, %263 : vector<2x32xf32>
    %265 = vector.extract_strided_slice %252 {offsets = [0, 64], sizes = [2, 32], strides = [1, 1]} : vector<2x128xf32> to vector<2x32xf32>
    %266 = math.tanh %265 : vector<2x32xf32>
    %267 = vector.extract_strided_slice %252 {offsets = [0, 96], sizes = [2, 32], strides = [1, 1]} : vector<2x128xf32> to vector<2x32xf32>
    %268 = arith.negf %267 : vector<2x32xf32>
    %269 = math.exp %268 : vector<2x32xf32>
    %cst_86 = arith.constant 1.000000e+00 : f32
    %270 = vector.broadcast %cst_86 : f32 to vector<2x32xf32>
    %271 = arith.addf %270, %269 : vector<2x32xf32>
    %272 = arith.divf %270, %271 : vector<2x32xf32>
    %273 = arith.mulf %264, %241 : vector<2x32xf32>
    %274 = arith.mulf %258, %266 : vector<2x32xf32>
    %275 = arith.addf %273, %274 : vector<2x32xf32>
    %276 = math.tanh %275 : vector<2x32xf32>
    %277 = arith.mulf %272, %276 : vector<2x32xf32>
    %278 = vector.extract_strided_slice %277 {offsets = [0, 0], sizes = [2, 16], strides = [1, 1]} : vector<2x32xf32> to vector<2x16xf32>
    %c14_87 = arith.constant 14 : index
    %c0_88 = arith.constant 0 : index
    %279 = vector.load %arg18[%c14_87, %c0_88] : memref<32x32xf32, #tpu.memory_space<vmem>>, vector<2x16xf32>
    tpu.vector_store %arg18[%c14_87, %c0_88], %278 {strides = array<i32>} : memref<32x32xf32, #tpu.memory_space<vmem>>, vector<2x16xf32>,
    %280 = vector.extract_strided_slice %277 {offsets = [0, 16], sizes = [2, 16], strides = [1, 1]} : vector<2x32xf32> to vector<2x16xf32>
    %c16_89 = arith.constant 16 : index
    %c16_90 = arith.constant 16 : index
    %281 = vector.load %arg18[%c16_89, %c16_90] : memref<32x32xf32, #tpu.memory_space<vmem>>, vector<2x16xf32>
    tpu.vector_store %arg18[%c16_89, %c16_90], %280 {strides = array<i32>} : memref<32x32xf32, #tpu.memory_space<vmem>>, vector<2x16xf32>,
    %c16_91 = arith.constant 16 : index
    %c0_92 = arith.constant 0 : index
    %282 = vector.load %arg17[%c16_91, %c0_92] : memref<32x256xf32, #tpu.memory_space<vmem>>, vector<2x128xf32>
    %c14_93 = arith.constant 14 : index
    %c128_94 = arith.constant 128 : index
    %283 = vector.load %arg17[%c14_93, %c128_94] : memref<32x256xf32, #tpu.memory_space<vmem>>, vector<2x128xf32>
    %284 = arith.addf %282, %283 : vector<2x128xf32>
    %cst_95 = arith.constant dense<0.000000e+00> : vector<2x128xf32>
    %285 = tpu.matmul %277, %7, %cst_95 {dimension_numbers = #tpu.dot_dimension_numbers<[1], [0], [0], [1], [0, 0, 1, 1], [], []>} : vector<2x32xf32>, vector<32x128xf32>, vector<2x128xf32> -> vector<2x128xf32>
    %286 = arith.addf %285, %284 : vector<2x128xf32>
    %287 = vector.extract_strided_slice %286 {offsets = [0, 0], sizes = [2, 32], strides = [1, 1]} : vector<2x128xf32> to vector<2x32xf32>
    %288 = arith.negf %287 : vector<2x32xf32>
    %289 = math.exp %288 : vector<2x32xf32>
    %cst_96 = arith.constant 1.000000e+00 : f32
    %290 = vector.broadcast %cst_96 : f32 to vector<2x32xf32>
    %291 = arith.addf %290, %289 : vector<2x32xf32>
    %292 = arith.divf %290, %291 : vector<2x32xf32>
    %293 = vector.extract_strided_slice %286 {offsets = [0, 32], sizes = [2, 32], strides = [1, 1]} : vector<2x128xf32> to vector<2x32xf32>
    %294 = arith.negf %293 : vector<2x32xf32>
    %295 = math.exp %294 : vector<2x32xf32>
    %cst_97 = arith.constant 1.000000e+00 : f32
    %296 = vector.broadcast %cst_97 : f32 to vector<2x32xf32>
    %297 = arith.addf %296, %295 : vector<2x32xf32>
    %298 = arith.divf %296, %297 : vector<2x32xf32>
    %299 = vector.extract_strided_slice %286 {offsets = [0, 64], sizes = [2, 32], strides = [1, 1]} : vector<2x128xf32> to vector<2x32xf32>
    %300 = math.tanh %299 : vector<2x32xf32>
    %301 = vector.extract_strided_slice %286 {offsets = [0, 96], sizes = [2, 32], strides = [1, 1]} : vector<2x128xf32> to vector<2x32xf32>
    %302 = arith.negf %301 : vector<2x32xf32>
    %303 = math.exp %302 : vector<2x32xf32>
    %cst_98 = arith.constant 1.000000e+00 : f32
    %304 = vector.broadcast %cst_98 : f32 to vector<2x32xf32>
    %305 = arith.addf %304, %303 : vector<2x32xf32>
    %306 = arith.divf %304, %305 : vector<2x32xf32>
    %307 = arith.mulf %298, %275 : vector<2x32xf32>
    %308 = arith.mulf %292, %300 : vector<2x32xf32>
    %309 = arith.addf %307, %308 : vector<2x32xf32>
    %310 = math.tanh %309 : vector<2x32xf32>
    %311 = arith.mulf %306, %310 : vector<2x32xf32>
    %312 = vector.extract_strided_slice %311 {offsets = [0, 0], sizes = [2, 16], strides = [1, 1]} : vector<2x32xf32> to vector<2x16xf32>
    %c16_99 = arith.constant 16 : index
    %c0_100 = arith.constant 0 : index
    %313 = vector.load %arg18[%c16_99, %c0_100] : memref<32x32xf32, #tpu.memory_space<vmem>>, vector<2x16xf32>
    tpu.vector_store %arg18[%c16_99, %c0_100], %312 {strides = array<i32>} : memref<32x32xf32, #tpu.memory_space<vmem>>, vector<2x16xf32>,
    %314 = vector.extract_strided_slice %311 {offsets = [0, 16], sizes = [2, 16], strides = [1, 1]} : vector<2x32xf32> to vector<2x16xf32>
    %c14_101 = arith.constant 14 : index
    %c16_102 = arith.constant 16 : index
    %315 = vector.load %arg18[%c14_101, %c16_102] : memref<32x32xf32, #tpu.memory_space<vmem>>, vector<2x16xf32>
    tpu.vector_store %arg18[%c14_101, %c16_102], %314 {strides = array<i32>} : memref<32x32xf32, #tpu.memory_space<vmem>>, vector<2x16xf32>,
    %c18_103 = arith.constant 18 : index
    %c0_104 = arith.constant 0 : index
    %316 = vector.load %arg17[%c18_103, %c0_104] : memref<32x256xf32, #tpu.memory_space<vmem>>, vector<2x128xf32>
    %c12_105 = arith.constant 12 : index
    %c128_106 = arith.constant 128 : index
    %317 = vector.load %arg17[%c12_105, %c128_106] : memref<32x256xf32, #tpu.memory_space<vmem>>, vector<2x128xf32>
    %318 = arith.addf %316, %317 : vector<2x128xf32>
    %cst_107 = arith.constant dense<0.000000e+00> : vector<2x128xf32>
    %319 = tpu.matmul %311, %7, %cst_107 {dimension_numbers = #tpu.dot_dimension_numbers<[1], [0], [0], [1], [0, 0, 1, 1], [], []>} : vector<2x32xf32>, vector<32x128xf32>, vector<2x128xf32> -> vector<2x128xf32>
    %320 = arith.addf %319, %318 : vector<2x128xf32>
    %321 = vector.extract_strided_slice %320 {offsets = [0, 0], sizes = [2, 32], strides = [1, 1]} : vector<2x128xf32> to vector<2x32xf32>
    %322 = arith.negf %321 : vector<2x32xf32>
    %323 = math.exp %322 : vector<2x32xf32>
    %cst_108 = arith.constant 1.000000e+00 : f32
    %324 = vector.broadcast %cst_108 : f32 to vector<2x32xf32>
    %325 = arith.addf %324, %323 : vector<2x32xf32>
    %326 = arith.divf %324, %325 : vector<2x32xf32>
    %327 = vector.extract_strided_slice %320 {offsets = [0, 32], sizes = [2, 32], strides = [1, 1]} : vector<2x128xf32> to vector<2x32xf32>
    %328 = arith.negf %327 : vector<2x32xf32>
    %329 = math.exp %328 : vector<2x32xf32>
    %cst_109 = arith.constant 1.000000e+00 : f32
    %330 = vector.broadcast %cst_109 : f32 to vector<2x32xf32>
    %331 = arith.addf %330, %329 : vector<2x32xf32>
    %332 = arith.divf %330, %331 : vector<2x32xf32>
    %333 = vector.extract_strided_slice %320 {offsets = [0, 64], sizes = [2, 32], strides = [1, 1]} : vector<2x128xf32> to vector<2x32xf32>
    %334 = math.tanh %333 : vector<2x32xf32>
    %335 = vector.extract_strided_slice %320 {offsets = [0, 96], sizes = [2, 32], strides = [1, 1]} : vector<2x128xf32> to vector<2x32xf32>
    %336 = arith.negf %335 : vector<2x32xf32>
    %337 = math.exp %336 : vector<2x32xf32>
    %cst_110 = arith.constant 1.000000e+00 : f32
    %338 = vector.broadcast %cst_110 : f32 to vector<2x32xf32>
    %339 = arith.addf %338, %337 : vector<2x32xf32>
    %340 = arith.divf %338, %339 : vector<2x32xf32>
    %341 = arith.mulf %332, %309 : vector<2x32xf32>
    %342 = arith.mulf %326, %334 : vector<2x32xf32>
    %343 = arith.addf %341, %342 : vector<2x32xf32>
    %344 = math.tanh %343 : vector<2x32xf32>
    %345 = arith.mulf %340, %344 : vector<2x32xf32>
    %346 = vector.extract_strided_slice %345 {offsets = [0, 0], sizes = [2, 16], strides = [1, 1]} : vector<2x32xf32> to vector<2x16xf32>
    %c18_111 = arith.constant 18 : index
    %c0_112 = arith.constant 0 : index
    %347 = vector.load %arg18[%c18_111, %c0_112] : memref<32x32xf32, #tpu.memory_space<vmem>>, vector<2x16xf32>
    tpu.vector_store %arg18[%c18_111, %c0_112], %346 {strides = array<i32>} : memref<32x32xf32, #tpu.memory_space<vmem>>, vector<2x16xf32>,
    %348 = vector.extract_strided_slice %345 {offsets = [0, 16], sizes = [2, 16], strides = [1, 1]} : vector<2x32xf32> to vector<2x16xf32>
    %c12_113 = arith.constant 12 : index
    %c16_114 = arith.constant 16 : index
    %349 = vector.load %arg18[%c12_113, %c16_114] : memref<32x32xf32, #tpu.memory_space<vmem>>, vector<2x16xf32>
    tpu.vector_store %arg18[%c12_113, %c16_114], %348 {strides = array<i32>} : memref<32x32xf32, #tpu.memory_space<vmem>>, vector<2x16xf32>,
    %c20_115 = arith.constant 20 : index
    %c0_116 = arith.constant 0 : index
    %350 = vector.load %arg17[%c20_115, %c0_116] : memref<32x256xf32, #tpu.memory_space<vmem>>, vector<2x128xf32>
    %c10_117 = arith.constant 10 : index
    %c128_118 = arith.constant 128 : index
    %351 = vector.load %arg17[%c10_117, %c128_118] : memref<32x256xf32, #tpu.memory_space<vmem>>, vector<2x128xf32>
    %352 = arith.addf %350, %351 : vector<2x128xf32>
    %cst_119 = arith.constant dense<0.000000e+00> : vector<2x128xf32>
    %353 = tpu.matmul %345, %7, %cst_119 {dimension_numbers = #tpu.dot_dimension_numbers<[1], [0], [0], [1], [0, 0, 1, 1], [], []>} : vector<2x32xf32>, vector<32x128xf32>, vector<2x128xf32> -> vector<2x128xf32>
    %354 = arith.addf %353, %352 : vector<2x128xf32>
    %355 = vector.extract_strided_slice %354 {offsets = [0, 0], sizes = [2, 32], strides = [1, 1]} : vector<2x128xf32> to vector<2x32xf32>
    %356 = arith.negf %355 : vector<2x32xf32>
    %357 = math.exp %356 : vector<2x32xf32>
    %cst_120 = arith.constant 1.000000e+00 : f32
    %358 = vector.broadcast %cst_120 : f32 to vector<2x32xf32>
    %359 = arith.addf %358, %357 : vector<2x32xf32>
    %360 = arith.divf %358, %359 : vector<2x32xf32>
    %361 = vector.extract_strided_slice %354 {offsets = [0, 32], sizes = [2, 32], strides = [1, 1]} : vector<2x128xf32> to vector<2x32xf32>
    %362 = arith.negf %361 : vector<2x32xf32>
    %363 = math.exp %362 : vector<2x32xf32>
    %cst_121 = arith.constant 1.000000e+00 : f32
    %364 = vector.broadcast %cst_121 : f32 to vector<2x32xf32>
    %365 = arith.addf %364, %363 : vector<2x32xf32>
    %366 = arith.divf %364, %365 : vector<2x32xf32>
    %367 = vector.extract_strided_slice %354 {offsets = [0, 64], sizes = [2, 32], strides = [1, 1]} : vector<2x128xf32> to vector<2x32xf32>
    %368 = math.tanh %367 : vector<2x32xf32>
    %369 = vector.extract_strided_slice %354 {offsets = [0, 96], sizes = [2, 32], strides = [1, 1]} : vector<2x128xf32> to vector<2x32xf32>
    %370 = arith.negf %369 : vector<2x32xf32>
    %371 = math.exp %370 : vector<2x32xf32>
    %cst_122 = arith.constant 1.000000e+00 : f32
    %372 = vector.broadcast %cst_122 : f32 to vector<2x32xf32>
    %373 = arith.addf %372, %371 : vector<2x32xf32>
    %374 = arith.divf %372, %373 : vector<2x32xf32>
    %375 = arith.mulf %366, %343 : vector<2x32xf32>
    %376 = arith.mulf %360, %368 : vector<2x32xf32>
    %377 = arith.addf %375, %376 : vector<2x32xf32>
    %378 = math.tanh %377 : vector<2x32xf32>
    %379 = arith.mulf %374, %378 : vector<2x32xf32>
    %380 = vector.extract_strided_slice %379 {offsets = [0, 0], sizes = [2, 16], strides = [1, 1]} : vector<2x32xf32> to vector<2x16xf32>
    %c20_123 = arith.constant 20 : index
    %c0_124 = arith.constant 0 : index
    %381 = vector.load %arg18[%c20_123, %c0_124] : memref<32x32xf32, #tpu.memory_space<vmem>>, vector<2x16xf32>
    tpu.vector_store %arg18[%c20_123, %c0_124], %380 {strides = array<i32>} : memref<32x32xf32, #tpu.memory_space<vmem>>, vector<2x16xf32>,
    %382 = vector.extract_strided_slice %379 {offsets = [0, 16], sizes = [2, 16], strides = [1, 1]} : vector<2x32xf32> to vector<2x16xf32>
    %c10_125 = arith.constant 10 : index
    %c16_126 = arith.constant 16 : index
    %383 = vector.load %arg18[%c10_125, %c16_126] : memref<32x32xf32, #tpu.memory_space<vmem>>, vector<2x16xf32>
    tpu.vector_store %arg18[%c10_125, %c16_126], %382 {strides = array<i32>} : memref<32x32xf32, #tpu.memory_space<vmem>>, vector<2x16xf32>,
    %c22_127 = arith.constant 22 : index
    %c0_128 = arith.constant 0 : index
    %384 = vector.load %arg17[%c22_127, %c0_128] : memref<32x256xf32, #tpu.memory_space<vmem>>, vector<2x128xf32>
    %c8_129 = arith.constant 8 : index
    %c128_130 = arith.constant 128 : index
    %385 = vector.load %arg17[%c8_129, %c128_130] : memref<32x256xf32, #tpu.memory_space<vmem>>, vector<2x128xf32>
    %386 = arith.addf %384, %385 : vector<2x128xf32>
    %cst_131 = arith.constant dense<0.000000e+00> : vector<2x128xf32>
    %387 = tpu.matmul %379, %7, %cst_131 {dimension_numbers = #tpu.dot_dimension_numbers<[1], [0], [0], [1], [0, 0, 1, 1], [], []>} : vector<2x32xf32>, vector<32x128xf32>, vector<2x128xf32> -> vector<2x128xf32>
    %388 = arith.addf %387, %386 : vector<2x128xf32>
    %389 = vector.extract_strided_slice %388 {offsets = [0, 0], sizes = [2, 32], strides = [1, 1]} : vector<2x128xf32> to vector<2x32xf32>
    %390 = arith.negf %389 : vector<2x32xf32>
    %391 = math.exp %390 : vector<2x32xf32>
    %cst_132 = arith.constant 1.000000e+00 : f32
    %392 = vector.broadcast %cst_132 : f32 to vector<2x32xf32>
    %393 = arith.addf %392, %391 : vector<2x32xf32>
    %394 = arith.divf %392, %393 : vector<2x32xf32>
    %395 = vector.extract_strided_slice %388 {offsets = [0, 32], sizes = [2, 32], strides = [1, 1]} : vector<2x128xf32> to vector<2x32xf32>
    %396 = arith.negf %395 : vector<2x32xf32>
    %397 = math.exp %396 : vector<2x32xf32>
    %cst_133 = arith.constant 1.000000e+00 : f32
    %398 = vector.broadcast %cst_133 : f32 to vector<2x32xf32>
    %399 = arith.addf %398, %397 : vector<2x32xf32>
    %400 = arith.divf %398, %399 : vector<2x32xf32>
    %401 = vector.extract_strided_slice %388 {offsets = [0, 64], sizes = [2, 32], strides = [1, 1]} : vector<2x128xf32> to vector<2x32xf32>
    %402 = math.tanh %401 : vector<2x32xf32>
    %403 = vector.extract_strided_slice %388 {offsets = [0, 96], sizes = [2, 32], strides = [1, 1]} : vector<2x128xf32> to vector<2x32xf32>
    %404 = arith.negf %403 : vector<2x32xf32>
    %405 = math.exp %404 : vector<2x32xf32>
    %cst_134 = arith.constant 1.000000e+00 : f32
    %406 = vector.broadcast %cst_134 : f32 to vector<2x32xf32>
    %407 = arith.addf %406, %405 : vector<2x32xf32>
    %408 = arith.divf %406, %407 : vector<2x32xf32>
    %409 = arith.mulf %400, %377 : vector<2x32xf32>
    %410 = arith.mulf %394, %402 : vector<2x32xf32>
    %411 = arith.addf %409, %410 : vector<2x32xf32>
    %412 = math.tanh %411 : vector<2x32xf32>
    %413 = arith.mulf %408, %412 : vector<2x32xf32>
    %414 = vector.extract_strided_slice %413 {offsets = [0, 0], sizes = [2, 16], strides = [1, 1]} : vector<2x32xf32> to vector<2x16xf32>
    %c22_135 = arith.constant 22 : index
    %c0_136 = arith.constant 0 : index
    %415 = vector.load %arg18[%c22_135, %c0_136] : memref<32x32xf32, #tpu.memory_space<vmem>>, vector<2x16xf32>
    tpu.vector_store %arg18[%c22_135, %c0_136], %414 {strides = array<i32>} : memref<32x32xf32, #tpu.memory_space<vmem>>, vector<2x16xf32>,
    %416 = vector.extract_strided_slice %413 {offsets = [0, 16], sizes = [2, 16], strides = [1, 1]} : vector<2x32xf32> to vector<2x16xf32>
    %c8_137 = arith.constant 8 : index
    %c16_138 = arith.constant 16 : index
    %417 = vector.load %arg18[%c8_137, %c16_138] : memref<32x32xf32, #tpu.memory_space<vmem>>, vector<2x16xf32>
    tpu.vector_store %arg18[%c8_137, %c16_138], %416 {strides = array<i32>} : memref<32x32xf32, #tpu.memory_space<vmem>>, vector<2x16xf32>,
    %c24_139 = arith.constant 24 : index
    %c0_140 = arith.constant 0 : index
    %418 = vector.load %arg17[%c24_139, %c0_140] : memref<32x256xf32, #tpu.memory_space<vmem>>, vector<2x128xf32>
    %c6_141 = arith.constant 6 : index
    %c128_142 = arith.constant 128 : index
    %419 = vector.load %arg17[%c6_141, %c128_142] : memref<32x256xf32, #tpu.memory_space<vmem>>, vector<2x128xf32>
    %420 = arith.addf %418, %419 : vector<2x128xf32>
    %cst_143 = arith.constant dense<0.000000e+00> : vector<2x128xf32>
    %421 = tpu.matmul %413, %7, %cst_143 {dimension_numbers = #tpu.dot_dimension_numbers<[1], [0], [0], [1], [0, 0, 1, 1], [], []>} : vector<2x32xf32>, vector<32x128xf32>, vector<2x128xf32> -> vector<2x128xf32>
    %422 = arith.addf %421, %420 : vector<2x128xf32>
    %423 = vector.extract_strided_slice %422 {offsets = [0, 0], sizes = [2, 32], strides = [1, 1]} : vector<2x128xf32> to vector<2x32xf32>
    %424 = arith.negf %423 : vector<2x32xf32>
    %425 = math.exp %424 : vector<2x32xf32>
    %cst_144 = arith.constant 1.000000e+00 : f32
    %426 = vector.broadcast %cst_144 : f32 to vector<2x32xf32>
    %427 = arith.addf %426, %425 : vector<2x32xf32>
    %428 = arith.divf %426, %427 : vector<2x32xf32>
    %429 = vector.extract_strided_slice %422 {offsets = [0, 32], sizes = [2, 32], strides = [1, 1]} : vector<2x128xf32> to vector<2x32xf32>
    %430 = arith.negf %429 : vector<2x32xf32>
    %431 = math.exp %430 : vector<2x32xf32>
    %cst_145 = arith.constant 1.000000e+00 : f32
    %432 = vector.broadcast %cst_145 : f32 to vector<2x32xf32>
    %433 = arith.addf %432, %431 : vector<2x32xf32>
    %434 = arith.divf %432, %433 : vector<2x32xf32>
    %435 = vector.extract_strided_slice %422 {offsets = [0, 64], sizes = [2, 32], strides = [1, 1]} : vector<2x128xf32> to vector<2x32xf32>
    %436 = math.tanh %435 : vector<2x32xf32>
    %437 = vector.extract_strided_slice %422 {offsets = [0, 96], sizes = [2, 32], strides = [1, 1]} : vector<2x128xf32> to vector<2x32xf32>
    %438 = arith.negf %437 : vector<2x32xf32>
    %439 = math.exp %438 : vector<2x32xf32>
    %cst_146 = arith.constant 1.000000e+00 : f32
    %440 = vector.broadcast %cst_146 : f32 to vector<2x32xf32>
    %441 = arith.addf %440, %439 : vector<2x32xf32>
    %442 = arith.divf %440, %441 : vector<2x32xf32>
    %443 = arith.mulf %434, %411 : vector<2x32xf32>
    %444 = arith.mulf %428, %436 : vector<2x32xf32>
    %445 = arith.addf %443, %444 : vector<2x32xf32>
    %446 = math.tanh %445 : vector<2x32xf32>
    %447 = arith.mulf %442, %446 : vector<2x32xf32>
    %448 = vector.extract_strided_slice %447 {offsets = [0, 0], sizes = [2, 16], strides = [1, 1]} : vector<2x32xf32> to vector<2x16xf32>
    %c24_147 = arith.constant 24 : index
    %c0_148 = arith.constant 0 : index
    %449 = vector.load %arg18[%c24_147, %c0_148] : memref<32x32xf32, #tpu.memory_space<vmem>>, vector<2x16xf32>
    tpu.vector_store %arg18[%c24_147, %c0_148], %448 {strides = array<i32>} : memref<32x32xf32, #tpu.memory_space<vmem>>, vector<2x16xf32>,
    %450 = vector.extract_strided_slice %447 {offsets = [0, 16], sizes = [2, 16], strides = [1, 1]} : vector<2x32xf32> to vector<2x16xf32>
    %c6_149 = arith.constant 6 : index
    %c16_150 = arith.constant 16 : index
    %451 = vector.load %arg18[%c6_149, %c16_150] : memref<32x32xf32, #tpu.memory_space<vmem>>, vector<2x16xf32>
    tpu.vector_store %arg18[%c6_149, %c16_150], %450 {strides = array<i32>} : memref<32x32xf32, #tpu.memory_space<vmem>>, vector<2x16xf32>,
    %c26_151 = arith.constant 26 : index
    %c0_152 = arith.constant 0 : index
    %452 = vector.load %arg17[%c26_151, %c0_152] : memref<32x256xf32, #tpu.memory_space<vmem>>, vector<2x128xf32>
    %c4_153 = arith.constant 4 : index
    %c128_154 = arith.constant 128 : index
    %453 = vector.load %arg17[%c4_153, %c128_154] : memref<32x256xf32, #tpu.memory_space<vmem>>, vector<2x128xf32>
    %454 = arith.addf %452, %453 : vector<2x128xf32>
    %cst_155 = arith.constant dense<0.000000e+00> : vector<2x128xf32>
    %455 = tpu.matmul %447, %7, %cst_155 {dimension_numbers = #tpu.dot_dimension_numbers<[1], [0], [0], [1], [0, 0, 1, 1], [], []>} : vector<2x32xf32>, vector<32x128xf32>, vector<2x128xf32> -> vector<2x128xf32>
    %456 = arith.addf %455, %454 : vector<2x128xf32>
    %457 = vector.extract_strided_slice %456 {offsets = [0, 0], sizes = [2, 32], strides = [1, 1]} : vector<2x128xf32> to vector<2x32xf32>
    %458 = arith.negf %457 : vector<2x32xf32>
    %459 = math.exp %458 : vector<2x32xf32>
    %cst_156 = arith.constant 1.000000e+00 : f32
    %460 = vector.broadcast %cst_156 : f32 to vector<2x32xf32>
    %461 = arith.addf %460, %459 : vector<2x32xf32>
    %462 = arith.divf %460, %461 : vector<2x32xf32>
    %463 = vector.extract_strided_slice %456 {offsets = [0, 32], sizes = [2, 32], strides = [1, 1]} : vector<2x128xf32> to vector<2x32xf32>
    %464 = arith.negf %463 : vector<2x32xf32>
    %465 = math.exp %464 : vector<2x32xf32>
    %cst_157 = arith.constant 1.000000e+00 : f32
    %466 = vector.broadcast %cst_157 : f32 to vector<2x32xf32>
    %467 = arith.addf %466, %465 : vector<2x32xf32>
    %468 = arith.divf %466, %467 : vector<2x32xf32>
    %469 = vector.extract_strided_slice %456 {offsets = [0, 64], sizes = [2, 32], strides = [1, 1]} : vector<2x128xf32> to vector<2x32xf32>
    %470 = math.tanh %469 : vector<2x32xf32>
    %471 = vector.extract_strided_slice %456 {offsets = [0, 96], sizes = [2, 32], strides = [1, 1]} : vector<2x128xf32> to vector<2x32xf32>
    %472 = arith.negf %471 : vector<2x32xf32>
    %473 = math.exp %472 : vector<2x32xf32>
    %cst_158 = arith.constant 1.000000e+00 : f32
    %474 = vector.broadcast %cst_158 : f32 to vector<2x32xf32>
    %475 = arith.addf %474, %473 : vector<2x32xf32>
    %476 = arith.divf %474, %475 : vector<2x32xf32>
    %477 = arith.mulf %468, %445 : vector<2x32xf32>
    %478 = arith.mulf %462, %470 : vector<2x32xf32>
    %479 = arith.addf %477, %478 : vector<2x32xf32>
    %480 = math.tanh %479 : vector<2x32xf32>
    %481 = arith.mulf %476, %480 : vector<2x32xf32>
    %482 = vector.extract_strided_slice %481 {offsets = [0, 0], sizes = [2, 16], strides = [1, 1]} : vector<2x32xf32> to vector<2x16xf32>
    %c26_159 = arith.constant 26 : index
    %c0_160 = arith.constant 0 : index
    %483 = vector.load %arg18[%c26_159, %c0_160] : memref<32x32xf32, #tpu.memory_space<vmem>>, vector<2x16xf32>
    tpu.vector_store %arg18[%c26_159, %c0_160], %482 {strides = array<i32>} : memref<32x32xf32, #tpu.memory_space<vmem>>, vector<2x16xf32>,
    %484 = vector.extract_strided_slice %481 {offsets = [0, 16], sizes = [2, 16], strides = [1, 1]} : vector<2x32xf32> to vector<2x16xf32>
    %c4_161 = arith.constant 4 : index
    %c16_162 = arith.constant 16 : index
    %485 = vector.load %arg18[%c4_161, %c16_162] : memref<32x32xf32, #tpu.memory_space<vmem>>, vector<2x16xf32>
    tpu.vector_store %arg18[%c4_161, %c16_162], %484 {strides = array<i32>} : memref<32x32xf32, #tpu.memory_space<vmem>>, vector<2x16xf32>,
    %c28_163 = arith.constant 28 : index
    %c0_164 = arith.constant 0 : index
    %486 = vector.load %arg17[%c28_163, %c0_164] : memref<32x256xf32, #tpu.memory_space<vmem>>, vector<2x128xf32>
    %c2_165 = arith.constant 2 : index
    %c128_166 = arith.constant 128 : index
    %487 = vector.load %arg17[%c2_165, %c128_166] : memref<32x256xf32, #tpu.memory_space<vmem>>, vector<2x128xf32>
    %488 = arith.addf %486, %487 : vector<2x128xf32>
    %cst_167 = arith.constant dense<0.000000e+00> : vector<2x128xf32>
    %489 = tpu.matmul %481, %7, %cst_167 {dimension_numbers = #tpu.dot_dimension_numbers<[1], [0], [0], [1], [0, 0, 1, 1], [], []>} : vector<2x32xf32>, vector<32x128xf32>, vector<2x128xf32> -> vector<2x128xf32>
    %490 = arith.addf %489, %488 : vector<2x128xf32>
    %491 = vector.extract_strided_slice %490 {offsets = [0, 0], sizes = [2, 32], strides = [1, 1]} : vector<2x128xf32> to vector<2x32xf32>
    %492 = arith.negf %491 : vector<2x32xf32>
    %493 = math.exp %492 : vector<2x32xf32>
    %cst_168 = arith.constant 1.000000e+00 : f32
    %494 = vector.broadcast %cst_168 : f32 to vector<2x32xf32>
    %495 = arith.addf %494, %493 : vector<2x32xf32>
    %496 = arith.divf %494, %495 : vector<2x32xf32>
    %497 = vector.extract_strided_slice %490 {offsets = [0, 32], sizes = [2, 32], strides = [1, 1]} : vector<2x128xf32> to vector<2x32xf32>
    %498 = arith.negf %497 : vector<2x32xf32>
    %499 = math.exp %498 : vector<2x32xf32>
    %cst_169 = arith.constant 1.000000e+00 : f32
    %500 = vector.broadcast %cst_169 : f32 to vector<2x32xf32>
    %501 = arith.addf %500, %499 : vector<2x32xf32>
    %502 = arith.divf %500, %501 : vector<2x32xf32>
    %503 = vector.extract_strided_slice %490 {offsets = [0, 64], sizes = [2, 32], strides = [1, 1]} : vector<2x128xf32> to vector<2x32xf32>
    %504 = math.tanh %503 : vector<2x32xf32>
    %505 = vector.extract_strided_slice %490 {offsets = [0, 96], sizes = [2, 32], strides = [1, 1]} : vector<2x128xf32> to vector<2x32xf32>
    %506 = arith.negf %505 : vector<2x32xf32>
    %507 = math.exp %506 : vector<2x32xf32>
    %cst_170 = arith.constant 1.000000e+00 : f32
    %508 = vector.broadcast %cst_170 : f32 to vector<2x32xf32>
    %509 = arith.addf %508, %507 : vector<2x32xf32>
    %510 = arith.divf %508, %509 : vector<2x32xf32>
    %511 = arith.mulf %502, %479 : vector<2x32xf32>
    %512 = arith.mulf %496, %504 : vector<2x32xf32>
    %513 = arith.addf %511, %512 : vector<2x32xf32>
    %514 = math.tanh %513 : vector<2x32xf32>
    %515 = arith.mulf %510, %514 : vector<2x32xf32>
    %516 = vector.extract_strided_slice %515 {offsets = [0, 0], sizes = [2, 16], strides = [1, 1]} : vector<2x32xf32> to vector<2x16xf32>
    %c28_171 = arith.constant 28 : index
    %c0_172 = arith.constant 0 : index
    %517 = vector.load %arg18[%c28_171, %c0_172] : memref<32x32xf32, #tpu.memory_space<vmem>>, vector<2x16xf32>
    tpu.vector_store %arg18[%c28_171, %c0_172], %516 {strides = array<i32>} : memref<32x32xf32, #tpu.memory_space<vmem>>, vector<2x16xf32>,
    %518 = vector.extract_strided_slice %515 {offsets = [0, 16], sizes = [2, 16], strides = [1, 1]} : vector<2x32xf32> to vector<2x16xf32>
    %c2_173 = arith.constant 2 : index
    %c16_174 = arith.constant 16 : index
    %519 = vector.load %arg18[%c2_173, %c16_174] : memref<32x32xf32, #tpu.memory_space<vmem>>, vector<2x16xf32>
    tpu.vector_store %arg18[%c2_173, %c16_174], %518 {strides = array<i32>} : memref<32x32xf32, #tpu.memory_space<vmem>>, vector<2x16xf32>,
    %c30_175 = arith.constant 30 : index
    %c0_176 = arith.constant 0 : index
    %520 = vector.load %arg17[%c30_175, %c0_176] : memref<32x256xf32, #tpu.memory_space<vmem>>, vector<2x128xf32>
    %c0_177 = arith.constant 0 : index
    %c128_178 = arith.constant 128 : index
    %521 = vector.load %arg17[%c0_177, %c128_178] : memref<32x256xf32, #tpu.memory_space<vmem>>, vector<2x128xf32>
    %522 = arith.addf %520, %521 : vector<2x128xf32>
    %cst_179 = arith.constant dense<0.000000e+00> : vector<2x128xf32>
    %523 = tpu.matmul %515, %7, %cst_179 {dimension_numbers = #tpu.dot_dimension_numbers<[1], [0], [0], [1], [0, 0, 1, 1], [], []>} : vector<2x32xf32>, vector<32x128xf32>, vector<2x128xf32> -> vector<2x128xf32>
    %524 = arith.addf %523, %522 : vector<2x128xf32>
    %525 = vector.extract_strided_slice %524 {offsets = [0, 0], sizes = [2, 32], strides = [1, 1]} : vector<2x128xf32> to vector<2x32xf32>
    %526 = arith.negf %525 : vector<2x32xf32>
    %527 = math.exp %526 : vector<2x32xf32>
    %cst_180 = arith.constant 1.000000e+00 : f32
    %528 = vector.broadcast %cst_180 : f32 to vector<2x32xf32>
    %529 = arith.addf %528, %527 : vector<2x32xf32>
    %530 = arith.divf %528, %529 : vector<2x32xf32>
    %531 = vector.extract_strided_slice %524 {offsets = [0, 32], sizes = [2, 32], strides = [1, 1]} : vector<2x128xf32> to vector<2x32xf32>
    %532 = arith.negf %531 : vector<2x32xf32>
    %533 = math.exp %532 : vector<2x32xf32>
    %cst_181 = arith.constant 1.000000e+00 : f32
    %534 = vector.broadcast %cst_181 : f32 to vector<2x32xf32>
    %535 = arith.addf %534, %533 : vector<2x32xf32>
    %536 = arith.divf %534, %535 : vector<2x32xf32>
    %537 = vector.extract_strided_slice %524 {offsets = [0, 64], sizes = [2, 32], strides = [1, 1]} : vector<2x128xf32> to vector<2x32xf32>
    %538 = math.tanh %537 : vector<2x32xf32>
    %539 = vector.extract_strided_slice %524 {offsets = [0, 96], sizes = [2, 32], strides = [1, 1]} : vector<2x128xf32> to vector<2x32xf32>
    %540 = arith.negf %539 : vector<2x32xf32>
    %541 = math.exp %540 : vector<2x32xf32>
    %cst_182 = arith.constant 1.000000e+00 : f32
    %542 = vector.broadcast %cst_182 : f32 to vector<2x32xf32>
    %543 = arith.addf %542, %541 : vector<2x32xf32>
    %544 = arith.divf %542, %543 : vector<2x32xf32>
    %545 = arith.mulf %536, %513 : vector<2x32xf32>
    %546 = arith.mulf %530, %538 : vector<2x32xf32>
    %547 = arith.addf %545, %546 : vector<2x32xf32>
    %548 = math.tanh %547 : vector<2x32xf32>
    %549 = arith.mulf %544, %548 : vector<2x32xf32>
    %550 = vector.extract_strided_slice %549 {offsets = [0, 0], sizes = [2, 16], strides = [1, 1]} : vector<2x32xf32> to vector<2x16xf32>
    %c30_183 = arith.constant 30 : index
    %c0_184 = arith.constant 0 : index
    %551 = vector.load %arg18[%c30_183, %c0_184] : memref<32x32xf32, #tpu.memory_space<vmem>>, vector<2x16xf32>
    tpu.vector_store %arg18[%c30_183, %c0_184], %550 {strides = array<i32>} : memref<32x32xf32, #tpu.memory_space<vmem>>, vector<2x16xf32>,
    %552 = vector.extract_strided_slice %549 {offsets = [0, 16], sizes = [2, 16], strides = [1, 1]} : vector<2x32xf32> to vector<2x16xf32>
    %c0_185 = arith.constant 0 : index
    %c16_186 = arith.constant 16 : index
    %553 = vector.load %arg18[%c0_185, %c16_186] : memref<32x32xf32, #tpu.memory_space<vmem>>, vector<2x16xf32>
    tpu.vector_store %arg18[%c0_185, %c16_186], %552 {strides = array<i32>} : memref<32x32xf32, #tpu.memory_space<vmem>>, vector<2x16xf32>,
    %c0_187 = arith.constant 0 : index
    %c0_188 = arith.constant 0 : index
    %554 = vector.load %arg18[%c0_187, %c0_188] : memref<32x32xf32, #tpu.memory_space<vmem>>, vector<32x32xf32>
    %c0_189 = arith.constant 0 : index
    %c0_190 = arith.constant 0 : index
    %555 = vector.load %arg5[%c0_189, %c0_190] : memref<32x256xf32, #tpu.memory_space<vmem>>, vector<32x256xf32>
    %cst_191 = arith.constant dense<0.000000e+00> : vector<32x256xf32>
    %556 = tpu.matmul %554, %555, %cst_191 {dimension_numbers = #tpu.dot_dimension_numbers<[1], [0], [0], [1], [0, 0, 1, 1], [], []>} : vector<32x32xf32>, vector<32x256xf32>, vector<32x256xf32> -> vector<32x256xf32>
    %c0_192 = arith.constant 0 : index
    %c0_193 = arith.constant 0 : index
    %557 = vector.load %arg6[%c0_192, %c0_193] : memref<1x256xf32, #tpu.memory_space<vmem>>, vector<1x256xf32>
    %558 = vector.broadcast %557 : vector<1x256xf32> to vector<32x256xf32>
    %559 = arith.addf %556, %558 : vector<32x256xf32>
    %c0_194 = arith.constant 0 : index
    %c0_195 = arith.constant 0 : index
    %560 = vector.load %arg19[%c0_194, %c0_195] : memref<32x256xf32, #tpu.memory_space<vmem>>, vector<32x256xf32>
    tpu.vector_store %arg19[%c0_194, %c0_195], %559 {strides = array<i32>} : memref<32x256xf32, #tpu.memory_space<vmem>>, vector<32x256xf32>,
    %c0_196 = arith.constant 0 : index
    %c0_197 = arith.constant 0 : index
    %561 = vector.load %arg7[%c0_196, %c0_197] : memref<32x128xf32, #tpu.memory_space<vmem>>, vector<32x128xf32>
    %cst_198 = arith.constant 0.000000e+00 : f32
    %562 = vector.broadcast %cst_198 : f32 to vector<2x32xf32>
    %cst_199 = arith.constant 0.000000e+00 : f32
    %563 = vector.broadcast %cst_199 : f32 to vector<2x32xf32>
    %cst_200 = arith.constant 0.000000e+00 : f32
    %564 = vector.broadcast %cst_200 : f32 to vector<2x32xf32>
    %cst_201 = arith.constant 0xFF800000 : f32
    %565 = vector.broadcast %cst_201 : f32 to vector<2x32xf32>
    %c0_202 = arith.constant 0 : index
    %c0_203 = arith.constant 0 : index
    %566 = vector.load %arg19[%c0_202, %c0_203] : memref<32x256xf32, #tpu.memory_space<vmem>>, vector<2x128xf32>
    %c30_204 = arith.constant 30 : index
    %c128_205 = arith.constant 128 : index
    %567 = vector.load %arg19[%c30_204, %c128_205] : memref<32x256xf32, #tpu.memory_space<vmem>>, vector<2x128xf32>
    %568 = arith.addf %566, %567 : vector<2x128xf32>
    %cst_206 = arith.constant dense<0.000000e+00> : vector<2x128xf32>
    %569 = tpu.matmul %562, %561, %cst_206 {dimension_numbers = #tpu.dot_dimension_numbers<[1], [0], [0], [1], [0, 0, 1, 1], [], []>} : vector<2x32xf32>, vector<32x128xf32>, vector<2x128xf32> -> vector<2x128xf32>
    %570 = arith.addf %569, %568 : vector<2x128xf32>
    %571 = vector.extract_strided_slice %570 {offsets = [0, 0], sizes = [2, 32], strides = [1, 1]} : vector<2x128xf32> to vector<2x32xf32>
    %572 = arith.negf %571 : vector<2x32xf32>
    %573 = math.exp %572 : vector<2x32xf32>
    %cst_207 = arith.constant 1.000000e+00 : f32
    %574 = vector.broadcast %cst_207 : f32 to vector<2x32xf32>
    %575 = arith.addf %574, %573 : vector<2x32xf32>
    %576 = arith.divf %574, %575 : vector<2x32xf32>
    %577 = vector.extract_strided_slice %570 {offsets = [0, 32], sizes = [2, 32], strides = [1, 1]} : vector<2x128xf32> to vector<2x32xf32>
    %578 = arith.negf %577 : vector<2x32xf32>
    %579 = math.exp %578 : vector<2x32xf32>
    %cst_208 = arith.constant 1.000000e+00 : f32
    %580 = vector.broadcast %cst_208 : f32 to vector<2x32xf32>
    %581 = arith.addf %580, %579 : vector<2x32xf32>
    %582 = arith.divf %580, %581 : vector<2x32xf32>
    %583 = vector.extract_strided_slice %570 {offsets = [0, 64], sizes = [2, 32], strides = [1, 1]} : vector<2x128xf32> to vector<2x32xf32>
    %584 = math.tanh %583 : vector<2x32xf32>
    %585 = vector.extract_strided_slice %570 {offsets = [0, 96], sizes = [2, 32], strides = [1, 1]} : vector<2x128xf32> to vector<2x32xf32>
    %586 = arith.negf %585 : vector<2x32xf32>
    %587 = math.exp %586 : vector<2x32xf32>
    %cst_209 = arith.constant 1.000000e+00 : f32
    %588 = vector.broadcast %cst_209 : f32 to vector<2x32xf32>
    %589 = arith.addf %588, %587 : vector<2x32xf32>
    %590 = arith.divf %588, %589 : vector<2x32xf32>
    %591 = arith.mulf %582, %563 : vector<2x32xf32>
    %592 = arith.mulf %576, %584 : vector<2x32xf32>
    %593 = arith.addf %591, %592 : vector<2x32xf32>
    %594 = math.tanh %593 : vector<2x32xf32>
    %595 = arith.mulf %590, %594 : vector<2x32xf32>
    %596 = arith.addf %564, %595 : vector<2x32xf32>
    %597 = arith.maximumf %565, %595 : vector<2x32xf32>
    %c2_210 = arith.constant 2 : index
    %c0_211 = arith.constant 0 : index
    %598 = vector.load %arg19[%c2_210, %c0_211] : memref<32x256xf32, #tpu.memory_space<vmem>>, vector<2x128xf32>
    %c28_212 = arith.constant 28 : index
    %c128_213 = arith.constant 128 : index
    %599 = vector.load %arg19[%c28_212, %c128_213] : memref<32x256xf32, #tpu.memory_space<vmem>>, vector<2x128xf32>
    %600 = arith.addf %598, %599 : vector<2x128xf32>
    %cst_214 = arith.constant dense<0.000000e+00> : vector<2x128xf32>
    %601 = tpu.matmul %595, %561, %cst_214 {dimension_numbers = #tpu.dot_dimension_numbers<[1], [0], [0], [1], [0, 0, 1, 1], [], []>} : vector<2x32xf32>, vector<32x128xf32>, vector<2x128xf32> -> vector<2x128xf32>
    %602 = arith.addf %601, %600 : vector<2x128xf32>
    %603 = vector.extract_strided_slice %602 {offsets = [0, 0], sizes = [2, 32], strides = [1, 1]} : vector<2x128xf32> to vector<2x32xf32>
    %604 = arith.negf %603 : vector<2x32xf32>
    %605 = math.exp %604 : vector<2x32xf32>
    %cst_215 = arith.constant 1.000000e+00 : f32
    %606 = vector.broadcast %cst_215 : f32 to vector<2x32xf32>
    %607 = arith.addf %606, %605 : vector<2x32xf32>
    %608 = arith.divf %606, %607 : vector<2x32xf32>
    %609 = vector.extract_strided_slice %602 {offsets = [0, 32], sizes = [2, 32], strides = [1, 1]} : vector<2x128xf32> to vector<2x32xf32>
    %610 = arith.negf %609 : vector<2x32xf32>
    %611 = math.exp %610 : vector<2x32xf32>
    %cst_216 = arith.constant 1.000000e+00 : f32
    %612 = vector.broadcast %cst_216 : f32 to vector<2x32xf32>
    %613 = arith.addf %612, %611 : vector<2x32xf32>
    %614 = arith.divf %612, %613 : vector<2x32xf32>
    %615 = vector.extract_strided_slice %602 {offsets = [0, 64], sizes = [2, 32], strides = [1, 1]} : vector<2x128xf32> to vector<2x32xf32>
    %616 = math.tanh %615 : vector<2x32xf32>
    %617 = vector.extract_strided_slice %602 {offsets = [0, 96], sizes = [2, 32], strides = [1, 1]} : vector<2x128xf32> to vector<2x32xf32>
    %618 = arith.negf %617 : vector<2x32xf32>
    %619 = math.exp %618 : vector<2x32xf32>
    %cst_217 = arith.constant 1.000000e+00 : f32
    %620 = vector.broadcast %cst_217 : f32 to vector<2x32xf32>
    %621 = arith.addf %620, %619 : vector<2x32xf32>
    %622 = arith.divf %620, %621 : vector<2x32xf32>
    %623 = arith.mulf %614, %593 : vector<2x32xf32>
    %624 = arith.mulf %608, %616 : vector<2x32xf32>
    %625 = arith.addf %623, %624 : vector<2x32xf32>
    %626 = math.tanh %625 : vector<2x32xf32>
    %627 = arith.mulf %622, %626 : vector<2x32xf32>
    %628 = arith.addf %596, %627 : vector<2x32xf32>
    %629 = arith.maximumf %597, %627 : vector<2x32xf32>
    %c4_218 = arith.constant 4 : index
    %c0_219 = arith.constant 0 : index
    %630 = vector.load %arg19[%c4_218, %c0_219] : memref<32x256xf32, #tpu.memory_space<vmem>>, vector<2x128xf32>
    %c26_220 = arith.constant 26 : index
    %c128_221 = arith.constant 128 : index
    %631 = vector.load %arg19[%c26_220, %c128_221] : memref<32x256xf32, #tpu.memory_space<vmem>>, vector<2x128xf32>
    %632 = arith.addf %630, %631 : vector<2x128xf32>
    %cst_222 = arith.constant dense<0.000000e+00> : vector<2x128xf32>
    %633 = tpu.matmul %627, %561, %cst_222 {dimension_numbers = #tpu.dot_dimension_numbers<[1], [0], [0], [1], [0, 0, 1, 1], [], []>} : vector<2x32xf32>, vector<32x128xf32>, vector<2x128xf32> -> vector<2x128xf32>
    %634 = arith.addf %633, %632 : vector<2x128xf32>
    %635 = vector.extract_strided_slice %634 {offsets = [0, 0], sizes = [2, 32], strides = [1, 1]} : vector<2x128xf32> to vector<2x32xf32>
    %636 = arith.negf %635 : vector<2x32xf32>
    %637 = math.exp %636 : vector<2x32xf32>
    %cst_223 = arith.constant 1.000000e+00 : f32
    %638 = vector.broadcast %cst_223 : f32 to vector<2x32xf32>
    %639 = arith.addf %638, %637 : vector<2x32xf32>
    %640 = arith.divf %638, %639 : vector<2x32xf32>
    %641 = vector.extract_strided_slice %634 {offsets = [0, 32], sizes = [2, 32], strides = [1, 1]} : vector<2x128xf32> to vector<2x32xf32>
    %642 = arith.negf %641 : vector<2x32xf32>
    %643 = math.exp %642 : vector<2x32xf32>
    %cst_224 = arith.constant 1.000000e+00 : f32
    %644 = vector.broadcast %cst_224 : f32 to vector<2x32xf32>
    %645 = arith.addf %644, %643 : vector<2x32xf32>
    %646 = arith.divf %644, %645 : vector<2x32xf32>
    %647 = vector.extract_strided_slice %634 {offsets = [0, 64], sizes = [2, 32], strides = [1, 1]} : vector<2x128xf32> to vector<2x32xf32>
    %648 = math.tanh %647 : vector<2x32xf32>
    %649 = vector.extract_strided_slice %634 {offsets = [0, 96], sizes = [2, 32], strides = [1, 1]} : vector<2x128xf32> to vector<2x32xf32>
    %650 = arith.negf %649 : vector<2x32xf32>
    %651 = math.exp %650 : vector<2x32xf32>
    %cst_225 = arith.constant 1.000000e+00 : f32
    %652 = vector.broadcast %cst_225 : f32 to vector<2x32xf32>
    %653 = arith.addf %652, %651 : vector<2x32xf32>
    %654 = arith.divf %652, %653 : vector<2x32xf32>
    %655 = arith.mulf %646, %625 : vector<2x32xf32>
    %656 = arith.mulf %640, %648 : vector<2x32xf32>
    %657 = arith.addf %655, %656 : vector<2x32xf32>
    %658 = math.tanh %657 : vector<2x32xf32>
    %659 = arith.mulf %654, %658 : vector<2x32xf32>
    %660 = arith.addf %628, %659 : vector<2x32xf32>
    %661 = arith.maximumf %629, %659 : vector<2x32xf32>
    %c6_226 = arith.constant 6 : index
    %c0_227 = arith.constant 0 : index
    %662 = vector.load %arg19[%c6_226, %c0_227] : memref<32x256xf32, #tpu.memory_space<vmem>>, vector<2x128xf32>
    %c24_228 = arith.constant 24 : index
    %c128_229 = arith.constant 128 : index
    %663 = vector.load %arg19[%c24_228, %c128_229] : memref<32x256xf32, #tpu.memory_space<vmem>>, vector<2x128xf32>
    %664 = arith.addf %662, %663 : vector<2x128xf32>
    %cst_230 = arith.constant dense<0.000000e+00> : vector<2x128xf32>
    %665 = tpu.matmul %659, %561, %cst_230 {dimension_numbers = #tpu.dot_dimension_numbers<[1], [0], [0], [1], [0, 0, 1, 1], [], []>} : vector<2x32xf32>, vector<32x128xf32>, vector<2x128xf32> -> vector<2x128xf32>
    %666 = arith.addf %665, %664 : vector<2x128xf32>
    %667 = vector.extract_strided_slice %666 {offsets = [0, 0], sizes = [2, 32], strides = [1, 1]} : vector<2x128xf32> to vector<2x32xf32>
    %668 = arith.negf %667 : vector<2x32xf32>
    %669 = math.exp %668 : vector<2x32xf32>
    %cst_231 = arith.constant 1.000000e+00 : f32
    %670 = vector.broadcast %cst_231 : f32 to vector<2x32xf32>
    %671 = arith.addf %670, %669 : vector<2x32xf32>
    %672 = arith.divf %670, %671 : vector<2x32xf32>
    %673 = vector.extract_strided_slice %666 {offsets = [0, 32], sizes = [2, 32], strides = [1, 1]} : vector<2x128xf32> to vector<2x32xf32>
    %674 = arith.negf %673 : vector<2x32xf32>
    %675 = math.exp %674 : vector<2x32xf32>
    %cst_232 = arith.constant 1.000000e+00 : f32
    %676 = vector.broadcast %cst_232 : f32 to vector<2x32xf32>
    %677 = arith.addf %676, %675 : vector<2x32xf32>
    %678 = arith.divf %676, %677 : vector<2x32xf32>
    %679 = vector.extract_strided_slice %666 {offsets = [0, 64], sizes = [2, 32], strides = [1, 1]} : vector<2x128xf32> to vector<2x32xf32>
    %680 = math.tanh %679 : vector<2x32xf32>
    %681 = vector.extract_strided_slice %666 {offsets = [0, 96], sizes = [2, 32], strides = [1, 1]} : vector<2x128xf32> to vector<2x32xf32>
    %682 = arith.negf %681 : vector<2x32xf32>
    %683 = math.exp %682 : vector<2x32xf32>
    %cst_233 = arith.constant 1.000000e+00 : f32
    %684 = vector.broadcast %cst_233 : f32 to vector<2x32xf32>
    %685 = arith.addf %684, %683 : vector<2x32xf32>
    %686 = arith.divf %684, %685 : vector<2x32xf32>
    %687 = arith.mulf %678, %657 : vector<2x32xf32>
    %688 = arith.mulf %672, %680 : vector<2x32xf32>
    %689 = arith.addf %687, %688 : vector<2x32xf32>
    %690 = math.tanh %689 : vector<2x32xf32>
    %691 = arith.mulf %686, %690 : vector<2x32xf32>
    %692 = arith.addf %660, %691 : vector<2x32xf32>
    %693 = arith.maximumf %661, %691 : vector<2x32xf32>
    %c8_234 = arith.constant 8 : index
    %c0_235 = arith.constant 0 : index
    %694 = vector.load %arg19[%c8_234, %c0_235] : memref<32x256xf32, #tpu.memory_space<vmem>>, vector<2x128xf32>
    %c22_236 = arith.constant 22 : index
    %c128_237 = arith.constant 128 : index
    %695 = vector.load %arg19[%c22_236, %c128_237] : memref<32x256xf32, #tpu.memory_space<vmem>>, vector<2x128xf32>
    %696 = arith.addf %694, %695 : vector<2x128xf32>
    %cst_238 = arith.constant dense<0.000000e+00> : vector<2x128xf32>
    %697 = tpu.matmul %691, %561, %cst_238 {dimension_numbers = #tpu.dot_dimension_numbers<[1], [0], [0], [1], [0, 0, 1, 1], [], []>} : vector<2x32xf32>, vector<32x128xf32>, vector<2x128xf32> -> vector<2x128xf32>
    %698 = arith.addf %697, %696 : vector<2x128xf32>
    %699 = vector.extract_strided_slice %698 {offsets = [0, 0], sizes = [2, 32], strides = [1, 1]} : vector<2x128xf32> to vector<2x32xf32>
    %700 = arith.negf %699 : vector<2x32xf32>
    %701 = math.exp %700 : vector<2x32xf32>
    %cst_239 = arith.constant 1.000000e+00 : f32
    %702 = vector.broadcast %cst_239 : f32 to vector<2x32xf32>
    %703 = arith.addf %702, %701 : vector<2x32xf32>
    %704 = arith.divf %702, %703 : vector<2x32xf32>
    %705 = vector.extract_strided_slice %698 {offsets = [0, 32], sizes = [2, 32], strides = [1, 1]} : vector<2x128xf32> to vector<2x32xf32>
    %706 = arith.negf %705 : vector<2x32xf32>
    %707 = math.exp %706 : vector<2x32xf32>
    %cst_240 = arith.constant 1.000000e+00 : f32
    %708 = vector.broadcast %cst_240 : f32 to vector<2x32xf32>
    %709 = arith.addf %708, %707 : vector<2x32xf32>
    %710 = arith.divf %708, %709 : vector<2x32xf32>
    %711 = vector.extract_strided_slice %698 {offsets = [0, 64], sizes = [2, 32], strides = [1, 1]} : vector<2x128xf32> to vector<2x32xf32>
    %712 = math.tanh %711 : vector<2x32xf32>
    %713 = vector.extract_strided_slice %698 {offsets = [0, 96], sizes = [2, 32], strides = [1, 1]} : vector<2x128xf32> to vector<2x32xf32>
    %714 = arith.negf %713 : vector<2x32xf32>
    %715 = math.exp %714 : vector<2x32xf32>
    %cst_241 = arith.constant 1.000000e+00 : f32
    %716 = vector.broadcast %cst_241 : f32 to vector<2x32xf32>
    %717 = arith.addf %716, %715 : vector<2x32xf32>
    %718 = arith.divf %716, %717 : vector<2x32xf32>
    %719 = arith.mulf %710, %689 : vector<2x32xf32>
    %720 = arith.mulf %704, %712 : vector<2x32xf32>
    %721 = arith.addf %719, %720 : vector<2x32xf32>
    %722 = math.tanh %721 : vector<2x32xf32>
    %723 = arith.mulf %718, %722 : vector<2x32xf32>
    %724 = arith.addf %692, %723 : vector<2x32xf32>
    %725 = arith.maximumf %693, %723 : vector<2x32xf32>
    %c10_242 = arith.constant 10 : index
    %c0_243 = arith.constant 0 : index
    %726 = vector.load %arg19[%c10_242, %c0_243] : memref<32x256xf32, #tpu.memory_space<vmem>>, vector<2x128xf32>
    %c20_244 = arith.constant 20 : index
    %c128_245 = arith.constant 128 : index
    %727 = vector.load %arg19[%c20_244, %c128_245] : memref<32x256xf32, #tpu.memory_space<vmem>>, vector<2x128xf32>
    %728 = arith.addf %726, %727 : vector<2x128xf32>
    %cst_246 = arith.constant dense<0.000000e+00> : vector<2x128xf32>
    %729 = tpu.matmul %723, %561, %cst_246 {dimension_numbers = #tpu.dot_dimension_numbers<[1], [0], [0], [1], [0, 0, 1, 1], [], []>} : vector<2x32xf32>, vector<32x128xf32>, vector<2x128xf32> -> vector<2x128xf32>
    %730 = arith.addf %729, %728 : vector<2x128xf32>
    %731 = vector.extract_strided_slice %730 {offsets = [0, 0], sizes = [2, 32], strides = [1, 1]} : vector<2x128xf32> to vector<2x32xf32>
    %732 = arith.negf %731 : vector<2x32xf32>
    %733 = math.exp %732 : vector<2x32xf32>
    %cst_247 = arith.constant 1.000000e+00 : f32
    %734 = vector.broadcast %cst_247 : f32 to vector<2x32xf32>
    %735 = arith.addf %734, %733 : vector<2x32xf32>
    %736 = arith.divf %734, %735 : vector<2x32xf32>
    %737 = vector.extract_strided_slice %730 {offsets = [0, 32], sizes = [2, 32], strides = [1, 1]} : vector<2x128xf32> to vector<2x32xf32>
    %738 = arith.negf %737 : vector<2x32xf32>
    %739 = math.exp %738 : vector<2x32xf32>
    %cst_248 = arith.constant 1.000000e+00 : f32
    %740 = vector.broadcast %cst_248 : f32 to vector<2x32xf32>
    %741 = arith.addf %740, %739 : vector<2x32xf32>
    %742 = arith.divf %740, %741 : vector<2x32xf32>
    %743 = vector.extract_strided_slice %730 {offsets = [0, 64], sizes = [2, 32], strides = [1, 1]} : vector<2x128xf32> to vector<2x32xf32>
    %744 = math.tanh %743 : vector<2x32xf32>
    %745 = vector.extract_strided_slice %730 {offsets = [0, 96], sizes = [2, 32], strides = [1, 1]} : vector<2x128xf32> to vector<2x32xf32>
    %746 = arith.negf %745 : vector<2x32xf32>
    %747 = math.exp %746 : vector<2x32xf32>
    %cst_249 = arith.constant 1.000000e+00 : f32
    %748 = vector.broadcast %cst_249 : f32 to vector<2x32xf32>
    %749 = arith.addf %748, %747 : vector<2x32xf32>
    %750 = arith.divf %748, %749 : vector<2x32xf32>
    %751 = arith.mulf %742, %721 : vector<2x32xf32>
    %752 = arith.mulf %736, %744 : vector<2x32xf32>
    %753 = arith.addf %751, %752 : vector<2x32xf32>
    %754 = math.tanh %753 : vector<2x32xf32>
    %755 = arith.mulf %750, %754 : vector<2x32xf32>
    %756 = arith.addf %724, %755 : vector<2x32xf32>
    %757 = arith.maximumf %725, %755 : vector<2x32xf32>
    %c12_250 = arith.constant 12 : index
    %c0_251 = arith.constant 0 : index
    %758 = vector.load %arg19[%c12_250, %c0_251] : memref<32x256xf32, #tpu.memory_space<vmem>>, vector<2x128xf32>
    %c18_252 = arith.constant 18 : index
    %c128_253 = arith.constant 128 : index
    %759 = vector.load %arg19[%c18_252, %c128_253] : memref<32x256xf32, #tpu.memory_space<vmem>>, vector<2x128xf32>
    %760 = arith.addf %758, %759 : vector<2x128xf32>
    %cst_254 = arith.constant dense<0.000000e+00> : vector<2x128xf32>
    %761 = tpu.matmul %755, %561, %cst_254 {dimension_numbers = #tpu.dot_dimension_numbers<[1], [0], [0], [1], [0, 0, 1, 1], [], []>} : vector<2x32xf32>, vector<32x128xf32>, vector<2x128xf32> -> vector<2x128xf32>
    %762 = arith.addf %761, %760 : vector<2x128xf32>
    %763 = vector.extract_strided_slice %762 {offsets = [0, 0], sizes = [2, 32], strides = [1, 1]} : vector<2x128xf32> to vector<2x32xf32>
    %764 = arith.negf %763 : vector<2x32xf32>
    %765 = math.exp %764 : vector<2x32xf32>
    %cst_255 = arith.constant 1.000000e+00 : f32
    %766 = vector.broadcast %cst_255 : f32 to vector<2x32xf32>
    %767 = arith.addf %766, %765 : vector<2x32xf32>
    %768 = arith.divf %766, %767 : vector<2x32xf32>
    %769 = vector.extract_strided_slice %762 {offsets = [0, 32], sizes = [2, 32], strides = [1, 1]} : vector<2x128xf32> to vector<2x32xf32>
    %770 = arith.negf %769 : vector<2x32xf32>
    %771 = math.exp %770 : vector<2x32xf32>
    %cst_256 = arith.constant 1.000000e+00 : f32
    %772 = vector.broadcast %cst_256 : f32 to vector<2x32xf32>
    %773 = arith.addf %772, %771 : vector<2x32xf32>
    %774 = arith.divf %772, %773 : vector<2x32xf32>
    %775 = vector.extract_strided_slice %762 {offsets = [0, 64], sizes = [2, 32], strides = [1, 1]} : vector<2x128xf32> to vector<2x32xf32>
    %776 = math.tanh %775 : vector<2x32xf32>
    %777 = vector.extract_strided_slice %762 {offsets = [0, 96], sizes = [2, 32], strides = [1, 1]} : vector<2x128xf32> to vector<2x32xf32>
    %778 = arith.negf %777 : vector<2x32xf32>
    %779 = math.exp %778 : vector<2x32xf32>
    %cst_257 = arith.constant 1.000000e+00 : f32
    %780 = vector.broadcast %cst_257 : f32 to vector<2x32xf32>
    %781 = arith.addf %780, %779 : vector<2x32xf32>
    %782 = arith.divf %780, %781 : vector<2x32xf32>
    %783 = arith.mulf %774, %753 : vector<2x32xf32>
    %784 = arith.mulf %768, %776 : vector<2x32xf32>
    %785 = arith.addf %783, %784 : vector<2x32xf32>
    %786 = math.tanh %785 : vector<2x32xf32>
    %787 = arith.mulf %782, %786 : vector<2x32xf32>
    %788 = arith.addf %756, %787 : vector<2x32xf32>
    %789 = arith.maximumf %757, %787 : vector<2x32xf32>
    %c14_258 = arith.constant 14 : index
    %c0_259 = arith.constant 0 : index
    %790 = vector.load %arg19[%c14_258, %c0_259] : memref<32x256xf32, #tpu.memory_space<vmem>>, vector<2x128xf32>
    %c16_260 = arith.constant 16 : index
    %c128_261 = arith.constant 128 : index
    %791 = vector.load %arg19[%c16_260, %c128_261] : memref<32x256xf32, #tpu.memory_space<vmem>>, vector<2x128xf32>
    %792 = arith.addf %790, %791 : vector<2x128xf32>
    %cst_262 = arith.constant dense<0.000000e+00> : vector<2x128xf32>
    %793 = tpu.matmul %787, %561, %cst_262 {dimension_numbers = #tpu.dot_dimension_numbers<[1], [0], [0], [1], [0, 0, 1, 1], [], []>} : vector<2x32xf32>, vector<32x128xf32>, vector<2x128xf32> -> vector<2x128xf32>
    %794 = arith.addf %793, %792 : vector<2x128xf32>
    %795 = vector.extract_strided_slice %794 {offsets = [0, 0], sizes = [2, 32], strides = [1, 1]} : vector<2x128xf32> to vector<2x32xf32>
    %796 = arith.negf %795 : vector<2x32xf32>
    %797 = math.exp %796 : vector<2x32xf32>
    %cst_263 = arith.constant 1.000000e+00 : f32
    %798 = vector.broadcast %cst_263 : f32 to vector<2x32xf32>
    %799 = arith.addf %798, %797 : vector<2x32xf32>
    %800 = arith.divf %798, %799 : vector<2x32xf32>
    %801 = vector.extract_strided_slice %794 {offsets = [0, 32], sizes = [2, 32], strides = [1, 1]} : vector<2x128xf32> to vector<2x32xf32>
    %802 = arith.negf %801 : vector<2x32xf32>
    %803 = math.exp %802 : vector<2x32xf32>
    %cst_264 = arith.constant 1.000000e+00 : f32
    %804 = vector.broadcast %cst_264 : f32 to vector<2x32xf32>
    %805 = arith.addf %804, %803 : vector<2x32xf32>
    %806 = arith.divf %804, %805 : vector<2x32xf32>
    %807 = vector.extract_strided_slice %794 {offsets = [0, 64], sizes = [2, 32], strides = [1, 1]} : vector<2x128xf32> to vector<2x32xf32>
    %808 = math.tanh %807 : vector<2x32xf32>
    %809 = vector.extract_strided_slice %794 {offsets = [0, 96], sizes = [2, 32], strides = [1, 1]} : vector<2x128xf32> to vector<2x32xf32>
    %810 = arith.negf %809 : vector<2x32xf32>
    %811 = math.exp %810 : vector<2x32xf32>
    %cst_265 = arith.constant 1.000000e+00 : f32
    %812 = vector.broadcast %cst_265 : f32 to vector<2x32xf32>
    %813 = arith.addf %812, %811 : vector<2x32xf32>
    %814 = arith.divf %812, %813 : vector<2x32xf32>
    %815 = arith.mulf %806, %785 : vector<2x32xf32>
    %816 = arith.mulf %800, %808 : vector<2x32xf32>
    %817 = arith.addf %815, %816 : vector<2x32xf32>
    %818 = math.tanh %817 : vector<2x32xf32>
    %819 = arith.mulf %814, %818 : vector<2x32xf32>
    %820 = arith.addf %788, %819 : vector<2x32xf32>
    %821 = arith.maximumf %789, %819 : vector<2x32xf32>
    %c16_266 = arith.constant 16 : index
    %c0_267 = arith.constant 0 : index
    %822 = vector.load %arg19[%c16_266, %c0_267] : memref<32x256xf32, #tpu.memory_space<vmem>>, vector<2x128xf32>
    %c14_268 = arith.constant 14 : index
    %c128_269 = arith.constant 128 : index
    %823 = vector.load %arg19[%c14_268, %c128_269] : memref<32x256xf32, #tpu.memory_space<vmem>>, vector<2x128xf32>
    %824 = arith.addf %822, %823 : vector<2x128xf32>
    %cst_270 = arith.constant dense<0.000000e+00> : vector<2x128xf32>
    %825 = tpu.matmul %819, %561, %cst_270 {dimension_numbers = #tpu.dot_dimension_numbers<[1], [0], [0], [1], [0, 0, 1, 1], [], []>} : vector<2x32xf32>, vector<32x128xf32>, vector<2x128xf32> -> vector<2x128xf32>
    %826 = arith.addf %825, %824 : vector<2x128xf32>
    %827 = vector.extract_strided_slice %826 {offsets = [0, 0], sizes = [2, 32], strides = [1, 1]} : vector<2x128xf32> to vector<2x32xf32>
    %828 = arith.negf %827 : vector<2x32xf32>
    %829 = math.exp %828 : vector<2x32xf32>
    %cst_271 = arith.constant 1.000000e+00 : f32
    %830 = vector.broadcast %cst_271 : f32 to vector<2x32xf32>
    %831 = arith.addf %830, %829 : vector<2x32xf32>
    %832 = arith.divf %830, %831 : vector<2x32xf32>
    %833 = vector.extract_strided_slice %826 {offsets = [0, 32], sizes = [2, 32], strides = [1, 1]} : vector<2x128xf32> to vector<2x32xf32>
    %834 = arith.negf %833 : vector<2x32xf32>
    %835 = math.exp %834 : vector<2x32xf32>
    %cst_272 = arith.constant 1.000000e+00 : f32
    %836 = vector.broadcast %cst_272 : f32 to vector<2x32xf32>
    %837 = arith.addf %836, %835 : vector<2x32xf32>
    %838 = arith.divf %836, %837 : vector<2x32xf32>
    %839 = vector.extract_strided_slice %826 {offsets = [0, 64], sizes = [2, 32], strides = [1, 1]} : vector<2x128xf32> to vector<2x32xf32>
    %840 = math.tanh %839 : vector<2x32xf32>
    %841 = vector.extract_strided_slice %826 {offsets = [0, 96], sizes = [2, 32], strides = [1, 1]} : vector<2x128xf32> to vector<2x32xf32>
    %842 = arith.negf %841 : vector<2x32xf32>
    %843 = math.exp %842 : vector<2x32xf32>
    %cst_273 = arith.constant 1.000000e+00 : f32
    %844 = vector.broadcast %cst_273 : f32 to vector<2x32xf32>
    %845 = arith.addf %844, %843 : vector<2x32xf32>
    %846 = arith.divf %844, %845 : vector<2x32xf32>
    %847 = arith.mulf %838, %817 : vector<2x32xf32>
    %848 = arith.mulf %832, %840 : vector<2x32xf32>
    %849 = arith.addf %847, %848 : vector<2x32xf32>
    %850 = math.tanh %849 : vector<2x32xf32>
    %851 = arith.mulf %846, %850 : vector<2x32xf32>
    %852 = arith.addf %820, %851 : vector<2x32xf32>
    %853 = arith.maximumf %821, %851 : vector<2x32xf32>
    %c18_274 = arith.constant 18 : index
    %c0_275 = arith.constant 0 : index
    %854 = vector.load %arg19[%c18_274, %c0_275] : memref<32x256xf32, #tpu.memory_space<vmem>>, vector<2x128xf32>
    %c12_276 = arith.constant 12 : index
    %c128_277 = arith.constant 128 : index
    %855 = vector.load %arg19[%c12_276, %c128_277] : memref<32x256xf32, #tpu.memory_space<vmem>>, vector<2x128xf32>
    %856 = arith.addf %854, %855 : vector<2x128xf32>
    %cst_278 = arith.constant dense<0.000000e+00> : vector<2x128xf32>
    %857 = tpu.matmul %851, %561, %cst_278 {dimension_numbers = #tpu.dot_dimension_numbers<[1], [0], [0], [1], [0, 0, 1, 1], [], []>} : vector<2x32xf32>, vector<32x128xf32>, vector<2x128xf32> -> vector<2x128xf32>
    %858 = arith.addf %857, %856 : vector<2x128xf32>
    %859 = vector.extract_strided_slice %858 {offsets = [0, 0], sizes = [2, 32], strides = [1, 1]} : vector<2x128xf32> to vector<2x32xf32>
    %860 = arith.negf %859 : vector<2x32xf32>
    %861 = math.exp %860 : vector<2x32xf32>
    %cst_279 = arith.constant 1.000000e+00 : f32
    %862 = vector.broadcast %cst_279 : f32 to vector<2x32xf32>
    %863 = arith.addf %862, %861 : vector<2x32xf32>
    %864 = arith.divf %862, %863 : vector<2x32xf32>
    %865 = vector.extract_strided_slice %858 {offsets = [0, 32], sizes = [2, 32], strides = [1, 1]} : vector<2x128xf32> to vector<2x32xf32>
    %866 = arith.negf %865 : vector<2x32xf32>
    %867 = math.exp %866 : vector<2x32xf32>
    %cst_280 = arith.constant 1.000000e+00 : f32
    %868 = vector.broadcast %cst_280 : f32 to vector<2x32xf32>
    %869 = arith.addf %868, %867 : vector<2x32xf32>
    %870 = arith.divf %868, %869 : vector<2x32xf32>
    %871 = vector.extract_strided_slice %858 {offsets = [0, 64], sizes = [2, 32], strides = [1, 1]} : vector<2x128xf32> to vector<2x32xf32>
    %872 = math.tanh %871 : vector<2x32xf32>
    %873 = vector.extract_strided_slice %858 {offsets = [0, 96], sizes = [2, 32], strides = [1, 1]} : vector<2x128xf32> to vector<2x32xf32>
    %874 = arith.negf %873 : vector<2x32xf32>
    %875 = math.exp %874 : vector<2x32xf32>
    %cst_281 = arith.constant 1.000000e+00 : f32
    %876 = vector.broadcast %cst_281 : f32 to vector<2x32xf32>
    %877 = arith.addf %876, %875 : vector<2x32xf32>
    %878 = arith.divf %876, %877 : vector<2x32xf32>
    %879 = arith.mulf %870, %849 : vector<2x32xf32>
    %880 = arith.mulf %864, %872 : vector<2x32xf32>
    %881 = arith.addf %879, %880 : vector<2x32xf32>
    %882 = math.tanh %881 : vector<2x32xf32>
    %883 = arith.mulf %878, %882 : vector<2x32xf32>
    %884 = arith.addf %852, %883 : vector<2x32xf32>
    %885 = arith.maximumf %853, %883 : vector<2x32xf32>
    %c20_282 = arith.constant 20 : index
    %c0_283 = arith.constant 0 : index
    %886 = vector.load %arg19[%c20_282, %c0_283] : memref<32x256xf32, #tpu.memory_space<vmem>>, vector<2x128xf32>
    %c10_284 = arith.constant 10 : index
    %c128_285 = arith.constant 128 : index
    %887 = vector.load %arg19[%c10_284, %c128_285] : memref<32x256xf32, #tpu.memory_space<vmem>>, vector<2x128xf32>
    %888 = arith.addf %886, %887 : vector<2x128xf32>
    %cst_286 = arith.constant dense<0.000000e+00> : vector<2x128xf32>
    %889 = tpu.matmul %883, %561, %cst_286 {dimension_numbers = #tpu.dot_dimension_numbers<[1], [0], [0], [1], [0, 0, 1, 1], [], []>} : vector<2x32xf32>, vector<32x128xf32>, vector<2x128xf32> -> vector<2x128xf32>
    %890 = arith.addf %889, %888 : vector<2x128xf32>
    %891 = vector.extract_strided_slice %890 {offsets = [0, 0], sizes = [2, 32], strides = [1, 1]} : vector<2x128xf32> to vector<2x32xf32>
    %892 = arith.negf %891 : vector<2x32xf32>
    %893 = math.exp %892 : vector<2x32xf32>
    %cst_287 = arith.constant 1.000000e+00 : f32
    %894 = vector.broadcast %cst_287 : f32 to vector<2x32xf32>
    %895 = arith.addf %894, %893 : vector<2x32xf32>
    %896 = arith.divf %894, %895 : vector<2x32xf32>
    %897 = vector.extract_strided_slice %890 {offsets = [0, 32], sizes = [2, 32], strides = [1, 1]} : vector<2x128xf32> to vector<2x32xf32>
    %898 = arith.negf %897 : vector<2x32xf32>
    %899 = math.exp %898 : vector<2x32xf32>
    %cst_288 = arith.constant 1.000000e+00 : f32
    %900 = vector.broadcast %cst_288 : f32 to vector<2x32xf32>
    %901 = arith.addf %900, %899 : vector<2x32xf32>
    %902 = arith.divf %900, %901 : vector<2x32xf32>
    %903 = vector.extract_strided_slice %890 {offsets = [0, 64], sizes = [2, 32], strides = [1, 1]} : vector<2x128xf32> to vector<2x32xf32>
    %904 = math.tanh %903 : vector<2x32xf32>
    %905 = vector.extract_strided_slice %890 {offsets = [0, 96], sizes = [2, 32], strides = [1, 1]} : vector<2x128xf32> to vector<2x32xf32>
    %906 = arith.negf %905 : vector<2x32xf32>
    %907 = math.exp %906 : vector<2x32xf32>
    %cst_289 = arith.constant 1.000000e+00 : f32
    %908 = vector.broadcast %cst_289 : f32 to vector<2x32xf32>
    %909 = arith.addf %908, %907 : vector<2x32xf32>
    %910 = arith.divf %908, %909 : vector<2x32xf32>
    %911 = arith.mulf %902, %881 : vector<2x32xf32>
    %912 = arith.mulf %896, %904 : vector<2x32xf32>
    %913 = arith.addf %911, %912 : vector<2x32xf32>
    %914 = math.tanh %913 : vector<2x32xf32>
    %915 = arith.mulf %910, %914 : vector<2x32xf32>
    %916 = arith.addf %884, %915 : vector<2x32xf32>
    %917 = arith.maximumf %885, %915 : vector<2x32xf32>
    %c22_290 = arith.constant 22 : index
    %c0_291 = arith.constant 0 : index
    %918 = vector.load %arg19[%c22_290, %c0_291] : memref<32x256xf32, #tpu.memory_space<vmem>>, vector<2x128xf32>
    %c8_292 = arith.constant 8 : index
    %c128_293 = arith.constant 128 : index
    %919 = vector.load %arg19[%c8_292, %c128_293] : memref<32x256xf32, #tpu.memory_space<vmem>>, vector<2x128xf32>
    %920 = arith.addf %918, %919 : vector<2x128xf32>
    %cst_294 = arith.constant dense<0.000000e+00> : vector<2x128xf32>
    %921 = tpu.matmul %915, %561, %cst_294 {dimension_numbers = #tpu.dot_dimension_numbers<[1], [0], [0], [1], [0, 0, 1, 1], [], []>} : vector<2x32xf32>, vector<32x128xf32>, vector<2x128xf32> -> vector<2x128xf32>
    %922 = arith.addf %921, %920 : vector<2x128xf32>
    %923 = vector.extract_strided_slice %922 {offsets = [0, 0], sizes = [2, 32], strides = [1, 1]} : vector<2x128xf32> to vector<2x32xf32>
    %924 = arith.negf %923 : vector<2x32xf32>
    %925 = math.exp %924 : vector<2x32xf32>
    %cst_295 = arith.constant 1.000000e+00 : f32
    %926 = vector.broadcast %cst_295 : f32 to vector<2x32xf32>
    %927 = arith.addf %926, %925 : vector<2x32xf32>
    %928 = arith.divf %926, %927 : vector<2x32xf32>
    %929 = vector.extract_strided_slice %922 {offsets = [0, 32], sizes = [2, 32], strides = [1, 1]} : vector<2x128xf32> to vector<2x32xf32>
    %930 = arith.negf %929 : vector<2x32xf32>
    %931 = math.exp %930 : vector<2x32xf32>
    %cst_296 = arith.constant 1.000000e+00 : f32
    %932 = vector.broadcast %cst_296 : f32 to vector<2x32xf32>
    %933 = arith.addf %932, %931 : vector<2x32xf32>
    %934 = arith.divf %932, %933 : vector<2x32xf32>
    %935 = vector.extract_strided_slice %922 {offsets = [0, 64], sizes = [2, 32], strides = [1, 1]} : vector<2x128xf32> to vector<2x32xf32>
    %936 = math.tanh %935 : vector<2x32xf32>
    %937 = vector.extract_strided_slice %922 {offsets = [0, 96], sizes = [2, 32], strides = [1, 1]} : vector<2x128xf32> to vector<2x32xf32>
    %938 = arith.negf %937 : vector<2x32xf32>
    %939 = math.exp %938 : vector<2x32xf32>
    %cst_297 = arith.constant 1.000000e+00 : f32
    %940 = vector.broadcast %cst_297 : f32 to vector<2x32xf32>
    %941 = arith.addf %940, %939 : vector<2x32xf32>
    %942 = arith.divf %940, %941 : vector<2x32xf32>
    %943 = arith.mulf %934, %913 : vector<2x32xf32>
    %944 = arith.mulf %928, %936 : vector<2x32xf32>
    %945 = arith.addf %943, %944 : vector<2x32xf32>
    %946 = math.tanh %945 : vector<2x32xf32>
    %947 = arith.mulf %942, %946 : vector<2x32xf32>
    %948 = arith.addf %916, %947 : vector<2x32xf32>
    %949 = arith.maximumf %917, %947 : vector<2x32xf32>
    %c24_298 = arith.constant 24 : index
    %c0_299 = arith.constant 0 : index
    %950 = vector.load %arg19[%c24_298, %c0_299] : memref<32x256xf32, #tpu.memory_space<vmem>>, vector<2x128xf32>
    %c6_300 = arith.constant 6 : index
    %c128_301 = arith.constant 128 : index
    %951 = vector.load %arg19[%c6_300, %c128_301] : memref<32x256xf32, #tpu.memory_space<vmem>>, vector<2x128xf32>
    %952 = arith.addf %950, %951 : vector<2x128xf32>
    %cst_302 = arith.constant dense<0.000000e+00> : vector<2x128xf32>
    %953 = tpu.matmul %947, %561, %cst_302 {dimension_numbers = #tpu.dot_dimension_numbers<[1], [0], [0], [1], [0, 0, 1, 1], [], []>} : vector<2x32xf32>, vector<32x128xf32>, vector<2x128xf32> -> vector<2x128xf32>
    %954 = arith.addf %953, %952 : vector<2x128xf32>
    %955 = vector.extract_strided_slice %954 {offsets = [0, 0], sizes = [2, 32], strides = [1, 1]} : vector<2x128xf32> to vector<2x32xf32>
    %956 = arith.negf %955 : vector<2x32xf32>
    %957 = math.exp %956 : vector<2x32xf32>
    %cst_303 = arith.constant 1.000000e+00 : f32
    %958 = vector.broadcast %cst_303 : f32 to vector<2x32xf32>
    %959 = arith.addf %958, %957 : vector<2x32xf32>
    %960 = arith.divf %958, %959 : vector<2x32xf32>
    %961 = vector.extract_strided_slice %954 {offsets = [0, 32], sizes = [2, 32], strides = [1, 1]} : vector<2x128xf32> to vector<2x32xf32>
    %962 = arith.negf %961 : vector<2x32xf32>
    %963 = math.exp %962 : vector<2x32xf32>
    %cst_304 = arith.constant 1.000000e+00 : f32
    %964 = vector.broadcast %cst_304 : f32 to vector<2x32xf32>
    %965 = arith.addf %964, %963 : vector<2x32xf32>
    %966 = arith.divf %964, %965 : vector<2x32xf32>
    %967 = vector.extract_strided_slice %954 {offsets = [0, 64], sizes = [2, 32], strides = [1, 1]} : vector<2x128xf32> to vector<2x32xf32>
    %968 = math.tanh %967 : vector<2x32xf32>
    %969 = vector.extract_strided_slice %954 {offsets = [0, 96], sizes = [2, 32], strides = [1, 1]} : vector<2x128xf32> to vector<2x32xf32>
    %970 = arith.negf %969 : vector<2x32xf32>
    %971 = math.exp %970 : vector<2x32xf32>
    %cst_305 = arith.constant 1.000000e+00 : f32
    %972 = vector.broadcast %cst_305 : f32 to vector<2x32xf32>
    %973 = arith.addf %972, %971 : vector<2x32xf32>
    %974 = arith.divf %972, %973 : vector<2x32xf32>
    %975 = arith.mulf %966, %945 : vector<2x32xf32>
    %976 = arith.mulf %960, %968 : vector<2x32xf32>
    %977 = arith.addf %975, %976 : vector<2x32xf32>
    %978 = math.tanh %977 : vector<2x32xf32>
    %979 = arith.mulf %974, %978 : vector<2x32xf32>
    %980 = arith.addf %948, %979 : vector<2x32xf32>
    %981 = arith.maximumf %949, %979 : vector<2x32xf32>
    %c26_306 = arith.constant 26 : index
    %c0_307 = arith.constant 0 : index
    %982 = vector.load %arg19[%c26_306, %c0_307] : memref<32x256xf32, #tpu.memory_space<vmem>>, vector<2x128xf32>
    %c4_308 = arith.constant 4 : index
    %c128_309 = arith.constant 128 : index
    %983 = vector.load %arg19[%c4_308, %c128_309] : memref<32x256xf32, #tpu.memory_space<vmem>>, vector<2x128xf32>
    %984 = arith.addf %982, %983 : vector<2x128xf32>
    %cst_310 = arith.constant dense<0.000000e+00> : vector<2x128xf32>
    %985 = tpu.matmul %979, %561, %cst_310 {dimension_numbers = #tpu.dot_dimension_numbers<[1], [0], [0], [1], [0, 0, 1, 1], [], []>} : vector<2x32xf32>, vector<32x128xf32>, vector<2x128xf32> -> vector<2x128xf32>
    %986 = arith.addf %985, %984 : vector<2x128xf32>
    %987 = vector.extract_strided_slice %986 {offsets = [0, 0], sizes = [2, 32], strides = [1, 1]} : vector<2x128xf32> to vector<2x32xf32>
    %988 = arith.negf %987 : vector<2x32xf32>
    %989 = math.exp %988 : vector<2x32xf32>
    %cst_311 = arith.constant 1.000000e+00 : f32
    %990 = vector.broadcast %cst_311 : f32 to vector<2x32xf32>
    %991 = arith.addf %990, %989 : vector<2x32xf32>
    %992 = arith.divf %990, %991 : vector<2x32xf32>
    %993 = vector.extract_strided_slice %986 {offsets = [0, 32], sizes = [2, 32], strides = [1, 1]} : vector<2x128xf32> to vector<2x32xf32>
    %994 = arith.negf %993 : vector<2x32xf32>
    %995 = math.exp %994 : vector<2x32xf32>
    %cst_312 = arith.constant 1.000000e+00 : f32
    %996 = vector.broadcast %cst_312 : f32 to vector<2x32xf32>
    %997 = arith.addf %996, %995 : vector<2x32xf32>
    %998 = arith.divf %996, %997 : vector<2x32xf32>
    %999 = vector.extract_strided_slice %986 {offsets = [0, 64], sizes = [2, 32], strides = [1, 1]} : vector<2x128xf32> to vector<2x32xf32>
    %1000 = math.tanh %999 : vector<2x32xf32>
    %1001 = vector.extract_strided_slice %986 {offsets = [0, 96], sizes = [2, 32], strides = [1, 1]} : vector<2x128xf32> to vector<2x32xf32>
    %1002 = arith.negf %1001 : vector<2x32xf32>
    %1003 = math.exp %1002 : vector<2x32xf32>
    %cst_313 = arith.constant 1.000000e+00 : f32
    %1004 = vector.broadcast %cst_313 : f32 to vector<2x32xf32>
    %1005 = arith.addf %1004, %1003 : vector<2x32xf32>
    %1006 = arith.divf %1004, %1005 : vector<2x32xf32>
    %1007 = arith.mulf %998, %977 : vector<2x32xf32>
    %1008 = arith.mulf %992, %1000 : vector<2x32xf32>
    %1009 = arith.addf %1007, %1008 : vector<2x32xf32>
    %1010 = math.tanh %1009 : vector<2x32xf32>
    %1011 = arith.mulf %1006, %1010 : vector<2x32xf32>
    %1012 = arith.addf %980, %1011 : vector<2x32xf32>
    %1013 = arith.maximumf %981, %1011 : vector<2x32xf32>
    %c28_314 = arith.constant 28 : index
    %c0_315 = arith.constant 0 : index
    %1014 = vector.load %arg19[%c28_314, %c0_315] : memref<32x256xf32, #tpu.memory_space<vmem>>, vector<2x128xf32>
    %c2_316 = arith.constant 2 : index
    %c128_317 = arith.constant 128 : index
    %1015 = vector.load %arg19[%c2_316, %c128_317] : memref<32x256xf32, #tpu.memory_space<vmem>>, vector<2x128xf32>
    %1016 = arith.addf %1014, %1015 : vector<2x128xf32>
    %cst_318 = arith.constant dense<0.000000e+00> : vector<2x128xf32>
    %1017 = tpu.matmul %1011, %561, %cst_318 {dimension_numbers = #tpu.dot_dimension_numbers<[1], [0], [0], [1], [0, 0, 1, 1], [], []>} : vector<2x32xf32>, vector<32x128xf32>, vector<2x128xf32> -> vector<2x128xf32>
    %1018 = arith.addf %1017, %1016 : vector<2x128xf32>
    %1019 = vector.extract_strided_slice %1018 {offsets = [0, 0], sizes = [2, 32], strides = [1, 1]} : vector<2x128xf32> to vector<2x32xf32>
    %1020 = arith.negf %1019 : vector<2x32xf32>
    %1021 = math.exp %1020 : vector<2x32xf32>
    %cst_319 = arith.constant 1.000000e+00 : f32
    %1022 = vector.broadcast %cst_319 : f32 to vector<2x32xf32>
    %1023 = arith.addf %1022, %1021 : vector<2x32xf32>
    %1024 = arith.divf %1022, %1023 : vector<2x32xf32>
    %1025 = vector.extract_strided_slice %1018 {offsets = [0, 32], sizes = [2, 32], strides = [1, 1]} : vector<2x128xf32> to vector<2x32xf32>
    %1026 = arith.negf %1025 : vector<2x32xf32>
    %1027 = math.exp %1026 : vector<2x32xf32>
    %cst_320 = arith.constant 1.000000e+00 : f32
    %1028 = vector.broadcast %cst_320 : f32 to vector<2x32xf32>
    %1029 = arith.addf %1028, %1027 : vector<2x32xf32>
    %1030 = arith.divf %1028, %1029 : vector<2x32xf32>
    %1031 = vector.extract_strided_slice %1018 {offsets = [0, 64], sizes = [2, 32], strides = [1, 1]} : vector<2x128xf32> to vector<2x32xf32>
    %1032 = math.tanh %1031 : vector<2x32xf32>
    %1033 = vector.extract_strided_slice %1018 {offsets = [0, 96], sizes = [2, 32], strides = [1, 1]} : vector<2x128xf32> to vector<2x32xf32>
    %1034 = arith.negf %1033 : vector<2x32xf32>
    %1035 = math.exp %1034 : vector<2x32xf32>
    %cst_321 = arith.constant 1.000000e+00 : f32
    %1036 = vector.broadcast %cst_321 : f32 to vector<2x32xf32>
    %1037 = arith.addf %1036, %1035 : vector<2x32xf32>
    %1038 = arith.divf %1036, %1037 : vector<2x32xf32>
    %1039 = arith.mulf %1030, %1009 : vector<2x32xf32>
    %1040 = arith.mulf %1024, %1032 : vector<2x32xf32>
    %1041 = arith.addf %1039, %1040 : vector<2x32xf32>
    %1042 = math.tanh %1041 : vector<2x32xf32>
    %1043 = arith.mulf %1038, %1042 : vector<2x32xf32>
    %1044 = arith.addf %1012, %1043 : vector<2x32xf32>
    %1045 = arith.maximumf %1013, %1043 : vector<2x32xf32>
    %c30_322 = arith.constant 30 : index
    %c0_323 = arith.constant 0 : index
    %1046 = vector.load %arg19[%c30_322, %c0_323] : memref<32x256xf32, #tpu.memory_space<vmem>>, vector<2x128xf32>
    %c0_324 = arith.constant 0 : index
    %c128_325 = arith.constant 128 : index
    %1047 = vector.load %arg19[%c0_324, %c128_325] : memref<32x256xf32, #tpu.memory_space<vmem>>, vector<2x128xf32>
    %1048 = arith.addf %1046, %1047 : vector<2x128xf32>
    %cst_326 = arith.constant dense<0.000000e+00> : vector<2x128xf32>
    %1049 = tpu.matmul %1043, %561, %cst_326 {dimension_numbers = #tpu.dot_dimension_numbers<[1], [0], [0], [1], [0, 0, 1, 1], [], []>} : vector<2x32xf32>, vector<32x128xf32>, vector<2x128xf32> -> vector<2x128xf32>
    %1050 = arith.addf %1049, %1048 : vector<2x128xf32>
    %1051 = vector.extract_strided_slice %1050 {offsets = [0, 0], sizes = [2, 32], strides = [1, 1]} : vector<2x128xf32> to vector<2x32xf32>
    %1052 = arith.negf %1051 : vector<2x32xf32>
    %1053 = math.exp %1052 : vector<2x32xf32>
    %cst_327 = arith.constant 1.000000e+00 : f32
    %1054 = vector.broadcast %cst_327 : f32 to vector<2x32xf32>
    %1055 = arith.addf %1054, %1053 : vector<2x32xf32>
    %1056 = arith.divf %1054, %1055 : vector<2x32xf32>
    %1057 = vector.extract_strided_slice %1050 {offsets = [0, 32], sizes = [2, 32], strides = [1, 1]} : vector<2x128xf32> to vector<2x32xf32>
    %1058 = arith.negf %1057 : vector<2x32xf32>
    %1059 = math.exp %1058 : vector<2x32xf32>
    %cst_328 = arith.constant 1.000000e+00 : f32
    %1060 = vector.broadcast %cst_328 : f32 to vector<2x32xf32>
    %1061 = arith.addf %1060, %1059 : vector<2x32xf32>
    %1062 = arith.divf %1060, %1061 : vector<2x32xf32>
    %1063 = vector.extract_strided_slice %1050 {offsets = [0, 64], sizes = [2, 32], strides = [1, 1]} : vector<2x128xf32> to vector<2x32xf32>
    %1064 = math.tanh %1063 : vector<2x32xf32>
    %1065 = vector.extract_strided_slice %1050 {offsets = [0, 96], sizes = [2, 32], strides = [1, 1]} : vector<2x128xf32> to vector<2x32xf32>
    %1066 = arith.negf %1065 : vector<2x32xf32>
    %1067 = math.exp %1066 : vector<2x32xf32>
    %cst_329 = arith.constant 1.000000e+00 : f32
    %1068 = vector.broadcast %cst_329 : f32 to vector<2x32xf32>
    %1069 = arith.addf %1068, %1067 : vector<2x32xf32>
    %1070 = arith.divf %1068, %1069 : vector<2x32xf32>
    %1071 = arith.mulf %1062, %1041 : vector<2x32xf32>
    %1072 = arith.mulf %1056, %1064 : vector<2x32xf32>
    %1073 = arith.addf %1071, %1072 : vector<2x32xf32>
    %1074 = math.tanh %1073 : vector<2x32xf32>
    %1075 = arith.mulf %1070, %1074 : vector<2x32xf32>
    %1076 = arith.addf %1044, %1075 : vector<2x32xf32>
    %1077 = arith.maximumf %1045, %1075 : vector<2x32xf32>
    %cst_330 = arith.constant 6.250000e-02 : f32
    %1078 = vector.broadcast %cst_330 : f32 to vector<2x32xf32>
    %1079 = arith.mulf %1076, %1078 : vector<2x32xf32>
    %c0_331 = arith.constant 0 : index
    %c0_332 = arith.constant 0 : index
    %1080 = vector.load %arg8[%c0_331, %c0_332] : memref<32x4xf32, #tpu.memory_space<vmem>>, vector<32x4xf32>
    %cst_333 = arith.constant dense<0.000000e+00> : vector<2x4xf32>
    %1081 = tpu.matmul %1079, %1080, %cst_333 {dimension_numbers = #tpu.dot_dimension_numbers<[1], [0], [0], [1], [0, 0, 1, 1], [], []>} : vector<2x32xf32>, vector<32x4xf32>, vector<2x4xf32> -> vector<2x4xf32>
    %c0_334 = arith.constant 0 : index
    %c0_335 = arith.constant 0 : index
    %1082 = vector.load %arg9[%c0_334, %c0_335] : memref<1x4xf32, #tpu.memory_space<vmem>>, vector<1x4xf32>
    %1083 = vector.broadcast %1082 : vector<1x4xf32> to vector<2x4xf32>
    %1084 = arith.addf %1081, %1083 : vector<2x4xf32>
    %cst_336 = arith.constant 0.000000e+00 : f32
    %1085 = vector.broadcast %cst_336 : f32 to vector<2x4xf32>
    %1086 = arith.maximumf %1084, %1085 : vector<2x4xf32>
    %c0_337 = arith.constant 0 : index
    %c0_338 = arith.constant 0 : index
    %1087 = vector.load %arg10[%c0_337, %c0_338] : memref<4x32xf32, #tpu.memory_space<vmem>>, vector<4x32xf32>
    %cst_339 = arith.constant dense<0.000000e+00> : vector<2x32xf32>
    %1088 = tpu.matmul %1086, %1087, %cst_339 {dimension_numbers = #tpu.dot_dimension_numbers<[1], [0], [0], [1], [0, 0, 1, 1], [], []>} : vector<2x4xf32>, vector<4x32xf32>, vector<2x32xf32> -> vector<2x32xf32>
    %c0_340 = arith.constant 0 : index
    %c0_341 = arith.constant 0 : index
    %1089 = vector.load %arg11[%c0_340, %c0_341] : memref<1x32xf32, #tpu.memory_space<vmem>>, vector<1x32xf32>
    %1090 = vector.broadcast %1089 : vector<1x32xf32> to vector<2x32xf32>
    %1091 = arith.addf %1088, %1090 : vector<2x32xf32>
    %1092 = arith.negf %1091 : vector<2x32xf32>
    %1093 = math.exp %1092 : vector<2x32xf32>
    %cst_342 = arith.constant 1.000000e+00 : f32
    %1094 = vector.broadcast %cst_342 : f32 to vector<2x32xf32>
    %1095 = arith.addf %1094, %1093 : vector<2x32xf32>
    %1096 = arith.divf %1094, %1095 : vector<2x32xf32>
    %1097 = arith.mulf %1077, %1096 : vector<2x32xf32>
    %c0_343 = arith.constant 0 : index
    %c0_344 = arith.constant 0 : index
    %1098 = vector.load %arg12[%c0_343, %c0_344] : memref<32x8xf32, #tpu.memory_space<vmem>>, vector<32x8xf32>
    %cst_345 = arith.constant dense<0.000000e+00> : vector<2x8xf32>
    %1099 = tpu.matmul %1097, %1098, %cst_345 {dimension_numbers = #tpu.dot_dimension_numbers<[1], [0], [0], [1], [0, 0, 1, 1], [], []>} : vector<2x32xf32>, vector<32x8xf32>, vector<2x8xf32> -> vector<2x8xf32>
    %c0_346 = arith.constant 0 : index
    %c0_347 = arith.constant 0 : index
    %1100 = vector.load %arg13[%c0_346, %c0_347] : memref<1x8xf32, #tpu.memory_space<vmem>>, vector<1x8xf32>
    %1101 = vector.broadcast %1100 : vector<1x8xf32> to vector<2x8xf32>
    %1102 = arith.addf %1099, %1101 : vector<2x8xf32>
    %cst_348 = arith.constant 0.000000e+00 : f32
    %1103 = vector.broadcast %cst_348 : f32 to vector<2x8xf32>
    %1104 = arith.maximumf %1102, %1103 : vector<2x8xf32>
    %1105 = vector.broadcast %cst_348 : f32 to vector<2x8xf32>
    %1106 = arith.subf %1102, %1105 : vector<2x8xf32>
    %1107 = arith.cmpf one, %1106, %1106 : vector<2x8xf32>
    %1108 = vector.broadcast %cst_348 : f32 to vector<2x8xf32>
    %1109 = arith.addf %1102, %1108 : vector<2x8xf32>
    %1110 = math.absf %1106 : vector<2x8xf32>
    %cst_349 = arith.constant 0.000000e+00 : f32
    %1111 = vector.broadcast %cst_349 : f32 to vector<2x8xf32>
    %1112 = arith.subf %1111, %1110 : vector<2x8xf32>
    %1113 = math.exp %1112 : vector<2x8xf32>
    %1114 = math.log1p %1113 : vector<2x8xf32>
    %1115 = arith.addf %1104, %1114 : vector<2x8xf32>
    %1116 = arith.select %1107, %1109, %1115 : vector<2x8xi1>, vector<2x8xf32>
    %1117 = math.tanh %1116 : vector<2x8xf32>
    %1118 = arith.mulf %1102, %1117 : vector<2x8xf32>
    %c0_350 = arith.constant 0 : index
    %c0_351 = arith.constant 0 : index
    %1119 = vector.load %arg14[%c0_350, %c0_351] : memref<8x2xf32, #tpu.memory_space<vmem>>, vector<8x2xf32>
    %cst_352 = arith.constant dense<0.000000e+00> : vector<2x2xf32>
    %1120 = tpu.matmul %1118, %1119, %cst_352 {dimension_numbers = #tpu.dot_dimension_numbers<[1], [0], [0], [1], [0, 0, 1, 1], [], []>} : vector<2x8xf32>, vector<8x2xf32>, vector<2x2xf32> -> vector<2x2xf32>
    %c0_353 = arith.constant 0 : index
    %c0_354 = arith.constant 0 : index
    %1121 = vector.load %arg15[%c0_353, %c0_354] : memref<1x2xf32, #tpu.memory_space<vmem>>, vector<1x2xf32>
    %1122 = vector.broadcast %1121 : vector<1x2xf32> to vector<2x2xf32>
    %1123 = arith.addf %1120, %1122 : vector<2x2xf32>
    %c0_355 = arith.constant 0 : index
    %c0_356 = arith.constant 0 : index
    %1124 = vector.load %arg16[%c0_355, %c0_356] : memref<2x2xf32, #tpu.memory_space<vmem>>, vector<2x2xf32>
    tpu.vector_store %arg16[%c0_355, %c0_356], %1123 {strides = array<i32>} : memref<2x2xf32, #tpu.memory_space<vmem>>, vector<2x2xf32>,
    return
  }
  func.func @transform_0(%arg0: i32) -> (i32, i32) {
    %c0_i32 = arith.constant 0 : i32
    %c0_i32_0 = arith.constant 0 : i32
    %c0_i32_1 = arith.constant 0 : i32
    return %c0_i32, %c0_i32_0 : i32, i32
  }
  func.func @transform_1(%arg0: i32) -> (i32, i32) {
    %c0_i32 = arith.constant 0 : i32
    %c0_i32_0 = arith.constant 0 : i32
    %c0_i32_1 = arith.constant 0 : i32
    return %c0_i32, %c0_i32_0 : i32, i32
  }
  func.func @transform_2(%arg0: i32) -> (i32, i32) {
    %c0_i32 = arith.constant 0 : i32
    %c0_i32_0 = arith.constant 0 : i32
    %c0_i32_1 = arith.constant 0 : i32
    return %c0_i32, %c0_i32_0 : i32, i32
  }
  func.func @transform_3(%arg0: i32) -> (i32, i32) {
    %c0_i32 = arith.constant 0 : i32
    %c0_i32_0 = arith.constant 0 : i32
    %c0_i32_1 = arith.constant 0 : i32
    return %c0_i32, %c0_i32_0 : i32, i32
  }
  func.func @transform_4(%arg0: i32) -> (i32, i32) {
    %c0_i32 = arith.constant 0 : i32
    %c0_i32_0 = arith.constant 0 : i32
    %c0_i32_1 = arith.constant 0 : i32
    return %c0_i32, %c0_i32_0 : i32, i32
  }
  func.func @transform_5(%arg0: i32) -> (i32, i32) {
    %c0_i32 = arith.constant 0 : i32
    %c0_i32_0 = arith.constant 0 : i32
    %c0_i32_1 = arith.constant 0 : i32
    return %c0_i32, %c0_i32_0 : i32, i32
  }
  func.func @transform_6(%arg0: i32) -> (i32, i32) {
    %c0_i32 = arith.constant 0 : i32
    %c0_i32_0 = arith.constant 0 : i32
    %c0_i32_1 = arith.constant 0 : i32
    return %c0_i32, %c0_i32_0 : i32, i32
  }
  func.func @transform_7(%arg0: i32) -> (i32, i32) {
    %c0_i32 = arith.constant 0 : i32
    %c0_i32_0 = arith.constant 0 : i32
    %c0_i32_1 = arith.constant 0 : i32
    return %c0_i32, %c0_i32_0 : i32, i32
  }
  func.func @transform_8(%arg0: i32) -> (i32, i32) {
    %c0_i32 = arith.constant 0 : i32
    %c0_i32_0 = arith.constant 0 : i32
    %c0_i32_1 = arith.constant 0 : i32
    return %c0_i32, %c0_i32_0 : i32, i32
  }
  func.func @transform_9(%arg0: i32) -> (i32, i32) {
    %c0_i32 = arith.constant 0 : i32
    %c0_i32_0 = arith.constant 0 : i32
    %c0_i32_1 = arith.constant 0 : i32
    return %c0_i32, %c0_i32_0 : i32, i32
  }
  func.func @transform_10(%arg0: i32) -> (i32, i32) {
    %c0_i32 = arith.constant 0 : i32
    %c0_i32_0 = arith.constant 0 : i32
    %c0_i32_1 = arith.constant 0 : i32
    return %c0_i32, %c0_i32_0 : i32, i32
  }
  func.func @transform_11(%arg0: i32) -> (i32, i32) {
    %c0_i32 = arith.constant 0 : i32
    %c0_i32_0 = arith.constant 0 : i32
    %c0_i32_1 = arith.constant 0 : i32
    return %c0_i32, %c0_i32_0 : i32, i32
  }
  func.func @transform_12(%arg0: i32) -> (i32, i32) {
    %c0_i32 = arith.constant 0 : i32
    %c0_i32_0 = arith.constant 0 : i32
    %c0_i32_1 = arith.constant 0 : i32
    return %c0_i32, %c0_i32_0 : i32, i32
  }
  func.func @transform_13(%arg0: i32) -> (i32, i32) {
    %c0_i32 = arith.constant 0 : i32
    %c0_i32_0 = arith.constant 0 : i32
    %c0_i32_1 = arith.constant 0 : i32
    return %c0_i32, %c0_i32_0 : i32, i32
  }
  func.func @transform_14(%arg0: i32) -> (i32, i32) {
    %c0_i32 = arith.constant 0 : i32
    %c0_i32_0 = arith.constant 0 : i32
    %c0_i32_1 = arith.constant 0 : i32
    return %c0_i32, %c0_i32_0 : i32, i32
  }
  func.func @transform_15(%arg0: i32) -> (i32, i32) {
    %c0_i32 = arith.constant 0 : i32
    %c0_i32_0 = arith.constant 0 : i32
    %c0_i32_1 = arith.constant 0 : i32
    return %c0_i32, %c0_i32_0 : i32, i32
  }
}

</mosaic_0001>

<bundles_post_ra>
// kernel: rr_lstm_forward.1
= control target key start
LH: loop header
LB: loop body
LE: loop exit
PB: predicated region body
PF: predicated region fallthrough
CT: control target
= control target key end

     0   :  { %20 = vsyncpa [#allocation6], 0  ;;  %s3824_s0 = inlined_call_operand.vmem [shape: f32[32,1], index: 0, kind: input, shape index: {}]   ;;  %s3825_s1 = inlined_call_operand.vmem [shape: f32[1,256], index: 1, kind: input, shape index: {}]   ;;  %s3826_s2 = inlined_call_operand.vmem [shape: f32[1,256], index: 2, kind: input, shape index: {}]   ;;  %s3827_s3 = inlined_call_operand.vmem [shape: f32[32,128], index: 3, kind: input, shape index: {}]   ;;  %s3828_s4 = inlined_call_operand.vmem [shape: f32[32,256], index: 4, kind: input, shape index: {}]   ;;  %s3829_s5 = inlined_call_operand.vmem [shape: f32[1,256], index: 5, kind: input, shape index: {}]   ;;  %s3830_s6 = inlined_call_operand.vmem [shape: f32[32,128], index: 6, kind: input, shape index: {}]   ;;  %s3831_s7 = inlined_call_operand.vmem [shape: f32[32,4], index: 7, kind: input, shape index: {}]   ;;  %s3832_s8 = inlined_call_operand.vmem [shape: f32[1,4], index: 8, kind: input, shape index: {}]   ;;  %s3833_s9 = inlined_call_operand.vmem [shape: f32[4,32], index: 9, kind: input, shape index: {}]   ;;  %s3834_s10 = inlined_call_operand.vmem [shape: f32[1,32], index: 10, kind: input, shape index: {}]   ;;  %s3835_s11 = inlined_call_operand.vmem [shape: f32[32,8], index: 11, kind: input, shape index: {}]   ;;  %s3836_s12 = inlined_call_operand.hbm [shape: f32[1,8], index: 12, kind: input, shape index: {}]   ;;  %s3837_s13 = inlined_call_operand.vmem [shape: f32[8,2], index: 13, kind: input, shape index: {}]   ;;  %s3838_s14 = inlined_call_operand.hbm [shape: f32[1,2], index: 14, kind: input, shape index: {}]   ;;  %s3839_s15 = inlined_call_operand.hbm [shape: f32[2,2], index: 15, kind: output, shape index: {}]  }
   0x1   :  { %21 = vsyncpa [#allocation9], 0 }
   0x2   :  { %22 = vsyncpa [#allocation7], 0  ;;  %s52_s20 = sshll.u32 %s3836_s12, 4  ;;  %s3242_s21 = smov [#allocation5]   ;;  %s53_s20 = int_to_ptr.hbm [resolvable:$true] %s52_s20 }
   0x3   :  { %s54_s22 = sshll.u32 %s3242_s21, 4  ;;  %s65_s25 = sshll.u32 %s3838_s14, 4  ;;  %s55_s22 = int_to_ptr.vmem [resolvable:$true] %s54_s22  ;;  %s66_s25 = int_to_ptr.hbm [resolvable:$true] %s65_s25 }
   0x4   :  { %57 = dma.hbm_to_vmem [thread:$0]  %s53_s20, 16, %s55_s22, [#allocation6]  }
   0x5   :  { %s3243_s26 = smov [#allocation8]  }
   0x6   :  { %s67_s27 = sshll.u32 %s3243_s26, 4  ;;  %s68_s27 = int_to_ptr.vmem [resolvable:$true] %s67_s27 }
   0x7   :  { %70 = dma.hbm_to_vmem [thread:$0]  %s66_s25, 16, %s68_s27, [#allocation9]  }
   0x8   :  { %3236 = dma.done.wait [#allocation6], 16  }
   0x9   :  { %3237 = vsyncadd [#allocation6], 4294967280 }
   0xa   :  { %3238 = dma.done.wait [#allocation9], 16  }
   0xb   :  { %3239 = vsyncadd [#allocation9], 4294967280  ;;  %v83_v0 = vld [vmem:[%s3825_s1] sm:$0x3]  ;;  %vm106_vm0 = vcmask 1040384   ;;  %vm93_vm1 = vcmask 7168  }
   0xc   :  { %v91_v1 = vperm.slane %v83_v0, 0  ;;  %v92_v2 = vperm.slane %v83_v0, 1  ;;  %v79_v3 = vld [vmem:[%s3824_s0] sm:$0xff]  ;;  %v3344_v4 = vld [vmem:[%s3827_s3 + $0x18] sm:$0xff]  ;;  %v3350_v5 = vld [vmem:[%s3827_s3 + $0x10] sm:$0xff]  ;;  %v3244_v9 = vmov 0.0  }
   0xd   :  { %203 = vmatpush.msra.mxu2 %v3344_v4  ;;  %279 = vmatpush.msra.mxu3 %v3344_v4  ;;  %v3358_v6 = vld [vmem:[%s3827_s3 + $0x8] sm:$0xff]  ;;  %v3365_v7 = vld [vmem:[%s3827_s3] sm:$0xff]  ;;  %v81_v10 = vld [vmem:[%s3824_s0 + $0x10] sm:$0xff]  ;;  %vm252_vm6 = vcmask 123904   ;;  %vm187_vm7 = vcmask 261120   ;;  %vm254_vm8 = vcmask 255104  }
   0xe   :  { %2801 = vmatpush.msk.msra.mxu0 %vm106_vm0, %v91_v1  ;;  %2806 = vmatpush.msk.msra.mxu1 %vm106_vm0, %v92_v2  ;;  %v80_v8 = vld [vmem:[%s3824_s0 + $0x8] sm:$0xff]  ;;  %v82_v11 = vld [vmem:[%s3824_s0 + $0x18] sm:$0xff]  ;;  %v84_v12 = vld [vmem:[%s3826_s2] sm:$0x3]  ;;  %s3245_s0 = smov 64   ;;  %s3246_s2 = smov 32  }
   0xf   :  { %2802 = vmatmul.msk.f32.vlgmr.msra.gmra.mxu0 %vm93_vm1, %v79_v3  ;;  %2807 = vmatmul.msk.f32.vlgmr.msra.gmra.mxu1 %vm93_vm1, %v79_v3  ;;  %v87_v13 = vperm.slane %v84_v12, 1  ;;  %v86_v14 = vperm.slane %v84_v12, 0  ;;  %s2790_s16 = sshll.u32 %s3839_s15, 4  ;;  %s2791_s16 = int_to_ptr.hbm [resolvable:$true] %s2790_s16 }
  0x10   :  { %204 = vmatpush.msra.mxu2 %v3350_v5  ;;  %280 = vmatpush.msra.mxu3 %v3350_v5 }
  0x11   :  { %791 = vmatpush.msrb.mxu0 %v3344_v4  ;;  %865 = vmatpush.msrb.mxu1 %v3344_v4 }
  0x12   :  { %205 = vmatpush.msra.mxu2 %v3358_v6  ;;  %281 = vmatpush.msra.mxu3 %v3358_v6 }
  0x13   :  { %792 = vmatpush.msrb.mxu0 %v3350_v5  ;;  %866 = vmatpush.msrb.mxu1 %v3350_v5 }
  0x14   :  { %206 = vmatpush.msra.mxu2 %v3365_v7  ;;  %282 = vmatpush.msra.mxu3 %v3365_v7 }
  0x15   :  { %207 = vmatmul.f32.vlgmr.msra.gmra.mxu2 %v3244_v9  ;;  %793 = vmatpush.msrb.mxu0 %v3358_v6 }
  0x16   :  { %427 = vmatpush.msrb.mxu3 %v3344_v4  ;;  %353 = vmatpush.msrb.mxu2 %v3344_v4 }
  0x17   :  { %2803 = vmatmul.msk.f32.gmra.mxu0 %vm93_vm1, %v80_v8  ;;  %2808 = vmatmul.msk.f32.gmra.mxu1 %vm93_vm1, %v80_v8 }
  0x18   :  { %354 = vmatpush.msrb.mxu2 %v3350_v5  ;;  %428 = vmatpush.msrb.mxu3 %v3350_v5 }
  0x19   :  { %794 = vmatpush.msrb.mxu0 %v3365_v7  ;;  %867 = vmatpush.msrb.mxu1 %v3358_v6 }
  0x1a   :  { %355 = vmatpush.msrb.mxu2 %v3358_v6  ;;  %429 = vmatpush.msrb.mxu3 %v3358_v6 }
  0x1b   :  { %868 = vmatpush.msrb.mxu1 %v3365_v7  ;;  %1084 = vmatpush.msra.mxu0 %v3344_v4 }
  0x1c   :  { %356 = vmatpush.msrb.mxu2 %v3365_v7  ;;  %430 = vmatpush.msrb.mxu3 %v3365_v7 }
  0x1d   :  { %1085 = vmatpush.msra.mxu0 %v3350_v5  ;;  %1158 = vmatpush.msra.mxu1 %v3344_v4 }
  0x1e   :  { %498 = vmatpush.msra.mxu2 %v3344_v4 }
  0x1f   :  { %2804 = vmatmul.msk.f32.gmra.mxu0 %vm93_vm1, %v81_v10  ;;  %2809 = vmatmul.msk.f32.gmra.mxu1 %vm93_vm1, %v81_v10 }
  0x20   :  { %499 = vmatpush.msra.mxu2 %v3350_v5  ;;  %1086 = vmatpush.msra.mxu0 %v3358_v6 }
  0x21   :  { %1159 = vmatpush.msra.mxu1 %v3350_v5 }
  0x22   :  { %500 = vmatpush.msra.mxu2 %v3358_v6  ;;  %1087 = vmatpush.msra.mxu0 %v3365_v7 }
  0x23   :  { %1160 = vmatpush.msra.mxu1 %v3358_v6 }
  0x24   :  { %501 = vmatpush.msra.mxu2 %v3365_v7 }
  0x25   :  { %1161 = vmatpush.msra.mxu1 %v3365_v7 }
  0x27   :  { %2805 = vmatmul.msk.f32.gmra.mxu0 %vm93_vm1, %v82_v11  ;;  %2810 = vmatmul.msk.f32.gmra.mxu1 %vm93_vm1, %v82_v11 }
  0x8c   :  { %v128_v15 = vpop.f32.mrf.mxu0  ;;  %v157_v16 = vpop.f32.mrf.mxu1 }
  0x8d   :  { %v129_v17 = vadd.f32 %v128_v15, %v86_v14  ;;  %v158_v18 = vadd.f32 %v157_v16, %v87_v13 }
  0x8f   :  { %169 = vst [vmem:[#allocation2 + $0x30] sm:$0xff] %v129_v17 }
  0x90   :  { %170 = vst [vmem:[#allocation2] sm:$0xff] %v158_v18 }
  0x94   :  { %v131_v19 = vpop.f32.mrf.mxu0  ;;  %v160_v20 = vpop.f32.mrf.mxu1 }
  0x95   :  { %v132_v21 = vadd.f32 %v131_v19, %v86_v14  ;;  %v161_v22 = vadd.f32 %v160_v20, %v87_v13 }
  0x96   :  { %v181_v31 = vld [vmem:[#allocation2 + $0x30] sm:$0x3]  ;;  %v256_v62 = vld [vmem:[#allocation2 + $0x30] sm:$0xc] }
  0x97   :  { %171 = vst [vmem:[#allocation2 + $0x18] sm:$0xff] %v132_v21 }
  0x98   :  { %172 = vst [vmem:[#allocation2 + $0x10] sm:$0xff] %v161_v22  ;;  %v208_v34 = vpop.f32.mrf.mxu2 }
  0x9c   :  { %v134_v23 = vpop.f32.mrf.mxu0  ;;  %v163_v24 = vpop.f32.mrf.mxu1 }
  0x9d   :  { %v135_v25 = vadd.f32 %v134_v23, %v86_v14  ;;  %v164_v26 = vadd.f32 %v163_v24, %v87_v13 }
  0x9f   :  { %173 = vst [vmem:[#allocation2 + $0x8] sm:$0xff] %v135_v25 }
  0xa0   :  { %174 = vst [vmem:[#allocation2 + $0x20] sm:$0xff] %v164_v26 }
  0xa4   :  { %v137_v27 = vpop.f32.mrf.mxu0  ;;  %v166_v28 = vpop.f32.mrf.mxu1 }
  0xa5   :  { %v138_v29 = vadd.f32 %v137_v27, %v86_v14  ;;  %v167_v30 = vadd.f32 %v166_v28, %v87_v13 }
  0xa7   :  { %175 = vst [vmem:[#allocation2 + $0x28] sm:$0xff] %v138_v29 }
  0xa8   :  { %176 = vst [vmem:[#allocation2 + $0x38] sm:$0xff] %v167_v30 }
  0xaf   :  { %v182_v32 = vld [vmem:[#allocation2 + $0x38] sm:$0xc0]  ;;  %v257_v60 = vld [vmem:[#allocation2 + $0x38] sm:$0x30] }
  0xb0   :  { %v184_v33 = vrot.slane %v182_v32, 6  ;;  %v259_v61 = vrot.slane %v257_v60, 2 }
  0xb2   :  { %v186_v35 = vadd.f32 %v184_v33, %v181_v31  ;;  %v261_v63 = vadd.f32 %v259_v61, %v256_v62  ;;  %v331_v31 = vld [vmem:[#allocation2 + $0x38] sm:$0xc]  ;;  %v330_v33 = vld [vmem:[#allocation2 + $0x30] sm:$0x30]  ;;  %v405_v61 = vld [vmem:[#allocation2 + $0x38] sm:$0x3] }
  0xb3   :  { %v333_v32 = vrot.slane %v331_v31, 6  ;;  %v407_v62 = vrot.slane %v405_v61, 2  ;;  %v550_v61 = vld [vmem:[#allocation2 + $0x20] sm:$0x30] }
  0xb4   :  { %v209_v36 = vadd.f32 %v208_v34, %v186_v35  ;;  %v263_v0 = vrot.slane %v261_v63, 2  ;;  %v404_v63 = vld [vmem:[#allocation2 + $0x30] sm:$0xc0] }
  0xb5   :  { %v335_v34 = vadd.f32 %v333_v32, %v330_v33  ;;  %v479_v32 = vld [vmem:[#allocation2 + $0x20] sm:$0xc0] }
  0xb6   :  { %2898 = vtanh.f32 %v209_v36  ;;  %v2811_v38 = vmul.f32 -1.442695, %v209_v36  ;;  %v481_v33 = vrot.slane %v479_v32, 6  ;;  %v624_v32 = vld [vmem:[#allocation2 + $0x20] sm:$0xc] }
  0xb7   :  { %v337_v35 = vrot.slane %v335_v34, 4  ;;  %v478_v34 = vld [vmem:[#allocation2 + $0x18] sm:$0x3] }
  0xb8   :  { %2900 = vpow2.f32 %v2811_v38 }
  0xbc   :  { %v2899_v37 = vpop.eup %2898 }
  0xbd   :  { %233 = vrot.lane.b32.xlu0 %v2899_v37, %s3245_s0 }
  0xbe   :  { %v2901_v39 = vpop.eup %2900 }
  0xbf   :  { %v214_v40 = vadd.f32 1.0, %v2901_v39 }
  0xc1   :  { %2902 = vrcp.f32 %v214_v40  ;;  %v226_v46 = vand.u32 2147483648, %v214_v40  ;;  %vm220_vm3 = vweird.f32 %v214_v40  ;;  %v224_v47 = vand.u32 2147483647, %v214_v40 }
  0xc3   :  { %v227_v49 = vor.u32 1.1754944e-38, %v226_v46  ;;  %vm225_vm5 = vcmp.eq.f32.partialorder %v224_v47, 8.507059e+37 }
  0xc7   :  { %v2903_v41 = vpop.eup %2902 }
  0xc8   :  { %v216_v42 = vmul.f32 %v2903_v41, %v214_v40  ;;  %vm221_vm2 = vweird.f32 %v2903_v41 }
  0xc9   :  { %vm222_vm4 = vmor %vm220_vm3, %vm221_vm2 }
  0xca   :  { %v217_v43 = vsub.f32 1.0, %v216_v42 }
  0xcc   :  { %v218_v44 = vmul.f32 %v2903_v41, %v217_v43 }
  0xce   :  { %v219_v45 = vadd.f32 %v2903_v41, %v218_v44 }
  0xd0   :  { %v223_v48 = vsel %vm222_vm4, %v2903_v41, %v219_v45 }
  0xd1   :  { %v228_v51 = vsel %vm225_vm5, %v227_v49, %v223_v48 }
  0xd2   :  { %v231_v53 = vmul.f32 0.0, %v228_v51 }
 0x12f   :  { %v234_v50 = vpop.permute.xlu0 %233 }
 0x130   :  { %v236_v52 = vmul.f32 %v234_v50, %v228_v51 }
 0x132   :  { %238 = vrot.lane.b32.xlu0 %v236_v52, %s3246_s2 }
 0x1a4   :  { %v239_v54 = vpop.permute.xlu0 %238 }
 0x1a5   :  { %v241_v55 = vadd.f32 %v239_v54, %v231_v53 }
 0x1a7   :  { %2904 = vtanh.f32 %v241_v55 }
 0x1ad   :  { %v2905_v56 = vpop.eup %2904 }
 0x1ae   :  { %244 = vrot.lane.b32.xlu1 %v2905_v56, %s3245_s0 }
 0x220   :  { %v245_v57 = vpop.permute.xlu1 %244 }
 0x221   :  { %v247_v58 = vmul.f32 %v245_v57, %v228_v51 }
 0x223   :  { %249 = vrot.lane.b32.xlu1 %v247_v58, %s3246_s2 }
 0x295   :  { %v250_v59 = vpop.permute.xlu1 %249 }
 0x296   :  { %253 = vst.msk [vmem:[#allocation3] sm:$0x3] %vm252_vm6, %v250_v59  ;;  %2812 = vmatmul.msk.f32.vlgmr.msra.gmra.mxu3 %vm187_vm7, %v250_v59 }
 0x297   :  { %255 = vst.msk [vmem:[#allocation3 + $0x1e] sm:$0x3] %vm254_vm8, %v250_v59  ;;  %572 = vmatpush.msra.mxu3 %v3344_v4 }
 0x299   :  { %573 = vmatpush.msra.mxu3 %v3350_v5 }
 0x29b   :  { %574 = vmatpush.msra.mxu3 %v3358_v6 }
 0x29d   :  { %575 = vmatpush.msra.mxu3 %v3365_v7 }
 0x319   :  { %v284_v1 = vpop.f32.mrf.mxu3 }
 0x31a   :  { %v285_v2 = vadd.f32 %v284_v1, %v263_v0  ;;  %v409_v0 = vadd.f32 %v407_v62, %v404_v63  ;;  %v552_v62 = vrot.slane %v550_v61, 2  ;;  %v549_v63 = vld [vmem:[#allocation2 + $0x18] sm:$0xc] }
 0x31c   :  { %2906 = vtanh.f32 %v285_v2  ;;  %v2813_v8 = vmul.f32 -1.442695, %v285_v2  ;;  %v411_v1 = vrot.slane %v409_v0, 6  ;;  %v554_v0 = vadd.f32 %v552_v62, %v549_v63  ;;  %v698_v62 = vld [vmem:[#allocation2 + $0x20] sm:$0x3] }
 0x31d   :  { %v700_v63 = vrot.slane %v698_v62, 2 }
 0x31e   :  { %2908 = vpow2.f32 %v2813_v8 }
 0x322   :  { %v2907_v3 = vpop.eup %2906 }
 0x323   :  { %309 = vrot.lane.b32.xlu2 %v2907_v3, %s3245_s0 }
 0x324   :  { %v2909_v10 = vpop.eup %2908 }
 0x325   :  { %v290_v11 = vadd.f32 1.0, %v2909_v10 }
 0x327   :  { %2910 = vrcp.f32 %v290_v11  ;;  %v302_v17 = vand.u32 2147483648, %v290_v11  ;;  %vm296_vm10 = vweird.f32 %v290_v11  ;;  %v300_v18 = vand.u32 2147483647, %v290_v11 }
 0x329   :  { %v303_v20 = vor.u32 1.1754944e-38, %v302_v17  ;;  %vm301_vm12 = vcmp.eq.f32.partialorder %v300_v18, 8.507059e+37 }
 0x32d   :  { %v2911_v12 = vpop.eup %2910 }
 0x32e   :  { %v292_v13 = vmul.f32 %v2911_v12, %v290_v11  ;;  %vm297_vm9 = vweird.f32 %v2911_v12 }
 0x32f   :  { %vm298_vm11 = vmor %vm296_vm10, %vm297_vm9 }
 0x330   :  { %v293_v14 = vsub.f32 1.0, %v292_v13 }
 0x332   :  { %v294_v15 = vmul.f32 %v2911_v12, %v293_v14 }
 0x334   :  { %v295_v16 = vadd.f32 %v2911_v12, %v294_v15 }
 0x336   :  { %v299_v19 = vsel %vm298_vm11, %v2911_v12, %v295_v16 }
 0x337   :  { %v304_v22 = vsel %vm301_vm12, %v303_v20, %v299_v19 }
 0x338   :  { %v307_v24 = vmul.f32 %v304_v22, %v241_v55 }
 0x37d   :  { %v310_v21 = vpop.permute.xlu2 %309 }
 0x37e   :  { %v312_v23 = vmul.f32 %v310_v21, %v304_v22 }
 0x380   :  { %314 = vrot.lane.b32.xlu2 %v312_v23, %s3246_s2 }
 0x3da   :  { %v315_v25 = vpop.permute.xlu2 %314 }
 0x3db   :  { %v317_v26 = vadd.f32 %v315_v25, %v307_v24 }
 0x3dd   :  { %2912 = vtanh.f32 %v317_v26 }
 0x3e3   :  { %v2913_v27 = vpop.eup %2912 }
 0x3e4   :  { %320 = vrot.lane.b32.xlu0 %v2913_v27, %s3245_s0 }
 0x456   :  { %v321_v28 = vpop.permute.xlu0 %320 }
 0x457   :  { %v323_v29 = vmul.f32 %v321_v28, %v304_v22 }
 0x459   :  { %325 = vrot.lane.b32.xlu1 %v323_v29, %s3246_s2 }
 0x4cb   :  { %v326_v30 = vpop.permute.xlu1 %325 }
 0x4cc   :  { %328 = vst.msk [vmem:[#allocation3 + $0x2] sm:$0x3] %vm252_vm6, %v326_v30  ;;  %2814 = vmatmul.msk.f32.vlgmr.msrb.gmra.mxu2 %vm187_vm7, %v326_v30 }
 0x4cd   :  { %329 = vst.msk [vmem:[#allocation3 + $0x1c] sm:$0x3] %vm254_vm8, %v326_v30  ;;  %646 = vmatpush.msrb.mxu2 %v3344_v4 }
 0x4cf   :  { %647 = vmatpush.msrb.mxu2 %v3350_v5 }
 0x4d1   :  { %648 = vmatpush.msrb.mxu2 %v3358_v6 }
 0x4d3   :  { %649 = vmatpush.msrb.mxu2 %v3365_v7 }
 0x54f   :  { %v358_v36 = vpop.f32.mrf.mxu2 }
 0x550   :  { %v359_v37 = vadd.f32 %v358_v36, %v337_v35  ;;  %v483_v35 = vadd.f32 %v481_v33, %v478_v34  ;;  %v626_v33 = vrot.slane %v624_v32, 6  ;;  %v623_v34 = vld [vmem:[#allocation2 + $0x18] sm:$0x30] }
 0x552   :  { %2914 = vtanh.f32 %v359_v37  ;;  %v2815_v39 = vmul.f32 -1.442695, %v359_v37 }
 0x554   :  { %2916 = vpow2.f32 %v2815_v39 }
 0x558   :  { %v2915_v38 = vpop.eup %2914 }
 0x559   :  { %383 = vrot.lane.b32.xlu2 %v2915_v38, %s3245_s0 }
 0x55a   :  { %v2917_v40 = vpop.eup %2916 }
 0x55b   :  { %v364_v41 = vadd.f32 1.0, %v2917_v40 }
 0x55d   :  { %2918 = vrcp.f32 %v364_v41  ;;  %v376_v47 = vand.u32 2147483648, %v364_v41  ;;  %vm370_vm14 = vweird.f32 %v364_v41  ;;  %v374_v48 = vand.u32 2147483647, %v364_v41 }
 0x55f   :  { %v377_v50 = vor.u32 1.1754944e-38, %v376_v47  ;;  %vm375_vm0 = vcmp.eq.f32.partialorder %v374_v48, 8.507059e+37 }
 0x563   :  { %v2919_v42 = vpop.eup %2918 }
 0x564   :  { %v366_v43 = vmul.f32 %v2919_v42, %v364_v41  ;;  %vm371_vm13 = vweird.f32 %v2919_v42 }
 0x565   :  { %vm372_vm15 = vmor %vm370_vm14, %vm371_vm13 }
 0x566   :  { %v367_v44 = vsub.f32 1.0, %v366_v43 }
 0x568   :  { %v368_v45 = vmul.f32 %v2919_v42, %v367_v44 }
 0x56a   :  { %v369_v46 = vadd.f32 %v2919_v42, %v368_v45 }
 0x56c   :  { %v373_v49 = vsel %vm372_vm15, %v2919_v42, %v369_v46 }
 0x56d   :  { %v378_v52 = vsel %vm375_vm0, %v377_v50, %v373_v49 }
 0x56e   :  { %v381_v54 = vmul.f32 %v378_v52, %v317_v26 }
 0x5b3   :  { %v384_v51 = vpop.permute.xlu2 %383 }
 0x5b4   :  { %v386_v53 = vmul.f32 %v384_v51, %v378_v52 }
 0x5b6   :  { %388 = vrot.lane.b32.xlu0 %v386_v53, %s3246_s2 }
 0x628   :  { %v389_v55 = vpop.permute.xlu0 %388 }
 0x629   :  { %v391_v56 = vadd.f32 %v389_v55, %v381_v54 }
 0x62b   :  { %2920 = vtanh.f32 %v391_v56 }
 0x631   :  { %v2921_v57 = vpop.eup %2920 }
 0x632   :  { %394 = vrot.lane.b32.xlu1 %v2921_v57, %s3245_s0 }
 0x6a4   :  { %v395_v58 = vpop.permute.xlu1 %394 }
 0x6a5   :  { %v397_v59 = vmul.f32 %v395_v58, %v378_v52 }
 0x6a7   :  { %399 = vrot.lane.b32.xlu2 %v397_v59, %s3246_s2 }
 0x701   :  { %v400_v60 = vpop.permute.xlu2 %399 }
 0x702   :  { %402 = vst.msk [vmem:[#allocation3 + $0x4] sm:$0x3] %vm252_vm6, %v400_v60  ;;  %2816 = vmatmul.msk.f32.vlgmr.msrb.gmra.mxu3 %vm187_vm7, %v400_v60 }
 0x703   :  { %403 = vst.msk [vmem:[#allocation3 + $0x1a] sm:$0x3] %vm254_vm8, %v400_v60  ;;  %720 = vmatpush.msrb.mxu3 %v3344_v4 }
 0x705   :  { %721 = vmatpush.msrb.mxu3 %v3350_v5 }
 0x707   :  { %722 = vmatpush.msrb.mxu3 %v3358_v6 }
 0x709   :  { %723 = vmatpush.msrb.mxu3 %v3365_v7 }
 0x785   :  { %v432_v2 = vpop.f32.mrf.mxu3 }
 0x786   :  { %v433_v3 = vadd.f32 %v432_v2, %v411_v1  ;;  %v556_v1 = vrot.slane %v554_v0, 2  ;;  %v697_v0 = vld [vmem:[#allocation2 + $0x18] sm:$0xc0] }
 0x788   :  { %2922 = vtanh.f32 %v433_v3  ;;  %v2817_v10 = vmul.f32 -1.442695, %v433_v3 }
 0x78a   :  { %2924 = vpow2.f32 %v2817_v10 }
 0x78e   :  { %v2923_v8 = vpop.eup %2922 }
 0x78f   :  { %457 = vrot.lane.b32.xlu0 %v2923_v8, %s3245_s0 }
 0x790   :  { %v2925_v11 = vpop.eup %2924 }
 0x791   :  { %v438_v12 = vadd.f32 1.0, %v2925_v11 }
 0x793   :  { %2926 = vrcp.f32 %v438_v12  ;;  %v450_v18 = vand.u32 2147483648, %v438_v12  ;;  %vm444_vm2 = vweird.f32 %v438_v12  ;;  %v448_v19 = vand.u32 2147483647, %v438_v12 }
 0x795   :  { %v451_v21 = vor.u32 1.1754944e-38, %v450_v18  ;;  %vm449_vm4 = vcmp.eq.f32.partialorder %v448_v19, 8.507059e+37 }
 0x799   :  { %v2927_v13 = vpop.eup %2926 }
 0x79a   :  { %v440_v14 = vmul.f32 %v2927_v13, %v438_v12  ;;  %vm445_vm1 = vweird.f32 %v2927_v13 }
 0x79b   :  { %vm446_vm3 = vmor %vm444_vm2, %vm445_vm1 }
 0x79c   :  { %v441_v15 = vsub.f32 1.0, %v440_v14 }
 0x79e   :  { %v442_v16 = vmul.f32 %v2927_v13, %v441_v15 }
 0x7a0   :  { %v443_v17 = vadd.f32 %v2927_v13, %v442_v16 }
 0x7a2   :  { %v447_v20 = vsel %vm446_vm3, %v2927_v13, %v443_v17 }
 0x7a3   :  { %v452_v23 = vsel %vm449_vm4, %v451_v21, %v447_v20 }
 0x7a4   :  { %v455_v25 = vmul.f32 %v452_v23, %v391_v56 }
 0x801   :  { %v458_v22 = vpop.permute.xlu0 %457 }
 0x802   :  { %v460_v24 = vmul.f32 %v458_v22, %v452_v23 }
 0x804   :  { %462 = vrot.lane.b32.xlu1 %v460_v24, %s3246_s2 }
 0x876   :  { %v463_v26 = vpop.permute.xlu1 %462 }
 0x877   :  { %v465_v27 = vadd.f32 %v463_v26, %v455_v25 }
 0x879   :  { %2928 = vtanh.f32 %v465_v27 }
 0x87f   :  { %v2929_v28 = vpop.eup %2928 }
 0x880   :  { %468 = vrot.lane.b32.xlu2 %v2929_v28, %s3245_s0 }
 0x8da   :  { %v469_v29 = vpop.permute.xlu2 %468 }
 0x8db   :  { %v471_v30 = vmul.f32 %v469_v29, %v452_v23 }
 0x8dd   :  { %473 = vrot.lane.b32.xlu0 %v471_v30, %s3246_s2 }
 0x94f   :  { %v474_v31 = vpop.permute.xlu0 %473 }
 0x950   :  { %476 = vst.msk [vmem:[#allocation3 + $0x6] sm:$0x3] %vm252_vm6, %v474_v31  ;;  %2818 = vmatmul.msk.f32.vlgmr.msra.gmra.mxu2 %vm187_vm7, %v474_v31 }
 0x951   :  { %477 = vst.msk [vmem:[#allocation3 + $0x18] sm:$0x3] %vm254_vm8, %v474_v31  ;;  %939 = vmatpush.msra.mxu2 %v3344_v4 }
 0x953   :  { %940 = vmatpush.msra.mxu2 %v3350_v5 }
 0x955   :  { %941 = vmatpush.msra.mxu2 %v3358_v6 }
 0x957   :  { %942 = vmatpush.msra.mxu2 %v3365_v7 }
 0x9d3   :  { %v503_v36 = vpop.f32.mrf.mxu2 }
 0x9d4   :  { %v504_v37 = vadd.f32 %v503_v36, %v483_v35  ;;  %v628_v35 = vadd.f32 %v626_v33, %v623_v34 }
 0x9d6   :  { %2930 = vtanh.f32 %v504_v37  ;;  %v2819_v39 = vmul.f32 -1.442695, %v504_v37  ;;  %v630_v36 = vrot.slane %v628_v35, 4 }
 0x9d8   :  { %2932 = vpow2.f32 %v2819_v39 }
 0x9dc   :  { %v2931_v38 = vpop.eup %2930 }
 0x9dd   :  { %528 = vrot.lane.b32.xlu1 %v2931_v38, %s3245_s0 }
 0x9de   :  { %v2933_v40 = vpop.eup %2932 }
 0x9df   :  { %v509_v41 = vadd.f32 1.0, %v2933_v40 }
 0x9e1   :  { %2934 = vrcp.f32 %v509_v41  ;;  %v521_v47 = vand.u32 2147483648, %v509_v41  ;;  %vm515_vm9 = vweird.f32 %v509_v41  ;;  %v519_v48 = vand.u32 2147483647, %v509_v41 }
 0x9e3   :  { %v522_v50 = vor.u32 1.1754944e-38, %v521_v47  ;;  %vm520_vm11 = vcmp.eq.f32.partialorder %v519_v48, 8.507059e+37 }
 0x9e7   :  { %v2935_v42 = vpop.eup %2934 }
 0x9e8   :  { %v511_v43 = vmul.f32 %v2935_v42, %v509_v41  ;;  %vm516_vm5 = vweird.f32 %v2935_v42 }
 0x9e9   :  { %vm517_vm10 = vmor %vm515_vm9, %vm516_vm5 }
 0x9ea   :  { %v512_v44 = vsub.f32 1.0, %v511_v43 }
 0x9ec   :  { %v513_v45 = vmul.f32 %v2935_v42, %v512_v44 }
 0x9ee   :  { %v514_v46 = vadd.f32 %v2935_v42, %v513_v45 }
 0x9f0   :  { %v518_v49 = vsel %vm517_vm10, %v2935_v42, %v514_v46 }
 0x9f1   :  { %v523_v52 = vsel %vm520_vm11, %v522_v50, %v518_v49 }
 0x9f2   :  { %v526_v54 = vmul.f32 %v523_v52, %v465_v27 }
 0xa4f   :  { %v529_v51 = vpop.permute.xlu1 %528 }
 0xa50   :  { %v531_v53 = vmul.f32 %v529_v51, %v523_v52 }
 0xa52   :  { %533 = vrot.lane.b32.xlu2 %v531_v53, %s3246_s2 }
 0xaac   :  { %v534_v55 = vpop.permute.xlu2 %533 }
 0xaad   :  { %v536_v56 = vadd.f32 %v534_v55, %v526_v54 }
 0xaaf   :  { %2936 = vtanh.f32 %v536_v56 }
 0xab5   :  { %v2937_v57 = vpop.eup %2936 }
 0xab6   :  { %539 = vrot.lane.b32.xlu0 %v2937_v57, %s3245_s0 }
 0xb28   :  { %v540_v58 = vpop.permute.xlu0 %539 }
 0xb29   :  { %v542_v59 = vmul.f32 %v540_v58, %v523_v52 }
 0xb2b   :  { %544 = vrot.lane.b32.xlu1 %v542_v59, %s3246_s2 }
 0xb9d   :  { %v545_v60 = vpop.permute.xlu1 %544 }
 0xb9e   :  { %547 = vst.msk [vmem:[#allocation3 + $0x8] sm:$0x3] %vm252_vm6, %v545_v60  ;;  %2820 = vmatmul.msk.f32.vlgmr.msra.gmra.mxu3 %vm187_vm7, %v545_v60 }
 0xb9f   :  { %548 = vst.msk [vmem:[#allocation3 + $0x16] sm:$0x3] %vm254_vm8, %v545_v60  ;;  %1013 = vmatpush.msra.mxu3 %v3344_v4 }
 0xba1   :  { %1014 = vmatpush.msra.mxu3 %v3350_v5 }
 0xba3   :  { %1015 = vmatpush.msra.mxu3 %v3358_v6 }
 0xba5   :  { %1016 = vmatpush.msra.mxu3 %v3365_v7 }
 0xc21   :  { %v577_v2 = vpop.f32.mrf.mxu3 }
 0xc22   :  { %v578_v3 = vadd.f32 %v577_v2, %v556_v1  ;;  %v702_v1 = vadd.f32 %v700_v63, %v697_v0 }
 0xc24   :  { %2938 = vtanh.f32 %v578_v3  ;;  %v2821_v10 = vmul.f32 -1.442695, %v578_v3  ;;  %v704_v2 = vrot.slane %v702_v1, 6 }
 0xc26   :  { %2940 = vpow2.f32 %v2821_v10 }
 0xc2a   :  { %v2939_v8 = vpop.eup %2938 }
 0xc2b   :  { %602 = vrot.lane.b32.xlu2 %v2939_v8, %s3245_s0 }
 0xc2c   :  { %v2941_v11 = vpop.eup %2940 }
 0xc2d   :  { %v583_v12 = vadd.f32 1.0, %v2941_v11 }
 0xc2f   :  { %2942 = vrcp.f32 %v583_v12  ;;  %v595_v18 = vand.u32 2147483648, %v583_v12  ;;  %vm589_vm13 = vweird.f32 %v583_v12  ;;  %v593_v19 = vand.u32 2147483647, %v583_v12 }
 0xc31   :  { %v596_v21 = vor.u32 1.1754944e-38, %v595_v18  ;;  %vm594_vm15 = vcmp.eq.f32.partialorder %v593_v19, 8.507059e+37 }
 0xc35   :  { %v2943_v13 = vpop.eup %2942 }
 0xc36   :  { %v585_v14 = vmul.f32 %v2943_v13, %v583_v12  ;;  %vm590_vm12 = vweird.f32 %v2943_v13 }
 0xc37   :  { %vm591_vm14 = vmor %vm589_vm13, %vm590_vm12 }
 0xc38   :  { %v586_v15 = vsub.f32 1.0, %v585_v14 }
 0xc3a   :  { %v587_v16 = vmul.f32 %v2943_v13, %v586_v15 }
 0xc3c   :  { %v588_v17 = vadd.f32 %v2943_v13, %v587_v16 }
 0xc3e   :  { %v592_v20 = vsel %vm591_vm14, %v2943_v13, %v588_v17 }
 0xc3f   :  { %v597_v23 = vsel %vm594_vm15, %v596_v21, %v592_v20 }
 0xc40   :  { %v600_v25 = vmul.f32 %v597_v23, %v536_v56 }
 0xc85   :  { %v603_v22 = vpop.permute.xlu2 %602 }
 0xc86   :  { %v605_v24 = vmul.f32 %v603_v22, %v597_v23 }
 0xc88   :  { %607 = vrot.lane.b32.xlu0 %v605_v24, %s3246_s2 }
 0xcfa   :  { %v608_v26 = vpop.permute.xlu0 %607 }
 0xcfb   :  { %v610_v27 = vadd.f32 %v608_v26, %v600_v25 }
 0xcfd   :  { %2944 = vtanh.f32 %v610_v27 }
 0xd03   :  { %v2945_v28 = vpop.eup %2944 }
 0xd04   :  { %613 = vrot.lane.b32.xlu1 %v2945_v28, %s3245_s0 }
 0xd76   :  { %v614_v29 = vpop.permute.xlu1 %613 }
 0xd77   :  { %v616_v30 = vmul.f32 %v614_v29, %v597_v23  ;;  %v772_v29 = vld [vmem:[#allocation2 + $0x10] sm:$0xc0] }
 0xd79   :  { %618 = vrot.lane.b32.xlu2 %v616_v30, %s3246_s2  ;;  %v771_v30 = vld [vmem:[#allocation2 + $0x8] sm:$0x3] }
 0xdd3   :  { %v619_v31 = vpop.permute.xlu2 %618 }
 0xdd4   :  { %621 = vst.msk [vmem:[#allocation3 + $0xa] sm:$0x3] %vm252_vm6, %v619_v31  ;;  %2822 = vmatmul.msk.f32.vlgmr.msrb.gmra.mxu2 %vm187_vm7, %v619_v31 }
 0xdd5   :  { %622 = vst.msk [vmem:[#allocation3 + $0x14] sm:$0x3] %vm254_vm8, %v619_v31  ;;  %1232 = vmatpush.msrb.mxu2 %v3344_v4  ;;  %v774_v31 = vrot.slane %v772_v29, 6 }
 0xdd7   :  { %1233 = vmatpush.msrb.mxu2 %v3350_v5  ;;  %v776_v32 = vadd.f32 %v774_v31, %v771_v30 }
 0xdd9   :  { %1234 = vmatpush.msrb.mxu2 %v3358_v6 }
 0xddb   :  { %1235 = vmatpush.msrb.mxu2 %v3365_v7 }
 0xe57   :  { %v651_v37 = vpop.f32.mrf.mxu2 }
 0xe58   :  { %v652_v38 = vadd.f32 %v651_v37, %v630_v36 }
 0xe5a   :  { %2946 = vtanh.f32 %v652_v38  ;;  %v2823_v40 = vmul.f32 -1.442695, %v652_v38 }
 0xe5c   :  { %2948 = vpow2.f32 %v2823_v40 }
 0xe60   :  { %v2947_v39 = vpop.eup %2946 }
 0xe61   :  { %676 = vrot.lane.b32.xlu0 %v2947_v39, %s3245_s0 }
 0xe62   :  { %v2949_v41 = vpop.eup %2948 }
 0xe63   :  { %v657_v42 = vadd.f32 1.0, %v2949_v41 }
 0xe65   :  { %2950 = vrcp.f32 %v657_v42  ;;  %v669_v48 = vand.u32 2147483648, %v657_v42  ;;  %vm663_vm1 = vweird.f32 %v657_v42  ;;  %v667_v49 = vand.u32 2147483647, %v657_v42 }
 0xe67   :  { %v670_v51 = vor.u32 1.1754944e-38, %v669_v48  ;;  %vm668_vm3 = vcmp.eq.f32.partialorder %v667_v49, 8.507059e+37 }
 0xe6b   :  { %v2951_v43 = vpop.eup %2950 }
 0xe6c   :  { %v659_v44 = vmul.f32 %v2951_v43, %v657_v42  ;;  %vm664_vm0 = vweird.f32 %v2951_v43 }
 0xe6d   :  { %vm665_vm2 = vmor %vm663_vm1, %vm664_vm0 }
 0xe6e   :  { %v660_v45 = vsub.f32 1.0, %v659_v44 }
 0xe70   :  { %v661_v46 = vmul.f32 %v2951_v43, %v660_v45 }
 0xe72   :  { %v662_v47 = vadd.f32 %v2951_v43, %v661_v46 }
 0xe74   :  { %v666_v50 = vsel %vm665_vm2, %v2951_v43, %v662_v47 }
 0xe75   :  { %v671_v53 = vsel %vm668_vm3, %v670_v51, %v666_v50 }
 0xe76   :  { %v674_v55 = vmul.f32 %v671_v53, %v610_v27 }
 0xed3   :  { %v677_v52 = vpop.permute.xlu0 %676 }
 0xed4   :  { %v679_v54 = vmul.f32 %v677_v52, %v671_v53 }
 0xed6   :  { %681 = vrot.lane.b32.xlu1 %v679_v54, %s3246_s2 }
 0xf48   :  { %v682_v56 = vpop.permute.xlu1 %681 }
 0xf49   :  { %v684_v57 = vadd.f32 %v682_v56, %v674_v55 }
 0xf4b   :  { %2952 = vtanh.f32 %v684_v57 }
 0xf51   :  { %v2953_v58 = vpop.eup %2952 }
 0xf52   :  { %687 = vrot.lane.b32.xlu2 %v2953_v58, %s3245_s0  ;;  %v843_v58 = vld [vmem:[#allocation2 + $0x10] sm:$0x30] }
 0xfac   :  { %v688_v59 = vpop.permute.xlu2 %687 }
 0xfad   :  { %v690_v60 = vmul.f32 %v688_v59, %v671_v53  ;;  %v842_v59 = vld [vmem:[#allocation2 + $0x8] sm:$0xc] }
 0xfaf   :  { %692 = vrot.lane.b32.xlu0 %v690_v60, %s3246_s2  ;;  %v845_v60 = vrot.slane %v843_v58, 2 }
0x1021   :  { %v693_v61 = vpop.permute.xlu0 %692 }
0x1022   :  { %695 = vst.msk [vmem:[#allocation3 + $0xc] sm:$0x3] %vm252_vm6, %v693_v61  ;;  %2824 = vmatmul.msk.f32.vlgmr.msrb.gmra.mxu3 %vm187_vm7, %v693_v61 }
0x1023   :  { %696 = vst.msk [vmem:[#allocation3 + $0x12] sm:$0x3] %vm254_vm8, %v693_v61  ;;  %1306 = vmatpush.msrb.mxu3 %v3344_v4  ;;  %v847_v61 = vadd.f32 %v845_v60, %v842_v59 }
0x1025   :  { %1307 = vmatpush.msrb.mxu3 %v3350_v5  ;;  %v849_v62 = vrot.slane %v847_v61, 2 }
0x1027   :  { %1308 = vmatpush.msrb.mxu3 %v3358_v6 }
0x1029   :  { %1309 = vmatpush.msrb.mxu3 %v3365_v7 }
0x10a5   :  { %v725_v3 = vpop.f32.mrf.mxu3 }
0x10a6   :  { %v726_v8 = vadd.f32 %v725_v3, %v704_v2 }
0x10a8   :  { %2954 = vtanh.f32 %v726_v8  ;;  %v2825_v11 = vmul.f32 -1.442695, %v726_v8 }
0x10aa   :  { %2956 = vpow2.f32 %v2825_v11 }
0x10ae   :  { %v2955_v10 = vpop.eup %2954 }
0x10af   :  { %750 = vrot.lane.b32.xlu1 %v2955_v10, %s3245_s0 }
0x10b0   :  { %v2957_v4 = vpop.eup %2956 }
0x10b1   :  { %v731_v12 = vadd.f32 1.0, %v2957_v4 }
0x10b3   :  { %2958 = vrcp.f32 %v731_v12  ;;  %v743_v15 = vand.u32 2147483648, %v731_v12  ;;  %vm737_vm5 = vweird.f32 %v731_v12  ;;  %v741_v16 = vand.u32 2147483647, %v731_v12 }
0x10b5   :  { %v744_v18 = vor.u32 1.1754944e-38, %v743_v15  ;;  %vm742_vm10 = vcmp.eq.f32.partialorder %v741_v16, 8.507059e+37 }
0x10b9   :  { %v2959_v5 = vpop.eup %2958 }
0x10ba   :  { %v733_v6 = vmul.f32 %v2959_v5, %v731_v12  ;;  %vm738_vm4 = vweird.f32 %v2959_v5 }
0x10bb   :  { %vm739_vm9 = vmor %vm737_vm5, %vm738_vm4 }
0x10bc   :  { %v734_v13 = vsub.f32 1.0, %v733_v6 }
0x10be   :  { %v735_v7 = vmul.f32 %v2959_v5, %v734_v13 }
0x10c0   :  { %v736_v14 = vadd.f32 %v2959_v5, %v735_v7 }
0x10c2   :  { %v740_v17 = vsel %vm739_vm9, %v2959_v5, %v736_v14 }
0x10c3   :  { %v745_v20 = vsel %vm742_vm10, %v744_v18, %v740_v17 }
0x10c4   :  { %v748_v22 = vmul.f32 %v745_v20, %v684_v57 }
0x1121   :  { %v751_v19 = vpop.permute.xlu1 %750 }
0x1122   :  { %v753_v21 = vmul.f32 %v751_v19, %v745_v20 }
0x1124   :  { %755 = vrot.lane.b32.xlu2 %v753_v21, %s3246_s2 }
0x117e   :  { %v756_v23 = vpop.permute.xlu2 %755 }
0x117f   :  { %v758_v24 = vadd.f32 %v756_v23, %v748_v22 }
0x1181   :  { %2960 = vtanh.f32 %v758_v24 }
0x1187   :  { %v2961_v25 = vpop.eup %2960 }
0x1188   :  { %761 = vrot.lane.b32.xlu0 %v2961_v25, %s3245_s0  ;;  %v917_v25 = vld [vmem:[#allocation2 + $0x10] sm:$0xc] }
0x11fa   :  { %v762_v26 = vpop.permute.xlu0 %761 }
0x11fb   :  { %v764_v27 = vmul.f32 %v762_v26, %v745_v20  ;;  %v916_v26 = vld [vmem:[#allocation2 + $0x8] sm:$0x30] }
0x11fd   :  { %766 = vrot.lane.b32.xlu1 %v764_v27, %s3246_s2  ;;  %v919_v27 = vrot.slane %v917_v25, 6 }
0x126f   :  { %v767_v28 = vpop.permute.xlu1 %766 }
0x1270   :  { %769 = vst.msk [vmem:[#allocation3 + $0xe] sm:$0x3] %vm252_vm6, %v767_v28  ;;  %2826 = vmatmul.msk.f32.vlgmr.msrb.gmra.mxu0 %vm187_vm7, %v767_v28 }
0x1271   :  { %770 = vst.msk [vmem:[#allocation3 + $0x10] sm:$0x3] %vm254_vm8, %v767_v28  ;;  %v921_v28 = vadd.f32 %v919_v27, %v916_v26 }
0x1273   :  { %v923_v29 = vrot.slane %v921_v28, 4 }
0x12ed   :  { %v796_v33 = vpop.f32.mrf.mxu0 }
0x12ee   :  { %v797_v34 = vadd.f32 %v796_v33, %v776_v32 }
0x12f0   :  { %2962 = vtanh.f32 %v797_v34  ;;  %v2827_v36 = vmul.f32 -1.442695, %v797_v34 }
0x12f2   :  { %2964 = vpow2.f32 %v2827_v36 }
0x12f6   :  { %v2963_v35 = vpop.eup %2962 }
0x12f7   :  { %821 = vrot.lane.b32.xlu2 %v2963_v35, %s3245_s0 }
0x12f8   :  { %v2965_v37 = vpop.eup %2964 }
0x12f9   :  { %v802_v38 = vadd.f32 1.0, %v2965_v37 }
0x12fb   :  { %2966 = vrcp.f32 %v802_v38  ;;  %v814_v44 = vand.u32 2147483648, %v802_v38  ;;  %vm808_vm12 = vweird.f32 %v802_v38  ;;  %v812_v45 = vand.u32 2147483647, %v802_v38 }
0x12fd   :  { %v815_v47 = vor.u32 1.1754944e-38, %v814_v44  ;;  %vm813_vm14 = vcmp.eq.f32.partialorder %v812_v45, 8.507059e+37 }
0x1301   :  { %v2967_v39 = vpop.eup %2966 }
0x1302   :  { %v804_v40 = vmul.f32 %v2967_v39, %v802_v38  ;;  %vm809_vm11 = vweird.f32 %v2967_v39 }
0x1303   :  { %vm810_vm13 = vmor %vm808_vm12, %vm809_vm11 }
0x1304   :  { %v805_v41 = vsub.f32 1.0, %v804_v40 }
0x1306   :  { %v806_v42 = vmul.f32 %v2967_v39, %v805_v41 }
0x1308   :  { %v807_v43 = vadd.f32 %v2967_v39, %v806_v42 }
0x130a   :  { %v811_v46 = vsel %vm810_vm13, %v2967_v39, %v807_v43 }
0x130b   :  { %v816_v49 = vsel %vm813_vm14, %v815_v47, %v811_v46 }
0x130c   :  { %v819_v51 = vmul.f32 %v816_v49, %v758_v24 }
0x1351   :  { %v822_v48 = vpop.permute.xlu2 %821 }
0x1352   :  { %v824_v50 = vmul.f32 %v822_v48, %v816_v49 }
0x1354   :  { %826 = vrot.lane.b32.xlu0 %v824_v50, %s3246_s2 }
0x13c6   :  { %v827_v52 = vpop.permute.xlu0 %826 }
0x13c7   :  { %v829_v53 = vadd.f32 %v827_v52, %v819_v51 }
0x13c9   :  { %2968 = vtanh.f32 %v829_v53 }
0x13cf   :  { %v2969_v54 = vpop.eup %2968 }
0x13d0   :  { %832 = vrot.lane.b32.xlu1 %v2969_v54, %s3245_s0 }
0x1442   :  { %v833_v55 = vpop.permute.xlu1 %832 }
0x1443   :  { %v835_v56 = vmul.f32 %v833_v55, %v816_v49  ;;  %v991_v55 = vld [vmem:[#allocation2 + $0x10] sm:$0x3] }
0x1445   :  { %837 = vrot.lane.b32.xlu2 %v835_v56, %s3246_s2  ;;  %v990_v56 = vld [vmem:[#allocation2 + $0x8] sm:$0xc0] }
0x149f   :  { %v838_v57 = vpop.permute.xlu2 %837 }
0x14a0   :  { %840 = vst.msk [vmem:[#allocation3 + $0x10] sm:$0x3] %vm252_vm6, %v838_v57  ;;  %2828 = vmatmul.msk.f32.vlgmr.msrb.gmra.mxu1 %vm187_vm7, %v838_v57 }
0x14a1   :  { %841 = vst.msk [vmem:[#allocation3 + $0xe] sm:$0x3] %vm254_vm8, %v838_v57  ;;  %v993_v57 = vrot.slane %v991_v55, 2 }
0x14a3   :  { %v995_v58 = vadd.f32 %v993_v57, %v990_v56 }
0x14a5   :  { %v997_v59 = vrot.slane %v995_v58, 6 }
0x151d   :  { %v870_v63 = vpop.f32.mrf.mxu1 }
0x151e   :  { %v871_v0 = vadd.f32 %v870_v63, %v849_v62 }
0x1520   :  { %2970 = vtanh.f32 %v871_v0  ;;  %v2829_v2 = vmul.f32 -1.442695, %v871_v0 }
0x1522   :  { %2972 = vpow2.f32 %v2829_v2 }
0x1526   :  { %v2971_v1 = vpop.eup %2970 }
0x1527   :  { %895 = vrot.lane.b32.xlu0 %v2971_v1, %s3245_s0 }
0x1528   :  { %v2973_v3 = vpop.eup %2972 }
0x1529   :  { %v876_v8 = vadd.f32 1.0, %v2973_v3 }
0x152b   :  { %2974 = vrcp.f32 %v876_v8  ;;  %v888_v6 = vand.u32 2147483648, %v876_v8  ;;  %vm882_vm0 = vweird.f32 %v876_v8  ;;  %v886_v13 = vand.u32 2147483647, %v876_v8 }
0x152d   :  { %v889_v14 = vor.u32 1.1754944e-38, %v888_v6  ;;  %vm887_vm2 = vcmp.eq.f32.partialorder %v886_v13, 8.507059e+37 }
0x1531   :  { %v2975_v10 = vpop.eup %2974 }
0x1532   :  { %v878_v11 = vmul.f32 %v2975_v10, %v876_v8  ;;  %vm883_vm15 = vweird.f32 %v2975_v10 }
0x1533   :  { %vm884_vm1 = vmor %vm882_vm0, %vm883_vm15 }
0x1534   :  { %v879_v4 = vsub.f32 1.0, %v878_v11 }
0x1536   :  { %v880_v12 = vmul.f32 %v2975_v10, %v879_v4 }
0x1538   :  { %v881_v5 = vadd.f32 %v2975_v10, %v880_v12 }
0x153a   :  { %v885_v7 = vsel %vm884_vm1, %v2975_v10, %v881_v5 }
0x153b   :  { %v890_v16 = vsel %vm887_vm2, %v889_v14, %v885_v7 }
0x153c   :  { %v893_v18 = vmul.f32 %v890_v16, %v829_v53 }
0x1599   :  { %v896_v15 = vpop.permute.xlu0 %895 }
0x159a   :  { %v898_v17 = vmul.f32 %v896_v15, %v890_v16 }
0x159c   :  { %900 = vrot.lane.b32.xlu1 %v898_v17, %s3246_s2 }
0x160e   :  { %v901_v19 = vpop.permute.xlu1 %900 }
0x160f   :  { %v903_v20 = vadd.f32 %v901_v19, %v893_v18 }
0x1611   :  { %2976 = vtanh.f32 %v903_v20 }
0x1617   :  { %v2977_v21 = vpop.eup %2976 }
0x1618   :  { %906 = vrot.lane.b32.xlu2 %v2977_v21, %s3245_s0 }
0x1672   :  { %v907_v22 = vpop.permute.xlu2 %906 }
0x1673   :  { %v909_v23 = vmul.f32 %v907_v22, %v890_v16  ;;  %v1065_v22 = vld [vmem:[#allocation2] sm:$0xc0] }
0x1675   :  { %911 = vrot.lane.b32.xlu0 %v909_v23, %s3246_s2  ;;  %v1064_v23 = vld [vmem:[#allocation2 + $0x28] sm:$0x3] }
0x16e7   :  { %v912_v24 = vpop.permute.xlu0 %911 }
0x16e8   :  { %914 = vst.msk [vmem:[#allocation3 + $0x12] sm:$0x3] %vm252_vm6, %v912_v24  ;;  %2830 = vmatmul.msk.f32.vlgmr.msra.gmra.mxu2 %vm187_vm7, %v912_v24 }
0x16e9   :  { %915 = vst.msk [vmem:[#allocation3 + $0xc] sm:$0x3] %vm254_vm8, %v912_v24  ;;  %v1067_v24 = vrot.slane %v1065_v22, 6 }
0x16eb   :  { %v1069_v25 = vadd.f32 %v1067_v24, %v1064_v23 }
0x176b   :  { %v944_v30 = vpop.f32.mrf.mxu2 }
0x176c   :  { %v945_v31 = vadd.f32 %v944_v30, %v923_v29 }
0x176e   :  { %2978 = vtanh.f32 %v945_v31  ;;  %v2831_v33 = vmul.f32 -1.442695, %v945_v31 }
0x1770   :  { %2980 = vpow2.f32 %v2831_v33 }
0x1774   :  { %v2979_v32 = vpop.eup %2978 }
0x1775   :  { %969 = vrot.lane.b32.xlu1 %v2979_v32, %s3245_s0 }
0x1776   :  { %v2981_v34 = vpop.eup %2980 }
0x1777   :  { %v950_v35 = vadd.f32 1.0, %v2981_v34 }
0x1779   :  { %2982 = vrcp.f32 %v950_v35  ;;  %v962_v41 = vand.u32 2147483648, %v950_v35  ;;  %vm956_vm4 = vweird.f32 %v950_v35  ;;  %v960_v42 = vand.u32 2147483647, %v950_v35 }
0x177b   :  { %v963_v44 = vor.u32 1.1754944e-38, %v962_v41  ;;  %vm961_vm9 = vcmp.eq.f32.partialorder %v960_v42, 8.507059e+37 }
0x177f   :  { %v2983_v36 = vpop.eup %2982 }
0x1780   :  { %v952_v37 = vmul.f32 %v2983_v36, %v950_v35  ;;  %vm957_vm3 = vweird.f32 %v2983_v36 }
0x1781   :  { %vm958_vm5 = vmor %vm956_vm4, %vm957_vm3 }
0x1782   :  { %v953_v38 = vsub.f32 1.0, %v952_v37 }
0x1784   :  { %v954_v39 = vmul.f32 %v2983_v36, %v953_v38 }
0x1786   :  { %v955_v40 = vadd.f32 %v2983_v36, %v954_v39 }
0x1788   :  { %v959_v43 = vsel %vm958_vm5, %v2983_v36, %v955_v40 }
0x1789   :  { %v964_v46 = vsel %vm961_vm9, %v963_v44, %v959_v43 }
0x178a   :  { %v967_v48 = vmul.f32 %v964_v46, %v903_v20 }
0x17e7   :  { %v970_v45 = vpop.permute.xlu1 %969 }
0x17e8   :  { %v972_v47 = vmul.f32 %v970_v45, %v964_v46 }
0x17ea   :  { %974 = vrot.lane.b32.xlu2 %v972_v47, %s3246_s2 }
0x1844   :  { %v975_v49 = vpop.permute.xlu2 %974 }
0x1845   :  { %v977_v50 = vadd.f32 %v975_v49, %v967_v48 }
0x1847   :  { %2984 = vtanh.f32 %v977_v50 }
0x184d   :  { %v2985_v51 = vpop.eup %2984 }
0x184e   :  { %980 = vrot.lane.b32.xlu0 %v2985_v51, %s3245_s0  ;;  %v1136_v51 = vld [vmem:[#allocation2] sm:$0x30] }
0x18c0   :  { %v981_v52 = vpop.permute.xlu0 %980 }
0x18c1   :  { %v983_v53 = vmul.f32 %v981_v52, %v964_v46  ;;  %v1135_v52 = vld [vmem:[#allocation2 + $0x28] sm:$0xc] }
0x18c3   :  { %985 = vrot.lane.b32.xlu1 %v983_v53, %s3246_s2  ;;  %v1138_v53 = vrot.slane %v1136_v51, 2 }
0x1935   :  { %v986_v54 = vpop.permute.xlu1 %985 }
0x1936   :  { %988 = vst.msk [vmem:[#allocation3 + $0x14] sm:$0x3] %vm252_vm6, %v986_v54  ;;  %2832 = vmatmul.msk.f32.vlgmr.msra.gmra.mxu3 %vm187_vm7, %v986_v54 }
0x1937   :  { %989 = vst.msk [vmem:[#allocation3 + $0xa] sm:$0x3] %vm254_vm8, %v986_v54  ;;  %v1140_v54 = vadd.f32 %v1138_v53, %v1135_v52 }
0x1939   :  { %v1142_v55 = vrot.slane %v1140_v54, 2 }
0x19b9   :  { %v1018_v60 = vpop.f32.mrf.mxu3 }
0x19ba   :  { %v1019_v61 = vadd.f32 %v1018_v60, %v997_v59 }
0x19bc   :  { %2986 = vtanh.f32 %v1019_v61  ;;  %v2833_v63 = vmul.f32 -1.442695, %v1019_v61 }
0x19be   :  { %2988 = vpow2.f32 %v2833_v63 }
0x19c2   :  { %v2987_v62 = vpop.eup %2986 }
0x19c3   :  { %1043 = vrot.lane.b32.xlu2 %v2987_v62, %s3245_s0 }
0x19c4   :  { %v2989_v0 = vpop.eup %2988 }
0x19c5   :  { %v1024_v1 = vadd.f32 1.0, %v2989_v0 }
0x19c7   :  { %2990 = vrcp.f32 %v1024_v1  ;;  %v1036_v4 = vand.u32 2147483648, %v1024_v1  ;;  %vm1030_vm11 = vweird.f32 %v1024_v1  ;;  %v1034_v12 = vand.u32 2147483647, %v1024_v1 }
0x19c9   :  { %v1037_v6 = vor.u32 1.1754944e-38, %v1036_v4  ;;  %vm1035_vm13 = vcmp.eq.f32.partialorder %v1034_v12, 8.507059e+37 }
0x19cd   :  { %v2991_v2 = vpop.eup %2990 }
0x19ce   :  { %v1026_v3 = vmul.f32 %v2991_v2, %v1024_v1  ;;  %vm1031_vm10 = vweird.f32 %v2991_v2 }
0x19cf   :  { %vm1032_vm12 = vmor %vm1030_vm11, %vm1031_vm10 }
0x19d0   :  { %v1027_v8 = vsub.f32 1.0, %v1026_v3 }
0x19d2   :  { %v1028_v10 = vmul.f32 %v2991_v2, %v1027_v8 }
0x19d4   :  { %v1029_v11 = vadd.f32 %v2991_v2, %v1028_v10 }
0x19d6   :  { %v1033_v5 = vsel %vm1032_vm12, %v2991_v2, %v1029_v11 }
0x19d7   :  { %v1038_v7 = vsel %vm1035_vm13, %v1037_v6, %v1033_v5 }
0x19d8   :  { %v1041_v15 = vmul.f32 %v1038_v7, %v977_v50 }
0x1a1d   :  { %v1044_v13 = vpop.permute.xlu2 %1043 }
0x1a1e   :  { %v1046_v14 = vmul.f32 %v1044_v13, %v1038_v7 }
0x1a20   :  { %1048 = vrot.lane.b32.xlu0 %v1046_v14, %s3246_s2 }
0x1a92   :  { %v1049_v16 = vpop.permute.xlu0 %1048 }
0x1a93   :  { %v1051_v17 = vadd.f32 %v1049_v16, %v1041_v15 }
0x1a95   :  { %2992 = vtanh.f32 %v1051_v17 }
0x1a9b   :  { %v2993_v18 = vpop.eup %2992 }
0x1a9c   :  { %1054 = vrot.lane.b32.xlu1 %v2993_v18, %s3245_s0  ;;  %v1210_v18 = vld [vmem:[#allocation2] sm:$0xc] }
0x1b0e   :  { %v1055_v19 = vpop.permute.xlu1 %1054 }
0x1b0f   :  { %v1057_v20 = vmul.f32 %v1055_v19, %v1038_v7  ;;  %v1209_v19 = vld [vmem:[#allocation2 + $0x28] sm:$0x30] }
0x1b11   :  { %1059 = vrot.lane.b32.xlu2 %v1057_v20, %s3246_s2  ;;  %v1212_v20 = vrot.slane %v1210_v18, 6  ;;  %v1364_v18 = vld [vmem:[%s3828_s4 + $0x18] sm:$0xff] }
0x1b6b   :  { %v1060_v21 = vpop.permute.xlu2 %1059 }
0x1b6c   :  { %1062 = vst.msk [vmem:[#allocation3 + $0x16] sm:$0x3] %vm252_vm6, %v1060_v21  ;;  %2834 = vmatmul.msk.f32.vlgmr.msra.gmra.mxu0 %vm187_vm7, %v1060_v21 }
0x1b6d   :  { %1063 = vst.msk [vmem:[#allocation3 + $0x8] sm:$0x3] %vm254_vm8, %v1060_v21  ;;  %v1214_v21 = vadd.f32 %v1212_v20, %v1209_v19  ;;  %v1363_v19 = vld [vmem:[%s3828_s4 + $0x10] sm:$0xff]  ;;  %v1362_v20 = vld [vmem:[%s3828_s4 + $0x8] sm:$0xff] }
0x1b6f   :  { %v1216_v22 = vrot.slane %v1214_v21, 4  ;;  %v1361_v21 = vld [vmem:[%s3828_s4] sm:$0xff] }
0x1be9   :  { %v1089_v26 = vpop.f32.mrf.mxu0 }
0x1bea   :  { %v1090_v27 = vadd.f32 %v1089_v26, %v1069_v25 }
0x1bec   :  { %2994 = vtanh.f32 %v1090_v27  ;;  %v2835_v29 = vmul.f32 -1.442695, %v1090_v27 }
0x1bee   :  { %2996 = vpow2.f32 %v2835_v29 }
0x1bf2   :  { %v2995_v28 = vpop.eup %2994 }
0x1bf3   :  { %1114 = vrot.lane.b32.xlu0 %v2995_v28, %s3245_s0 }
0x1bf4   :  { %v2997_v30 = vpop.eup %2996 }
0x1bf5   :  { %v1095_v31 = vadd.f32 1.0, %v2997_v30 }
0x1bf7   :  { %2998 = vrcp.f32 %v1095_v31  ;;  %v1107_v37 = vand.u32 2147483648, %v1095_v31  ;;  %vm1101_vm15 = vweird.f32 %v1095_v31  ;;  %v1105_v38 = vand.u32 2147483647, %v1095_v31 }
0x1bf9   :  { %v1108_v40 = vor.u32 1.1754944e-38, %v1107_v37  ;;  %vm1106_vm1 = vcmp.eq.f32.partialorder %v1105_v38, 8.507059e+37 }
0x1bfd   :  { %v2999_v32 = vpop.eup %2998 }
0x1bfe   :  { %v1097_v33 = vmul.f32 %v2999_v32, %v1095_v31  ;;  %vm1102_vm14 = vweird.f32 %v2999_v32 }
0x1bff   :  { %vm1103_vm0 = vmor %vm1101_vm15, %vm1102_vm14 }
0x1c00   :  { %v1098_v34 = vsub.f32 1.0, %v1097_v33 }
0x1c02   :  { %v1099_v35 = vmul.f32 %v2999_v32, %v1098_v34 }
0x1c04   :  { %v1100_v36 = vadd.f32 %v2999_v32, %v1099_v35 }
0x1c06   :  { %v1104_v39 = vsel %vm1103_vm0, %v2999_v32, %v1100_v36 }
0x1c07   :  { %v1109_v42 = vsel %vm1106_vm1, %v1108_v40, %v1104_v39 }
0x1c08   :  { %v1112_v44 = vmul.f32 %v1109_v42, %v1051_v17 }
0x1c65   :  { %v1115_v41 = vpop.permute.xlu0 %1114 }
0x1c66   :  { %v1117_v43 = vmul.f32 %v1115_v41, %v1109_v42 }
0x1c68   :  { %1119 = vrot.lane.b32.xlu1 %v1117_v43, %s3246_s2 }
0x1cda   :  { %v1120_v45 = vpop.permute.xlu1 %1119 }
0x1cdb   :  { %v1122_v46 = vadd.f32 %v1120_v45, %v1112_v44 }
0x1cdd   :  { %3000 = vtanh.f32 %v1122_v46 }
0x1ce3   :  { %v3001_v47 = vpop.eup %3000 }
0x1ce4   :  { %1125 = vrot.lane.b32.xlu2 %v3001_v47, %s3245_s0 }
0x1d3e   :  { %v1126_v48 = vpop.permute.xlu2 %1125 }
0x1d3f   :  { %v1128_v49 = vmul.f32 %v1126_v48, %v1109_v42  ;;  %v1284_v48 = vld [vmem:[#allocation2] sm:$0x3] }
0x1d41   :  { %1130 = vrot.lane.b32.xlu0 %v1128_v49, %s3246_s2  ;;  %v1283_v49 = vld [vmem:[#allocation2 + $0x28] sm:$0xc0] }
0x1db3   :  { %v1131_v50 = vpop.permute.xlu0 %1130 }
0x1db4   :  { %1133 = vst.msk [vmem:[#allocation3 + $0x18] sm:$0x3] %vm252_vm6, %v1131_v50  ;;  %2836 = vmatmul.msk.f32.vlgmr.msra.gmra.mxu1 %vm187_vm7, %v1131_v50 }
0x1db5   :  { %1134 = vst.msk [vmem:[#allocation3 + $0x6] sm:$0x3] %vm254_vm8, %v1131_v50  ;;  %v1286_v50 = vrot.slane %v1284_v48, 2 }
0x1db7   :  { %v1288_v51 = vadd.f32 %v1286_v50, %v1283_v49 }
0x1db9   :  { %v1290_v52 = vrot.slane %v1288_v51, 6 }
0x1e31   :  { %v1163_v56 = vpop.f32.mrf.mxu1 }
0x1e32   :  { %v1164_v57 = vadd.f32 %v1163_v56, %v1142_v55 }
0x1e34   :  { %3002 = vtanh.f32 %v1164_v57  ;;  %v2837_v59 = vmul.f32 -1.442695, %v1164_v57 }
0x1e36   :  { %3004 = vpow2.f32 %v2837_v59 }
0x1e3a   :  { %v3003_v58 = vpop.eup %3002 }
0x1e3b   :  { %1188 = vrot.lane.b32.xlu1 %v3003_v58, %s3245_s0 }
0x1e3c   :  { %v3005_v60 = vpop.eup %3004 }
0x1e3d   :  { %v1169_v61 = vadd.f32 1.0, %v3005_v60 }
0x1e3f   :  { %3006 = vrcp.f32 %v1169_v61  ;;  %v1181_v3 = vand.u32 2147483648, %v1169_v61  ;;  %vm1175_vm3 = vweird.f32 %v1169_v61  ;;  %v1179_v8 = vand.u32 2147483647, %v1169_v61 }
0x1e41   :  { %v1182_v11 = vor.u32 1.1754944e-38, %v1181_v3  ;;  %vm1180_vm5 = vcmp.eq.f32.partialorder %v1179_v8, 8.507059e+37 }
0x1e45   :  { %v3007_v62 = vpop.eup %3006 }
0x1e46   :  { %v1171_v63 = vmul.f32 %v3007_v62, %v1169_v61  ;;  %vm1176_vm2 = vweird.f32 %v3007_v62 }
0x1e47   :  { %vm1177_vm4 = vmor %vm1175_vm3, %vm1176_vm2 }
0x1e48   :  { %v1172_v0 = vsub.f32 1.0, %v1171_v63 }
0x1e4a   :  { %v1173_v1 = vmul.f32 %v3007_v62, %v1172_v0 }
0x1e4c   :  { %v1174_v2 = vadd.f32 %v3007_v62, %v1173_v1 }
0x1e4e   :  { %v1178_v10 = vsel %vm1177_vm4, %v3007_v62, %v1174_v2 }
0x1e4f   :  { %v1183_v12 = vsel %vm1180_vm5, %v1182_v11, %v1178_v10 }
0x1e50   :  { %v1186_v6 = vmul.f32 %v1183_v12, %v1122_v46 }
0x1ead   :  { %v1189_v4 = vpop.permute.xlu1 %1188 }
0x1eae   :  { %v1191_v5 = vmul.f32 %v1189_v4, %v1183_v12 }
0x1eb0   :  { %1193 = vrot.lane.b32.xlu2 %v1191_v5, %s3246_s2 }
0x1f0a   :  { %v1194_v13 = vpop.permute.xlu2 %1193 }
0x1f0b   :  { %v1196_v7 = vadd.f32 %v1194_v13, %v1186_v6 }
0x1f0d   :  { %3008 = vtanh.f32 %v1196_v7 }
0x1f13   :  { %v3009_v14 = vpop.eup %3008 }
0x1f14   :  { %1199 = vrot.lane.b32.xlu0 %v3009_v14, %s3245_s0  ;;  %v1368_v14 = vld [vmem:[%s3828_s4 + $0x38] sm:$0xff] }
0x1f15   :  { %1428 = vmatpush.msrb.mxu1 %v1368_v14 }
0x1f86   :  { %v1200_v15 = vpop.permute.xlu0 %1199 }
0x1f87   :  { %v1202_v16 = vmul.f32 %v1200_v15, %v1183_v12  ;;  %v1367_v15 = vld [vmem:[%s3828_s4 + $0x30] sm:$0xff] }
0x1f88   :  { %1399 = vmatpush.msrb.mxu0 %v1367_v15 }
0x1f89   :  { %1204 = vrot.lane.b32.xlu1 %v1202_v16, %s3246_s2  ;;  %v1366_v16 = vld [vmem:[%s3828_s4 + $0x28] sm:$0xff] }
0x1f8a   :  { %1429 = vmatpush.msrb.mxu1 %v1366_v16 }
0x1f8c   :  { %1430 = vmatpush.msrb.mxu1 %v1364_v18 }
0x1f8e   :  { %1431 = vmatpush.msrb.mxu1 %v1362_v20 }
0x1ffb   :  { %v1205_v17 = vpop.permute.xlu1 %1204 }
0x1ffc   :  { %1207 = vst.msk [vmem:[#allocation3 + $0x1a] sm:$0x3] %vm252_vm6, %v1205_v17  ;;  %2838 = vmatmul.msk.f32.vlgmr.msrb.gmra.mxu2 %vm187_vm7, %v1205_v17 }
0x1ffd   :  { %1208 = vst.msk [vmem:[#allocation3 + $0x4] sm:$0x3] %vm254_vm8, %v1205_v17  ;;  %v1365_v17 = vld [vmem:[%s3828_s4 + $0x20] sm:$0xff] }
0x1ffe   :  { %1400 = vmatpush.msrb.mxu0 %v1365_v17 }
0x2000   :  { %1401 = vmatpush.msrb.mxu0 %v1363_v19 }
0x2002   :  { %1402 = vmatpush.msrb.mxu0 %v1361_v21 }
0x207f   :  { %v1237_v23 = vpop.f32.mrf.mxu2 }
0x2080   :  { %v1238_v24 = vadd.f32 %v1237_v23, %v1216_v22  ;;  %v3584_v23 = vld [vmem:[%s3830_s6 + $0x18] sm:$0xff] }
0x2081   :  { %1475 = vmatpush.msra.mxu2 %v3584_v23  ;;  %1547 = vmatpush.msra.mxu3 %v3584_v23 }
0x2082   :  { %3010 = vtanh.f32 %v1238_v24  ;;  %v2839_v26 = vmul.f32 -1.442695, %v1238_v24  ;;  %v3589_v24 = vld [vmem:[%s3830_s6 + $0x10] sm:$0xff]  ;;  %2052 = vmatpush.msra.mxu0 %v3584_v23  ;;  %2125 = vmatpush.msra.mxu1 %v3584_v23 }
0x2083   :  { %1476 = vmatpush.msra.mxu2 %v3589_v24  ;;  %1548 = vmatpush.msra.mxu3 %v3589_v24 }
0x2084   :  { %3012 = vpow2.f32 %v2839_v26  ;;  %v3605_v26 = vld [vmem:[%s3830_s6] sm:$0xff]  ;;  %2053 = vmatpush.msra.mxu0 %v3589_v24  ;;  %2126 = vmatpush.msra.mxu1 %v3589_v24 }
0x2088   :  { %v3011_v25 = vpop.eup %3010 }
0x2089   :  { %1262 = vrot.lane.b32.xlu2 %v3011_v25, %s3245_s0  ;;  %v3596_v25 = vld [vmem:[%s3830_s6 + $0x8] sm:$0xff] }
0x208a   :  { %v3013_v27 = vpop.eup %3012  ;;  %1477 = vmatpush.msra.mxu2 %v3596_v25  ;;  %1549 = vmatpush.msra.mxu3 %v3596_v25 }
0x208b   :  { %v1243_v28 = vadd.f32 1.0, %v3013_v27  ;;  %2054 = vmatpush.msra.mxu0 %v3596_v25  ;;  %2127 = vmatpush.msra.mxu1 %v3596_v25 }
0x208c   :  { %1478 = vmatpush.msra.mxu2 %v3605_v26  ;;  %1550 = vmatpush.msra.mxu3 %v3605_v26 }
0x208d   :  { %3014 = vrcp.f32 %v1243_v28  ;;  %v1255_v34 = vand.u32 2147483648, %v1243_v28  ;;  %vm1249_vm10 = vweird.f32 %v1243_v28  ;;  %v1253_v35 = vand.u32 2147483647, %v1243_v28  ;;  %1479 = vmatmul.f32.vlgmr.msra.gmra.mxu2 %v3244_v9  ;;  %2055 = vmatpush.msra.mxu0 %v3605_v26  ;;  %v1358_v9 = vld [vmem:[#allocation3 + $0x8] sm:$0xff] }
0x208e   :  { %1620 = vmatpush.msrb.mxu2 %v3584_v23  ;;  %2128 = vmatpush.msra.mxu1 %v3605_v26 }
0x208f   :  { %v1256_v37 = vor.u32 1.1754944e-38, %v1255_v34  ;;  %vm1254_vm12 = vcmp.eq.f32.partialorder %v1253_v35, 8.507059e+37 }
0x2090   :  { %1621 = vmatpush.msrb.mxu2 %v3589_v24 }
0x2092   :  { %1622 = vmatpush.msrb.mxu2 %v3596_v25 }
0x2093   :  { %v3015_v29 = vpop.eup %3014 }
0x2094   :  { %v1245_v30 = vmul.f32 %v3015_v29, %v1243_v28  ;;  %vm1250_vm9 = vweird.f32 %v3015_v29  ;;  %1623 = vmatpush.msrb.mxu2 %v3605_v26  ;;  %v1359_v28 = vld [vmem:[#allocation3 + $0x10] sm:$0xff] }
0x2095   :  { %vm1251_vm11 = vmor %vm1249_vm10, %vm1250_vm9 }
0x2096   :  { %v1246_v31 = vsub.f32 1.0, %v1245_v30  ;;  %1763 = vmatpush.msra.mxu2 %v3584_v23  ;;  %v1369_v30 = vld [vmem:[%s3829_s5] sm:$0x3] }
0x2098   :  { %v1247_v32 = vmul.f32 %v3015_v29, %v1246_v31  ;;  %1764 = vmatpush.msra.mxu2 %v3589_v24  ;;  %v1371_v31 = vperm.slane %v1369_v30, 0 }
0x209a   :  { %v1248_v33 = vadd.f32 %v3015_v29, %v1247_v32  ;;  %1765 = vmatpush.msra.mxu2 %v3596_v25  ;;  %v1372_v32 = vperm.slane %v1369_v30, 1 }
0x209c   :  { %v1252_v36 = vsel %vm1251_vm11, %v3015_v29, %v1248_v33  ;;  %1766 = vmatpush.msra.mxu2 %v3605_v26 }
0x209d   :  { %v1257_v39 = vsel %vm1254_vm12, %v1256_v37, %v1252_v36 }
0x209e   :  { %v1260_v41 = vmul.f32 %v1257_v39, %v1196_v7 }
0x20e3   :  { %v1263_v38 = vpop.permute.xlu2 %1262 }
0x20e4   :  { %v1265_v40 = vmul.f32 %v1263_v38, %v1257_v39 }
0x20e6   :  { %1267 = vrot.lane.b32.xlu0 %v1265_v40, %s3246_s2 }
0x2158   :  { %v1268_v42 = vpop.permute.xlu0 %1267 }
0x2159   :  { %v1270_v43 = vadd.f32 %v1268_v42, %v1260_v41 }
0x215b   :  { %3016 = vtanh.f32 %v1270_v43 }
0x2161   :  { %v3017_v44 = vpop.eup %3016 }
0x2162   :  { %1273 = vrot.lane.b32.xlu1 %v3017_v44, %s3245_s0 }
0x21d4   :  { %v1274_v45 = vpop.permute.xlu1 %1273 }
0x21d5   :  { %v1276_v46 = vmul.f32 %v1274_v45, %v1257_v39 }
0x21d7   :  { %1278 = vrot.lane.b32.xlu2 %v1276_v46, %s3246_s2 }
0x2231   :  { %v1279_v47 = vpop.permute.xlu2 %1278 }
0x2232   :  { %1281 = vst.msk [vmem:[#allocation3 + $0x1c] sm:$0x3] %vm252_vm6, %v1279_v47  ;;  %2840 = vmatmul.msk.f32.vlgmr.msrb.gmra.mxu3 %vm187_vm7, %v1279_v47 }
0x2233   :  { %1282 = vst.msk [vmem:[#allocation3 + $0x2] sm:$0x3] %vm254_vm8, %v1279_v47  ;;  %1693 = vmatpush.msrb.mxu3 %v3584_v23 }
0x2235   :  { %1694 = vmatpush.msrb.mxu3 %v3589_v24 }
0x2237   :  { %1695 = vmatpush.msrb.mxu3 %v3596_v25 }
0x2239   :  { %1696 = vmatpush.msrb.mxu3 %v3605_v26 }
0x22b5   :  { %v1311_v53 = vpop.f32.mrf.mxu3 }
0x22b6   :  { %v1312_v54 = vadd.f32 %v1311_v53, %v1290_v52  ;;  %v1480_v52 = vpop.f32.mrf.mxu2 }
0x22b8   :  { %3018 = vtanh.f32 %v1312_v54  ;;  %v2841_v56 = vmul.f32 -1.442695, %v1312_v54 }
0x22ba   :  { %3020 = vpow2.f32 %v2841_v56 }
0x22be   :  { %v3019_v55 = vpop.eup %3018 }
0x22bf   :  { %1336 = vrot.lane.b32.xlu0 %v3019_v55, %s3245_s0 }
0x22c0   :  { %v3021_v57 = vpop.eup %3020 }
0x22c1   :  { %v1317_v58 = vadd.f32 1.0, %v3021_v57 }
0x22c3   :  { %3022 = vrcp.f32 %v1317_v58  ;;  %v1329_v0 = vand.u32 2147483648, %v1317_v58  ;;  %vm1323_vm14 = vweird.f32 %v1317_v58  ;;  %v1327_v1 = vand.u32 2147483647, %v1317_v58 }
0x22c5   :  { %v1330_v3 = vor.u32 1.1754944e-38, %v1329_v0  ;;  %vm1328_vm0 = vcmp.eq.f32.partialorder %v1327_v1, 8.507059e+37 }
0x22c9   :  { %v3023_v59 = vpop.eup %3022 }
0x22ca   :  { %v1319_v60 = vmul.f32 %v3023_v59, %v1317_v58  ;;  %vm1324_vm13 = vweird.f32 %v3023_v59 }
0x22cb   :  { %vm1325_vm15 = vmor %vm1323_vm14, %vm1324_vm13 }
0x22cc   :  { %v1320_v61 = vsub.f32 1.0, %v1319_v60 }
0x22ce   :  { %v1321_v62 = vmul.f32 %v3023_v59, %v1320_v61 }
0x22d0   :  { %v1322_v63 = vadd.f32 %v3023_v59, %v1321_v62 }
0x22d2   :  { %v1326_v2 = vsel %vm1325_vm15, %v3023_v59, %v1322_v63 }
0x22d3   :  { %v1331_v10 = vsel %vm1328_vm0, %v1330_v3, %v1326_v2 }
0x22d4   :  { %v1334_v4 = vmul.f32 %v1331_v10, %v1270_v43 }
0x2331   :  { %v1337_v8 = vpop.permute.xlu0 %1336 }
0x2332   :  { %v1339_v11 = vmul.f32 %v1337_v8, %v1331_v10 }
0x2334   :  { %1341 = vrot.lane.b32.xlu1 %v1339_v11, %s3246_s2 }
0x23a6   :  { %v1342_v12 = vpop.permute.xlu1 %1341 }
0x23a7   :  { %v1344_v5 = vadd.f32 %v1342_v12, %v1334_v4 }
0x23a9   :  { %3024 = vtanh.f32 %v1344_v5 }
0x23af   :  { %v3025_v6 = vpop.eup %3024 }
0x23b0   :  { %1347 = vrot.lane.b32.xlu2 %v3025_v6, %s3245_s0 }
0x240a   :  { %v1348_v13 = vpop.permute.xlu2 %1347 }
0x240b   :  { %v1350_v7 = vmul.f32 %v1348_v13, %v1331_v10 }
0x240d   :  { %1352 = vrot.lane.b32.xlu0 %v1350_v7, %s3246_s2 }
0x247f   :  { %v1353_v22 = vpop.permute.xlu0 %1352 }
0x2480   :  { %1355 = vst.msk [vmem:[#allocation3 + $0x1e] sm:$0x3] %vm252_vm6, %v1353_v22 }
0x2481   :  { %1356 = vst.msk [vmem:[#allocation3] sm:$0x3] %vm254_vm8, %v1353_v22 }
0x2487   :  { %v1360_v29 = vld [vmem:[#allocation3 + $0x18] sm:$0xff] }
0x2488   :  { %v1357_v27 = vld [vmem:[#allocation3] sm:$0xff] }
0x2489   :  { %2842 = vmatmul.msk.f32.vlgmr.msrb.gmra.mxu0 %vm187_vm7, %v1357_v27  ;;  %2846 = vmatmul.msk.f32.vlgmr.msrb.gmra.mxu1 %vm187_vm7, %v1357_v27 }
0x248a   :  { %2341 = vmatpush.msrb.mxu0 %v3584_v23  ;;  %2414 = vmatpush.msrb.mxu1 %v3584_v23 }
0x248c   :  { %2342 = vmatpush.msrb.mxu0 %v3589_v24  ;;  %2415 = vmatpush.msrb.mxu1 %v3589_v24 }
0x248e   :  { %2343 = vmatpush.msrb.mxu0 %v3596_v25  ;;  %2416 = vmatpush.msrb.mxu1 %v3596_v25 }
0x2490   :  { %2344 = vmatpush.msrb.mxu0 %v3605_v26  ;;  %2417 = vmatpush.msrb.mxu1 %v3605_v26 }
0x2491   :  { %2843 = vmatmul.msk.f32.gmra.mxu0 %vm187_vm7, %v1358_v9  ;;  %2847 = vmatmul.msk.f32.gmra.mxu1 %vm187_vm7, %v1358_v9 }
0x2499   :  { %2844 = vmatmul.msk.f32.gmra.mxu0 %vm187_vm7, %v1359_v28  ;;  %2848 = vmatmul.msk.f32.gmra.mxu1 %vm187_vm7, %v1359_v28 }
0x24a1   :  { %2845 = vmatmul.msk.f32.gmra.mxu0 %vm187_vm7, %v1360_v29  ;;  %2849 = vmatmul.msk.f32.gmra.mxu1 %vm187_vm7, %v1360_v29 }
0x2506   :  { %v1404_v33 = vpop.f32.mrf.mxu0  ;;  %v1433_v34 = vpop.f32.mrf.mxu1 }
0x2507   :  { %v1405_v35 = vadd.f32 %v1404_v33, %v1371_v31  ;;  %v1434_v36 = vadd.f32 %v1433_v34, %v1372_v32 }
0x2509   :  { %1445 = vst [vmem:[#allocation4] sm:$0xff] %v1405_v35 }
0x250a   :  { %1446 = vst [vmem:[#allocation4 + $0x18] sm:$0xff] %v1434_v36 }
0x250e   :  { %v1407_v37 = vpop.f32.mrf.mxu0  ;;  %v1436_v38 = vpop.f32.mrf.mxu1 }
0x250f   :  { %v1408_v39 = vadd.f32 %v1407_v37, %v1371_v31  ;;  %v1437_v40 = vadd.f32 %v1436_v38, %v1372_v32 }
0x2510   :  { %v1457_v51 = vld [vmem:[#allocation4] sm:$0x3]  ;;  %v1521_v17 = vld [vmem:[#allocation4] sm:$0xc] }
0x2511   :  { %1447 = vst [vmem:[#allocation4 + $0x10] sm:$0xff] %v1408_v39 }
0x2512   :  { %1448 = vst [vmem:[#allocation4 + $0x20] sm:$0xff] %v1437_v40 }
0x2516   :  { %v1410_v41 = vpop.f32.mrf.mxu0  ;;  %v1439_v42 = vpop.f32.mrf.mxu1 }
0x2517   :  { %v1411_v43 = vadd.f32 %v1410_v41, %v1371_v31  ;;  %v1440_v44 = vadd.f32 %v1439_v42, %v1372_v32 }
0x2519   :  { %1449 = vst [vmem:[#allocation4 + $0x28] sm:$0xff] %v1411_v43 }
0x251a   :  { %1450 = vst [vmem:[#allocation4 + $0x8] sm:$0xff] %v1440_v44 }
0x251e   :  { %v1413_v45 = vpop.f32.mrf.mxu0  ;;  %v1442_v46 = vpop.f32.mrf.mxu1 }
0x251f   :  { %v1414_v47 = vadd.f32 %v1413_v45, %v1371_v31  ;;  %v1443_v48 = vadd.f32 %v1442_v46, %v1372_v32 }
0x2521   :  { %1451 = vst [vmem:[#allocation4 + $0x30] sm:$0xff] %v1414_v47 }
0x2522   :  { %1452 = vst [vmem:[#allocation4 + $0x38] sm:$0xff] %v1443_v48 }
0x2529   :  { %v1458_v49 = vld [vmem:[#allocation4 + $0x38] sm:$0xc0]  ;;  %v1522_v15 = vld [vmem:[#allocation4 + $0x38] sm:$0x30]  ;;  %v1595_v48 = vld [vmem:[#allocation4 + $0x38] sm:$0xc] }
0x252a   :  { %v1460_v50 = vrot.slane %v1458_v49, 6  ;;  %v1524_v16 = vrot.slane %v1522_v15, 2  ;;  %v1597_v49 = vrot.slane %v1595_v48, 6 }
0x252c   :  { %v1462_v53 = vadd.f32 %v1460_v50, %v1457_v51  ;;  %v1526_v18 = vadd.f32 %v1524_v16, %v1521_v17  ;;  %v1594_v50 = vld [vmem:[#allocation4] sm:$0x30] }
0x252d   :  { %v1599_v51 = vadd.f32 %v1597_v49, %v1594_v50 }
0x252e   :  { %v1481_v54 = vadd.f32 %v1480_v52, %v1462_v53  ;;  %v1531_v19 = vrot.slane %v1526_v18, 2 }
0x252f   :  { %v1604_v52 = vrot.slane %v1599_v51, 4 }
0x2530   :  { %3026 = vtanh.f32 %v1481_v54  ;;  %v2850_v56 = vmul.f32 -1.442695, %v1481_v54 }
0x2532   :  { %3028 = vpow2.f32 %v2850_v56 }
0x2536   :  { %v3027_v55 = vpop.eup %3026 }
0x2537   :  { %1505 = vrot.lane.b32.xlu1 %v3027_v55, %s3245_s0 }
0x2538   :  { %v3029_v57 = vpop.eup %3028 }
0x2539   :  { %v1486_v58 = vadd.f32 1.0, %v3029_v57 }
0x253b   :  { %3030 = vrcp.f32 %v1486_v58  ;;  %v1498_v0 = vand.u32 2147483648, %v1486_v58  ;;  %vm1492_vm8 = vweird.f32 %v1486_v58  ;;  %v1496_v1 = vand.u32 2147483647, %v1486_v58 }
0x253d   :  { %v1499_v3 = vor.u32 1.1754944e-38, %v1498_v0  ;;  %vm1497_vm2 = vcmp.eq.f32.partialorder %v1496_v1, 8.507059e+37 }
0x2541   :  { %v3031_v59 = vpop.eup %3030 }
0x2542   :  { %v1488_v60 = vmul.f32 %v3031_v59, %v1486_v58  ;;  %vm1493_vm6 = vweird.f32 %v3031_v59 }
0x2543   :  { %vm1494_vm1 = vmor %vm1492_vm8, %vm1493_vm6 }
0x2544   :  { %v1489_v61 = vsub.f32 1.0, %v1488_v60 }
0x2546   :  { %v1490_v62 = vmul.f32 %v3031_v59, %v1489_v61 }
0x2548   :  { %v1491_v63 = vadd.f32 %v3031_v59, %v1490_v62 }
0x254a   :  { %v1495_v2 = vsel %vm1494_vm1, %v3031_v59, %v1491_v63 }
0x254b   :  { %v1500_v10 = vsel %vm1497_vm2, %v1499_v3, %v1495_v2 }
0x254c   :  { %v1503_v4 = vmul.f32 0.0, %v1500_v10 }
0x25a9   :  { %v1506_v8 = vpop.permute.xlu1 %1505 }
0x25aa   :  { %v1508_v11 = vmul.f32 %v1506_v8, %v1500_v10 }
0x25ac   :  { %1510 = vrot.lane.b32.xlu2 %v1508_v11, %s3246_s2 }
0x2606   :  { %v1511_v12 = vpop.permute.xlu2 %1510 }
0x2607   :  { %v1513_v5 = vadd.f32 %v1511_v12, %v1503_v4 }
0x2609   :  { %3032 = vtanh.f32 %v1513_v5 }
0x260f   :  { %v3033_v6 = vpop.eup %3032 }
0x2610   :  { %1516 = vrot.lane.b32.xlu0 %v3033_v6, %s3245_s0 }
0x2682   :  { %v1517_v13 = vpop.permute.xlu0 %1516 }
0x2683   :  { %v3652_v7 = vmul.f32 %v1517_v13, %v1500_v10 }
0x2685   :  { %1528 = vrot.lane.b32.xlu1 %v3652_v7, %s3246_s2 }
0x26f7   :  { %v1529_v14 = vpop.permute.xlu1 %1528 }
0x26f8   :  { %2851 = vmatmul.msk.f32.vlgmr.msra.gmra.mxu3 %vm187_vm7, %v1529_v14 }
0x26f9   :  { %1836 = vmatpush.msra.mxu3 %v3584_v23 }
0x26fb   :  { %1837 = vmatpush.msra.mxu3 %v3589_v24 }
0x26fd   :  { %1838 = vmatpush.msra.mxu3 %v3596_v25 }
0x26ff   :  { %1839 = vmatpush.msra.mxu3 %v3605_v26 }
0x277b   :  { %v1552_v20 = vpop.f32.mrf.mxu3 }
0x277c   :  { %v1553_v21 = vadd.f32 %v1552_v20, %v1531_v19  ;;  %v1668_v20 = vld [vmem:[#allocation4 + $0x38] sm:$0x3] }
0x277e   :  { %3034 = vtanh.f32 %v1553_v21  ;;  %v2852_v27 = vmul.f32 -1.442695, %v1553_v21  ;;  %v1670_v21 = vrot.slane %v1668_v20, 2 }
0x2780   :  { %3036 = vpow2.f32 %v2852_v27 }
0x2784   :  { %v3035_v22 = vpop.eup %3034 }
0x2785   :  { %1577 = vrot.lane.b32.xlu2 %v3035_v22, %s3245_s0 }
0x2786   :  { %v3037_v9 = vpop.eup %3036 }
0x2787   :  { %v1558_v28 = vadd.f32 1.0, %v3037_v9 }
0x2789   :  { %3038 = vrcp.f32 %v1558_v28  ;;  %v1570_v34 = vand.u32 2147483648, %v1558_v28  ;;  %vm1564_vm4 = vweird.f32 %v1558_v28  ;;  %v1568_v35 = vand.u32 2147483647, %v1558_v28 }
0x278b   :  { %v1571_v37 = vor.u32 1.1754944e-38, %v1570_v34  ;;  %vm1569_vm9 = vcmp.eq.f32.partialorder %v1568_v35, 8.507059e+37 }
0x278f   :  { %v3039_v29 = vpop.eup %3038 }
0x2790   :  { %v1560_v30 = vmul.f32 %v3039_v29, %v1558_v28  ;;  %vm1565_vm3 = vweird.f32 %v3039_v29 }
0x2791   :  { %vm1566_vm5 = vmor %vm1564_vm4, %vm1565_vm3 }
0x2792   :  { %v1561_v31 = vsub.f32 1.0, %v1560_v30 }
0x2794   :  { %v1562_v32 = vmul.f32 %v3039_v29, %v1561_v31 }
0x2796   :  { %v1563_v33 = vadd.f32 %v3039_v29, %v1562_v32 }
0x2798   :  { %v1567_v36 = vsel %vm1566_vm5, %v3039_v29, %v1563_v33 }
0x2799   :  { %v1572_v39 = vsel %vm1569_vm9, %v1571_v37, %v1567_v36 }
0x279a   :  { %v1575_v41 = vmul.f32 %v1572_v39, %v1513_v5 }
0x27df   :  { %v1578_v38 = vpop.permute.xlu2 %1577 }
0x27e0   :  { %v1580_v40 = vmul.f32 %v1578_v38, %v1572_v39 }
0x27e2   :  { %1582 = vrot.lane.b32.xlu0 %v1580_v40, %s3246_s2 }
0x2854   :  { %v1583_v42 = vpop.permute.xlu0 %1582 }
0x2855   :  { %v1585_v43 = vadd.f32 %v1583_v42, %v1575_v41 }
0x2857   :  { %3040 = vtanh.f32 %v1585_v43 }
0x285d   :  { %v3041_v44 = vpop.eup %3040 }
0x285e   :  { %1588 = vrot.lane.b32.xlu1 %v3041_v44, %s3245_s0 }
0x28d0   :  { %v1589_v45 = vpop.permute.xlu1 %1588 }
0x28d1   :  { %v1591_v46 = vmul.f32 %v1589_v45, %v1572_v39 }
0x28d3   :  { %1601 = vrot.lane.b32.xlu2 %v1591_v46, %s3246_s2  ;;  %v1592_v14 = vadd.f32 %v1591_v46, %v3652_v7  ;;  %v1593_v15 = vmax.f32 %v3652_v7, %v1591_v46  ;;  %v1667_v7 = vld [vmem:[#allocation4] sm:$0xc0] }
0x28d4   :  { %v1672_v22 = vadd.f32 %v1670_v21, %v1667_v7 }
0x28d6   :  { %v1677_v27 = vrot.slane %v1672_v22, 6  ;;  %v1811_v22 = vld [vmem:[#allocation4 + $0x8] sm:$0x30] }
0x292d   :  { %v1602_v47 = vpop.permute.xlu2 %1601 }
0x292e   :  { %2853 = vmatmul.msk.f32.vlgmr.msrb.gmra.mxu2 %vm187_vm7, %v1602_v47 }
0x292f   :  { %1909 = vmatpush.msrb.mxu2 %v3584_v23 }
0x2931   :  { %1910 = vmatpush.msrb.mxu2 %v3589_v24 }
0x2933   :  { %1911 = vmatpush.msrb.mxu2 %v3596_v25 }
0x2935   :  { %1912 = vmatpush.msrb.mxu2 %v3605_v26 }
0x29b1   :  { %v1625_v53 = vpop.f32.mrf.mxu2 }
0x29b2   :  { %v1626_v54 = vadd.f32 %v1625_v53, %v1604_v52 }
0x29b4   :  { %3042 = vtanh.f32 %v1626_v54  ;;  %v2854_v56 = vmul.f32 -1.442695, %v1626_v54  ;;  %v1741_v54 = vld [vmem:[#allocation4 + $0x8] sm:$0xc0] }
0x29b6   :  { %3044 = vpow2.f32 %v2854_v56  ;;  %v1740_v56 = vld [vmem:[#allocation4 + $0x10] sm:$0x3] }
0x29ba   :  { %v3043_v55 = vpop.eup %3042 }
0x29bb   :  { %1650 = vrot.lane.b32.xlu0 %v3043_v55, %s3245_s0  ;;  %v1743_v55 = vrot.slane %v1741_v54, 6 }
0x29bc   :  { %v3045_v57 = vpop.eup %3044 }
0x29bd   :  { %v1631_v58 = vadd.f32 1.0, %v3045_v57  ;;  %v1745_v57 = vadd.f32 %v1743_v55, %v1740_v56 }
0x29bf   :  { %3046 = vrcp.f32 %v1631_v58  ;;  %v1643_v0 = vand.u32 2147483648, %v1631_v58  ;;  %vm1637_vm11 = vweird.f32 %v1631_v58  ;;  %v1641_v1 = vand.u32 2147483647, %v1631_v58 }
0x29c1   :  { %v1644_v3 = vor.u32 1.1754944e-38, %v1643_v0  ;;  %vm1642_vm13 = vcmp.eq.f32.partialorder %v1641_v1, 8.507059e+37 }
0x29c5   :  { %v3047_v59 = vpop.eup %3046 }
0x29c6   :  { %v1633_v60 = vmul.f32 %v3047_v59, %v1631_v58  ;;  %vm1638_vm10 = vweird.f32 %v3047_v59 }
0x29c7   :  { %vm1639_vm12 = vmor %vm1637_vm11, %vm1638_vm10 }
0x29c8   :  { %v1634_v61 = vsub.f32 1.0, %v1633_v60 }
0x29ca   :  { %v1635_v62 = vmul.f32 %v3047_v59, %v1634_v61 }
0x29cc   :  { %v1636_v63 = vadd.f32 %v3047_v59, %v1635_v62 }
0x29ce   :  { %v1640_v2 = vsel %vm1639_vm12, %v3047_v59, %v1636_v63 }
0x29cf   :  { %v1645_v10 = vsel %vm1642_vm13, %v1644_v3, %v1640_v2 }
0x29d0   :  { %v1648_v4 = vmul.f32 %v1645_v10, %v1585_v43 }
0x2a2d   :  { %v1651_v8 = vpop.permute.xlu0 %1650 }
0x2a2e   :  { %v1653_v11 = vmul.f32 %v1651_v8, %v1645_v10 }
0x2a30   :  { %1655 = vrot.lane.b32.xlu1 %v1653_v11, %s3246_s2 }
0x2aa2   :  { %v1656_v12 = vpop.permute.xlu1 %1655 }
0x2aa3   :  { %v1658_v5 = vadd.f32 %v1656_v12, %v1648_v4 }
0x2aa5   :  { %3048 = vtanh.f32 %v1658_v5 }
0x2aab   :  { %v3049_v6 = vpop.eup %3048 }
0x2aac   :  { %1661 = vrot.lane.b32.xlu2 %v3049_v6, %s3245_s0 }
0x2b06   :  { %v1662_v13 = vpop.permute.xlu2 %1661 }
0x2b07   :  { %v1664_v16 = vmul.f32 %v1662_v13, %v1645_v10 }
0x2b09   :  { %v1665_v17 = vadd.f32 %v1664_v16, %v1592_v14  ;;  %v3675_v18 = vmax.f32 %v1593_v15, %v1664_v16  ;;  %1674 = vrot.lane.b32.xlu0 %v1664_v16, %s3246_s2 }
0x2b7b   :  { %v1675_v19 = vpop.permute.xlu0 %1674 }
0x2b7c   :  { %2855 = vmatmul.msk.f32.vlgmr.msrb.gmra.mxu3 %vm187_vm7, %v1675_v19 }
0x2b7d   :  { %1982 = vmatpush.msrb.mxu3 %v3584_v23 }
0x2b7f   :  { %1983 = vmatpush.msrb.mxu3 %v3589_v24 }
0x2b81   :  { %1984 = vmatpush.msrb.mxu3 %v3596_v25 }
0x2b83   :  { %1985 = vmatpush.msrb.mxu3 %v3605_v26 }
0x2bff   :  { %v1698_v9 = vpop.f32.mrf.mxu3 }
0x2c00   :  { %v1699_v28 = vadd.f32 %v1698_v9, %v1677_v27  ;;  %v1813_v27 = vrot.slane %v1811_v22, 2  ;;  %v1810_v9 = vld [vmem:[#allocation4 + $0x10] sm:$0xc] }
0x2c02   :  { %3050 = vtanh.f32 %v1699_v28  ;;  %v2856_v30 = vmul.f32 -1.442695, %v1699_v28  ;;  %v1815_v28 = vadd.f32 %v1813_v27, %v1810_v9 }
0x2c04   :  { %3052 = vpow2.f32 %v2856_v30 }
0x2c08   :  { %v3051_v29 = vpop.eup %3050 }
0x2c09   :  { %1723 = vrot.lane.b32.xlu1 %v3051_v29, %s3245_s0  ;;  %v1820_v29 = vrot.slane %v1815_v28, 2 }
0x2c0a   :  { %v3053_v31 = vpop.eup %3052 }
0x2c0b   :  { %v1704_v32 = vadd.f32 1.0, %v3053_v31 }
0x2c0d   :  { %3054 = vrcp.f32 %v1704_v32  ;;  %v1716_v38 = vand.u32 2147483648, %v1704_v32  ;;  %vm1710_vm15 = vweird.f32 %v1704_v32  ;;  %v1714_v39 = vand.u32 2147483647, %v1704_v32 }
0x2c0f   :  { %v1717_v41 = vor.u32 1.1754944e-38, %v1716_v38  ;;  %vm1715_vm6 = vcmp.eq.f32.partialorder %v1714_v39, 8.507059e+37 }
0x2c13   :  { %v3055_v33 = vpop.eup %3054 }
0x2c14   :  { %v1706_v34 = vmul.f32 %v3055_v33, %v1704_v32  ;;  %vm1711_vm14 = vweird.f32 %v3055_v33 }
0x2c15   :  { %vm1712_vm0 = vmor %vm1710_vm15, %vm1711_vm14 }
0x2c16   :  { %v1707_v35 = vsub.f32 1.0, %v1706_v34 }
0x2c18   :  { %v1708_v36 = vmul.f32 %v3055_v33, %v1707_v35 }
0x2c1a   :  { %v1709_v37 = vadd.f32 %v3055_v33, %v1708_v36 }
0x2c1c   :  { %v1713_v40 = vsel %vm1712_vm0, %v3055_v33, %v1709_v37 }
0x2c1d   :  { %v1718_v43 = vsel %vm1715_vm6, %v1717_v41, %v1713_v40 }
0x2c1e   :  { %v1721_v45 = vmul.f32 %v1718_v43, %v1658_v5 }
0x2c7b   :  { %v1724_v42 = vpop.permute.xlu1 %1723 }
0x2c7c   :  { %v1726_v44 = vmul.f32 %v1724_v42, %v1718_v43 }
0x2c7e   :  { %1728 = vrot.lane.b32.xlu2 %v1726_v44, %s3246_s2 }
0x2cd8   :  { %v1729_v46 = vpop.permute.xlu2 %1728 }
0x2cd9   :  { %v1731_v47 = vadd.f32 %v1729_v46, %v1721_v45 }
0x2cdb   :  { %3056 = vtanh.f32 %v1731_v47 }
0x2ce1   :  { %v3057_v48 = vpop.eup %3056 }
0x2ce2   :  { %1734 = vrot.lane.b32.xlu0 %v3057_v48, %s3245_s0 }
0x2d54   :  { %v1735_v49 = vpop.permute.xlu0 %1734 }
0x2d55   :  { %v1737_v50 = vmul.f32 %v1735_v49, %v1718_v43 }
0x2d57   :  { %v1738_v51 = vadd.f32 %v1737_v50, %v1665_v17  ;;  %v1739_v52 = vmax.f32 %v3675_v18, %v1737_v50  ;;  %1747 = vrot.lane.b32.xlu1 %v1737_v50, %s3246_s2 }
0x2dc9   :  { %v1748_v53 = vpop.permute.xlu1 %1747 }
0x2dca   :  { %2857 = vmatmul.msk.f32.vlgmr.msra.gmra.mxu2 %vm187_vm7, %v1748_v53 }
0x2dcb   :  { %2198 = vmatpush.msra.mxu2 %v3584_v23 }
0x2dcd   :  { %2199 = vmatpush.msra.mxu2 %v3589_v24 }
0x2dcf   :  { %2200 = vmatpush.msra.mxu2 %v3596_v25 }
0x2dd1   :  { %2201 = vmatpush.msra.mxu2 %v3605_v26 }
0x2e4d   :  { %v1768_v58 = vpop.f32.mrf.mxu2 }
0x2e4e   :  { %v1769_v59 = vadd.f32 %v1768_v58, %v1745_v57  ;;  %v1884_v57 = vld [vmem:[#allocation4 + $0x8] sm:$0xc] }
0x2e4f   :  { %v1886_v58 = vrot.slane %v1884_v57, 6  ;;  %v2030_v57 = vld [vmem:[#allocation4 + $0x20] sm:$0xc0] }
0x2e50   :  { %3058 = vtanh.f32 %v1769_v59  ;;  %v2858_v61 = vmul.f32 -1.442695, %v1769_v59  ;;  %v1883_v59 = vld [vmem:[#allocation4 + $0x10] sm:$0x30] }
0x2e52   :  { %3060 = vpow2.f32 %v2858_v61 }
0x2e56   :  { %v3059_v60 = vpop.eup %3058 }
0x2e57   :  { %1793 = vrot.lane.b32.xlu2 %v3059_v60, %s3245_s0  ;;  %v1888_v60 = vadd.f32 %v1886_v58, %v1883_v59  ;;  %v2029_v58 = vld [vmem:[#allocation4 + $0x28] sm:$0x3]  ;;  %v2032_v59 = vrot.slane %v2030_v57, 6  ;;  %v2172_v57 = vld [vmem:[#allocation4 + $0x28] sm:$0x30] }
0x2e58   :  { %v3061_v62 = vpop.eup %3060 }
0x2e59   :  { %v1774_v63 = vadd.f32 1.0, %v3061_v62  ;;  %v1893_v61 = vrot.slane %v1888_v60, 4  ;;  %v2034_v60 = vadd.f32 %v2032_v59, %v2029_v58 }
0x2e5b   :  { %3062 = vrcp.f32 %v1774_v63  ;;  %v1786_v10 = vand.u32 2147483648, %v1774_v63  ;;  %vm1780_vm1 = vweird.f32 %v1774_v63  ;;  %v1784_v11 = vand.u32 2147483647, %v1774_v63 }
0x2e5d   :  { %v1787_v12 = vor.u32 1.1754944e-38, %v1786_v10  ;;  %vm1785_vm3 = vcmp.eq.f32.partialorder %v1784_v11, 8.507059e+37 }
0x2e61   :  { %v3063_v0 = vpop.eup %3062 }
0x2e62   :  { %v1776_v1 = vmul.f32 %v3063_v0, %v1774_v63  ;;  %vm1781_vm8 = vweird.f32 %v3063_v0 }
0x2e63   :  { %vm1782_vm2 = vmor %vm1780_vm1, %vm1781_vm8 }
0x2e64   :  { %v1777_v2 = vsub.f32 1.0, %v1776_v1 }
0x2e66   :  { %v1778_v3 = vmul.f32 %v3063_v0, %v1777_v2 }
0x2e68   :  { %v1779_v8 = vadd.f32 %v3063_v0, %v1778_v3 }
0x2e6a   :  { %v1783_v4 = vsel %vm1782_vm2, %v3063_v0, %v1779_v8 }
0x2e6b   :  { %v1788_v6 = vsel %vm1785_vm3, %v1787_v12, %v1783_v4 }
0x2e6c   :  { %v1791_v14 = vmul.f32 %v1788_v6, %v1731_v47 }
0x2eb1   :  { %v1794_v5 = vpop.permute.xlu2 %1793 }
0x2eb2   :  { %v1796_v13 = vmul.f32 %v1794_v5, %v1788_v6 }
0x2eb4   :  { %1798 = vrot.lane.b32.xlu0 %v1796_v13, %s3246_s2 }
0x2f26   :  { %v1799_v15 = vpop.permute.xlu0 %1798 }
0x2f27   :  { %v1801_v16 = vadd.f32 %v1799_v15, %v1791_v14 }
0x2f29   :  { %3064 = vtanh.f32 %v1801_v16 }
0x2f2f   :  { %v3065_v17 = vpop.eup %3064 }
0x2f30   :  { %1804 = vrot.lane.b32.xlu1 %v3065_v17, %s3245_s0 }
0x2fa2   :  { %v1805_v18 = vpop.permute.xlu1 %1804 }
0x2fa3   :  { %v1807_v19 = vmul.f32 %v1805_v18, %v1788_v6 }
0x2fa5   :  { %v1808_v20 = vadd.f32 %v1807_v19, %v1738_v51  ;;  %v3696_v21 = vmax.f32 %v1739_v52, %v1807_v19  ;;  %1817 = vrot.lane.b32.xlu2 %v1807_v19, %s3246_s2 }
0x2fff   :  { %v1818_v7 = vpop.permute.xlu2 %1817 }
0x3000   :  { %2859 = vmatmul.msk.f32.vlgmr.msra.gmra.mxu3 %vm187_vm7, %v1818_v7 }
0x3001   :  { %2271 = vmatpush.msra.mxu3 %v3584_v23 }
0x3003   :  { %2272 = vmatpush.msra.mxu3 %v3589_v24 }
0x3005   :  { %2273 = vmatpush.msra.mxu3 %v3596_v25 }
0x3007   :  { %2274 = vmatpush.msra.mxu3 %v3605_v26 }
0x3083   :  { %v1841_v30 = vpop.f32.mrf.mxu3 }
0x3084   :  { %v1842_v31 = vadd.f32 %v1841_v30, %v1820_v29  ;;  %v1957_v29 = vld [vmem:[#allocation4 + $0x8] sm:$0x3] }
0x3085   :  { %v1959_v30 = vrot.slane %v1957_v29, 2  ;;  %v2099_v29 = vld [vmem:[#allocation4 + $0x28] sm:$0xc] }
0x3086   :  { %3066 = vtanh.f32 %v1842_v31  ;;  %v2860_v33 = vmul.f32 -1.442695, %v1842_v31  ;;  %v1956_v31 = vld [vmem:[#allocation4 + $0x10] sm:$0xc0] }
0x3088   :  { %3068 = vpow2.f32 %v2860_v33 }
0x308c   :  { %v3067_v32 = vpop.eup %3066 }
0x308d   :  { %1866 = vrot.lane.b32.xlu0 %v3067_v32, %s3245_s0  ;;  %v1961_v32 = vadd.f32 %v1959_v30, %v1956_v31 }
0x308e   :  { %v3069_v34 = vpop.eup %3068 }
0x308f   :  { %v1847_v35 = vadd.f32 1.0, %v3069_v34  ;;  %v1966_v33 = vrot.slane %v1961_v32, 6 }
0x3091   :  { %3070 = vrcp.f32 %v1847_v35  ;;  %v1859_v41 = vand.u32 2147483648, %v1847_v35  ;;  %vm1853_vm5 = vweird.f32 %v1847_v35  ;;  %v1857_v42 = vand.u32 2147483647, %v1847_v35 }
0x3093   :  { %v1860_v44 = vor.u32 1.1754944e-38, %v1859_v41  ;;  %vm1858_vm10 = vcmp.eq.f32.partialorder %v1857_v42, 8.507059e+37 }
0x3097   :  { %v3071_v36 = vpop.eup %3070 }
0x3098   :  { %v1849_v37 = vmul.f32 %v3071_v36, %v1847_v35  ;;  %vm1854_vm4 = vweird.f32 %v3071_v36 }
0x3099   :  { %vm1855_vm9 = vmor %vm1853_vm5, %vm1854_vm4 }
0x309a   :  { %v1850_v38 = vsub.f32 1.0, %v1849_v37 }
0x309c   :  { %v1851_v39 = vmul.f32 %v3071_v36, %v1850_v38 }
0x309e   :  { %v1852_v40 = vadd.f32 %v3071_v36, %v1851_v39 }
0x30a0   :  { %v1856_v43 = vsel %vm1855_vm9, %v3071_v36, %v1852_v40 }
0x30a1   :  { %v1861_v46 = vsel %vm1858_vm10, %v1860_v44, %v1856_v43 }
0x30a2   :  { %v1864_v48 = vmul.f32 %v1861_v46, %v1801_v16 }
0x30ff   :  { %v1867_v45 = vpop.permute.xlu0 %1866 }
0x3100   :  { %v1869_v47 = vmul.f32 %v1867_v45, %v1861_v46 }
0x3102   :  { %1871 = vrot.lane.b32.xlu1 %v1869_v47, %s3246_s2 }
0x3174   :  { %v1872_v49 = vpop.permute.xlu1 %1871 }
0x3175   :  { %v1874_v50 = vadd.f32 %v1872_v49, %v1864_v48 }
0x3177   :  { %3072 = vtanh.f32 %v1874_v50 }
0x317d   :  { %v3073_v51 = vpop.eup %3072 }
0x317e   :  { %1877 = vrot.lane.b32.xlu2 %v3073_v51, %s3245_s0 }
0x31d8   :  { %v1878_v52 = vpop.permute.xlu2 %1877 }
0x31d9   :  { %v1880_v53 = vmul.f32 %v1878_v52, %v1861_v46 }
0x31db   :  { %v1881_v54 = vadd.f32 %v1880_v53, %v1808_v20  ;;  %v1882_v55 = vmax.f32 %v3696_v21, %v1880_v53  ;;  %1890 = vrot.lane.b32.xlu0 %v1880_v53, %s3246_s2 }
0x324d   :  { %v1891_v56 = vpop.permute.xlu0 %1890 }
0x324e   :  { %2861 = vmatmul.msk.f32.vlgmr.msrb.gmra.mxu2 %vm187_vm7, %v1891_v56 }
0x324f   :  { %2487 = vmatpush.msrb.mxu2 %v3584_v23 }
0x3251   :  { %2488 = vmatpush.msrb.mxu2 %v3589_v24 }
0x3253   :  { %2489 = vmatpush.msrb.mxu2 %v3596_v25 }
0x3255   :  { %2490 = vmatpush.msrb.mxu2 %v3605_v26 }
0x32d1   :  { %v1914_v62 = vpop.f32.mrf.mxu2 }
0x32d2   :  { %v1915_v63 = vadd.f32 %v1914_v62, %v1893_v61 }
0x32d4   :  { %3074 = vtanh.f32 %v1915_v63  ;;  %v2862_v1 = vmul.f32 -1.442695, %v1915_v63 }
0x32d6   :  { %3076 = vpow2.f32 %v2862_v1 }
0x32da   :  { %v3075_v0 = vpop.eup %3074 }
0x32db   :  { %1939 = vrot.lane.b32.xlu1 %v3075_v0, %s3245_s0 }
0x32dc   :  { %v3077_v2 = vpop.eup %3076 }
0x32dd   :  { %v1920_v3 = vadd.f32 1.0, %v3077_v2 }
0x32df   :  { %3078 = vrcp.f32 %v1920_v3  ;;  %v1932_v5 = vand.u32 2147483648, %v1920_v3  ;;  %vm1926_vm12 = vweird.f32 %v1920_v3  ;;  %v1930_v6 = vand.u32 2147483647, %v1920_v3 }
0x32e1   :  { %v1933_v14 = vor.u32 1.1754944e-38, %v1932_v5  ;;  %vm1931_vm14 = vcmp.eq.f32.partialorder %v1930_v6, 8.507059e+37 }
0x32e5   :  { %v3079_v8 = vpop.eup %3078 }
0x32e6   :  { %v1922_v10 = vmul.f32 %v3079_v8, %v1920_v3  ;;  %vm1927_vm11 = vweird.f32 %v3079_v8 }
0x32e7   :  { %vm1928_vm13 = vmor %vm1926_vm12, %vm1927_vm11 }
0x32e8   :  { %v1923_v11 = vsub.f32 1.0, %v1922_v10 }
0x32ea   :  { %v1924_v4 = vmul.f32 %v3079_v8, %v1923_v11 }
0x32ec   :  { %v1925_v12 = vadd.f32 %v3079_v8, %v1924_v4 }
0x32ee   :  { %v1929_v13 = vsel %vm1928_vm13, %v3079_v8, %v1925_v12 }
0x32ef   :  { %v1934_v16 = vsel %vm1931_vm14, %v1933_v14, %v1929_v13 }
0x32f0   :  { %v1937_v18 = vmul.f32 %v1934_v16, %v1874_v50 }
0x334d   :  { %v1940_v15 = vpop.permute.xlu1 %1939 }
0x334e   :  { %v1942_v17 = vmul.f32 %v1940_v15, %v1934_v16 }
0x3350   :  { %1944 = vrot.lane.b32.xlu2 %v1942_v17, %s3246_s2 }
0x33aa   :  { %v1945_v19 = vpop.permute.xlu2 %1944 }
0x33ab   :  { %v1947_v20 = vadd.f32 %v1945_v19, %v1937_v18 }
0x33ad   :  { %3080 = vtanh.f32 %v1947_v20 }
0x33b3   :  { %v3081_v21 = vpop.eup %3080 }
0x33b4   :  { %1950 = vrot.lane.b32.xlu0 %v3081_v21, %s3245_s0 }
0x3426   :  { %v1951_v7 = vpop.permute.xlu0 %1950 }
0x3427   :  { %v1953_v22 = vmul.f32 %v1951_v7, %v1934_v16 }
0x3429   :  { %v1954_v27 = vadd.f32 %v1953_v22, %v1881_v54  ;;  %v3717_v9 = vmax.f32 %v1882_v55, %v1953_v22  ;;  %1963 = vrot.lane.b32.xlu1 %v1953_v22, %s3246_s2 }
0x349b   :  { %v1964_v28 = vpop.permute.xlu1 %1963 }
0x349c   :  { %2863 = vmatmul.msk.f32.vlgmr.msrb.gmra.mxu3 %vm187_vm7, %v1964_v28  ;;  %v2100_v28 = vld [vmem:[#allocation4 + $0x20] sm:$0x30] }
0x349d   :  { %2560 = vmatpush.msrb.mxu3 %v3584_v23  ;;  %v2102_v30 = vrot.slane %v2100_v28, 2  ;;  %v2246_v28 = vld [vmem:[#allocation4 + $0x20] sm:$0x3] }
0x349f   :  { %2561 = vmatpush.msrb.mxu3 %v3589_v24  ;;  %v2104_v31 = vadd.f32 %v2102_v30, %v2099_v29  ;;  %v2245_v29 = vld [vmem:[#allocation4 + $0x28] sm:$0xc0]  ;;  %v2248_v30 = vrot.slane %v2246_v28, 2  ;;  %v2388_v28 = vld [vmem:[#allocation4 + $0x30] sm:$0xc] }
0x34a1   :  { %2562 = vmatpush.msrb.mxu3 %v3596_v25  ;;  %v2109_v32 = vrot.slane %v2104_v31, 2  ;;  %v2250_v31 = vadd.f32 %v2248_v30, %v2245_v29 }
0x34a3   :  { %2563 = vmatpush.msrb.mxu3 %v3605_v26 }
0x351f   :  { %v1987_v34 = vpop.f32.mrf.mxu3 }
0x3520   :  { %v1988_v35 = vadd.f32 %v1987_v34, %v1966_v33 }
0x3522   :  { %3082 = vtanh.f32 %v1988_v35  ;;  %v2864_v37 = vmul.f32 -1.442695, %v1988_v35 }
0x3524   :  { %3084 = vpow2.f32 %v2864_v37 }
0x3528   :  { %v3083_v36 = vpop.eup %3082 }
0x3529   :  { %2012 = vrot.lane.b32.xlu2 %v3083_v36, %s3245_s0 }
0x352a   :  { %v3085_v23 = vpop.eup %3084 }
0x352b   :  { %v1993_v38 = vadd.f32 1.0, %v3085_v23 }
0x352d   :  { %3086 = vrcp.f32 %v1993_v38  ;;  %v2005_v41 = vand.u32 2147483648, %v1993_v38  ;;  %vm1999_vm0 = vweird.f32 %v1993_v38  ;;  %v2003_v42 = vand.u32 2147483647, %v1993_v38 }
0x352f   :  { %v2006_v44 = vor.u32 1.1754944e-38, %v2005_v41  ;;  %vm2004_vm8 = vcmp.eq.f32.partialorder %v2003_v42, 8.507059e+37 }
0x3533   :  { %v3087_v24 = vpop.eup %3086 }
0x3534   :  { %v1995_v25 = vmul.f32 %v3087_v24, %v1993_v38  ;;  %vm2000_vm15 = vweird.f32 %v3087_v24 }
0x3535   :  { %vm2001_vm6 = vmor %vm1999_vm0, %vm2000_vm15 }
0x3536   :  { %v1996_v39 = vsub.f32 1.0, %v1995_v25 }
0x3538   :  { %v1997_v26 = vmul.f32 %v3087_v24, %v1996_v39 }
0x353a   :  { %v1998_v40 = vadd.f32 %v3087_v24, %v1997_v26 }
0x353c   :  { %v2002_v43 = vsel %vm2001_vm6, %v3087_v24, %v1998_v40 }
0x353d   :  { %v2007_v46 = vsel %vm2004_vm8, %v2006_v44, %v2002_v43 }
0x353e   :  { %v2010_v48 = vmul.f32 %v2007_v46, %v1947_v20 }
0x3583   :  { %v2013_v45 = vpop.permute.xlu2 %2012 }
0x3584   :  { %v2015_v47 = vmul.f32 %v2013_v45, %v2007_v46 }
0x3586   :  { %2017 = vrot.lane.b32.xlu0 %v2015_v47, %s3246_s2 }
0x35f8   :  { %v2018_v49 = vpop.permute.xlu0 %2017 }
0x35f9   :  { %v2020_v50 = vadd.f32 %v2018_v49, %v2010_v48 }
0x35fb   :  { %3088 = vtanh.f32 %v2020_v50 }
0x3601   :  { %v3089_v51 = vpop.eup %3088 }
0x3602   :  { %2023 = vrot.lane.b32.xlu1 %v3089_v51, %s3245_s0 }
0x3674   :  { %v2024_v52 = vpop.permute.xlu1 %2023 }
0x3675   :  { %v2026_v53 = vmul.f32 %v2024_v52, %v2007_v46 }
0x3677   :  { %v2027_v54 = vadd.f32 %v2026_v53, %v1954_v27  ;;  %v2028_v55 = vmax.f32 %v3717_v9, %v2026_v53  ;;  %2036 = vrot.lane.b32.xlu2 %v2026_v53, %s3246_s2 }
0x36d1   :  { %v2037_v56 = vpop.permute.xlu2 %2036 }
0x36d2   :  { %2865 = vmatmul.msk.f32.vlgmr.msra.gmra.mxu0 %vm187_vm7, %v2037_v56  ;;  %v2173_v56 = vld [vmem:[#allocation4 + $0x20] sm:$0xc] }
0x36d3   :  { %v2175_v58 = vrot.slane %v2173_v56, 6  ;;  %v2319_v56 = vld [vmem:[#allocation4 + $0x18] sm:$0xc0] }
0x36d5   :  { %v2177_v59 = vadd.f32 %v2175_v58, %v2172_v57  ;;  %v2318_v57 = vld [vmem:[#allocation4 + $0x30] sm:$0x3]  ;;  %v2321_v58 = vrot.slane %v2319_v56, 6  ;;  %v2461_v56 = vld [vmem:[#allocation4 + $0x30] sm:$0x30] }
0x374f   :  { %v2057_v61 = vpop.f32.mrf.mxu0 }
0x3750   :  { %v2058_v62 = vadd.f32 %v2057_v61, %v2034_v60  ;;  %v2182_v60 = vrot.slane %v2177_v59, 4  ;;  %v2323_v59 = vadd.f32 %v2321_v58, %v2318_v57 }
0x3752   :  { %3090 = vtanh.f32 %v2058_v62  ;;  %v2866_v0 = vmul.f32 -1.442695, %v2058_v62 }
0x3754   :  { %3092 = vpow2.f32 %v2866_v0 }
0x3758   :  { %v3091_v63 = vpop.eup %3090 }
0x3759   :  { %2082 = vrot.lane.b32.xlu0 %v3091_v63, %s3245_s0 }
0x375a   :  { %v3093_v1 = vpop.eup %3092 }
0x375b   :  { %v2063_v2 = vadd.f32 1.0, %v3093_v1 }
0x375d   :  { %3094 = vrcp.f32 %v2063_v2  ;;  %v2075_v12 = vand.u32 2147483648, %v2063_v2  ;;  %vm2069_vm2 = vweird.f32 %v2063_v2  ;;  %v2073_v5 = vand.u32 2147483647, %v2063_v2 }
0x375f   :  { %v2076_v13 = vor.u32 1.1754944e-38, %v2075_v12  ;;  %vm2074_vm4 = vcmp.eq.f32.partialorder %v2073_v5, 8.507059e+37 }
0x3763   :  { %v3095_v3 = vpop.eup %3094 }
0x3764   :  { %v2065_v8 = vmul.f32 %v3095_v3, %v2063_v2  ;;  %vm2070_vm1 = vweird.f32 %v3095_v3 }
0x3765   :  { %vm2071_vm3 = vmor %vm2069_vm2, %vm2070_vm1 }
0x3766   :  { %v2066_v10 = vsub.f32 1.0, %v2065_v8 }
0x3768   :  { %v2067_v11 = vmul.f32 %v3095_v3, %v2066_v10 }
0x376a   :  { %v2068_v4 = vadd.f32 %v3095_v3, %v2067_v11 }
0x376c   :  { %v2072_v6 = vsel %vm2071_vm3, %v3095_v3, %v2068_v4 }
0x376d   :  { %v2077_v15 = vsel %vm2074_vm4, %v2076_v13, %v2072_v6 }
0x376e   :  { %v2080_v17 = vmul.f32 %v2077_v15, %v2020_v50 }
0x37cb   :  { %v2083_v14 = vpop.permute.xlu0 %2082 }
0x37cc   :  { %v2085_v16 = vmul.f32 %v2083_v14, %v2077_v15 }
0x37ce   :  { %2087 = vrot.lane.b32.xlu1 %v2085_v16, %s3246_s2 }
0x3840   :  { %v2088_v18 = vpop.permute.xlu1 %2087 }
0x3841   :  { %v2090_v19 = vadd.f32 %v2088_v18, %v2080_v17 }
0x3843   :  { %3096 = vtanh.f32 %v2090_v19 }
0x3849   :  { %v3097_v20 = vpop.eup %3096 }
0x384a   :  { %2093 = vrot.lane.b32.xlu2 %v3097_v20, %s3245_s0 }
0x38a4   :  { %v2094_v21 = vpop.permute.xlu2 %2093 }
0x38a5   :  { %v2096_v7 = vmul.f32 %v2094_v21, %v2077_v15 }
0x38a7   :  { %v2097_v22 = vadd.f32 %v2096_v7, %v2027_v54  ;;  %v3734_v27 = vmax.f32 %v2028_v55, %v2096_v7  ;;  %2106 = vrot.lane.b32.xlu0 %v2096_v7, %s3246_s2 }
0x3919   :  { %v2107_v9 = vpop.permute.xlu0 %2106 }
0x391a   :  { %2867 = vmatmul.msk.f32.vlgmr.msra.gmra.mxu1 %vm187_vm7, %v2107_v9 }
0x3997   :  { %v2130_v33 = vpop.f32.mrf.mxu1 }
0x3998   :  { %v2131_v34 = vadd.f32 %v2130_v33, %v2109_v32  ;;  %v2255_v32 = vrot.slane %v2250_v31, 6 }
0x399a   :  { %3098 = vtanh.f32 %v2131_v34  ;;  %v2868_v36 = vmul.f32 -1.442695, %v2131_v34 }
0x399c   :  { %3100 = vpow2.f32 %v2868_v36 }
0x39a0   :  { %v3099_v35 = vpop.eup %3098 }
0x39a1   :  { %2155 = vrot.lane.b32.xlu1 %v3099_v35, %s3245_s0 }
0x39a2   :  { %v3101_v37 = vpop.eup %3100 }
0x39a3   :  { %v2136_v23 = vadd.f32 1.0, %v3101_v37 }
0x39a5   :  { %3102 = vrcp.f32 %v2136_v23  ;;  %v2148_v40 = vand.u32 2147483648, %v2136_v23  ;;  %vm2142_vm9 = vweird.f32 %v2136_v23  ;;  %v2146_v41 = vand.u32 2147483647, %v2136_v23 }
0x39a7   :  { %v2149_v43 = vor.u32 1.1754944e-38, %v2148_v40  ;;  %vm2147_vm11 = vcmp.eq.f32.partialorder %v2146_v41, 8.507059e+37 }
0x39ab   :  { %v3103_v38 = vpop.eup %3102 }
0x39ac   :  { %v2138_v24 = vmul.f32 %v3103_v38, %v2136_v23  ;;  %vm2143_vm5 = vweird.f32 %v3103_v38 }
0x39ad   :  { %vm2144_vm10 = vmor %vm2142_vm9, %vm2143_vm5 }
0x39ae   :  { %v2139_v25 = vsub.f32 1.0, %v2138_v24 }
0x39b0   :  { %v2140_v39 = vmul.f32 %v3103_v38, %v2139_v25 }
0x39b2   :  { %v2141_v26 = vadd.f32 %v3103_v38, %v2140_v39 }
0x39b4   :  { %v2145_v42 = vsel %vm2144_vm10, %v3103_v38, %v2141_v26 }
0x39b5   :  { %v2150_v45 = vsel %vm2147_vm11, %v2149_v43, %v2145_v42 }
0x39b6   :  { %v2153_v47 = vmul.f32 %v2150_v45, %v2090_v19 }
0x3a13   :  { %v2156_v44 = vpop.permute.xlu1 %2155 }
0x3a14   :  { %v2158_v46 = vmul.f32 %v2156_v44, %v2150_v45 }
0x3a16   :  { %2160 = vrot.lane.b32.xlu2 %v2158_v46, %s3246_s2 }
0x3a70   :  { %v2161_v48 = vpop.permute.xlu2 %2160 }
0x3a71   :  { %v2163_v49 = vadd.f32 %v2161_v48, %v2153_v47 }
0x3a73   :  { %3104 = vtanh.f32 %v2163_v49 }
0x3a79   :  { %v3105_v50 = vpop.eup %3104 }
0x3a7a   :  { %2166 = vrot.lane.b32.xlu0 %v3105_v50, %s3245_s0 }
0x3aec   :  { %v2167_v51 = vpop.permute.xlu0 %2166 }
0x3aed   :  { %v2169_v52 = vmul.f32 %v2167_v51, %v2150_v45 }
0x3aef   :  { %v2170_v53 = vadd.f32 %v2169_v52, %v2097_v22  ;;  %v2171_v54 = vmax.f32 %v3734_v27, %v2169_v52  ;;  %2179 = vrot.lane.b32.xlu1 %v2169_v52, %s3246_s2 }
0x3b61   :  { %v2180_v55 = vpop.permute.xlu1 %2179 }
0x3b62   :  { %2869 = vmatmul.msk.f32.vlgmr.msra.gmra.mxu2 %vm187_vm7, %v2180_v55 }
0x3be5   :  { %v2203_v61 = vpop.f32.mrf.mxu2 }
0x3be6   :  { %v2204_v62 = vadd.f32 %v2203_v61, %v2182_v60 }
0x3be8   :  { %3106 = vtanh.f32 %v2204_v62  ;;  %v2870_v0 = vmul.f32 -1.442695, %v2204_v62 }
0x3bea   :  { %3108 = vpow2.f32 %v2870_v0 }
0x3bee   :  { %v3107_v63 = vpop.eup %3106 }
0x3bef   :  { %2228 = vrot.lane.b32.xlu2 %v3107_v63, %s3245_s0 }
0x3bf0   :  { %v3109_v1 = vpop.eup %3108 }
0x3bf1   :  { %v2209_v2 = vadd.f32 1.0, %v3109_v1 }
0x3bf3   :  { %3110 = vrcp.f32 %v2209_v2  ;;  %v2221_v12 = vand.u32 2147483648, %v2209_v2  ;;  %vm2215_vm13 = vweird.f32 %v2209_v2  ;;  %v2219_v5 = vand.u32 2147483647, %v2209_v2 }
0x3bf5   :  { %v2222_v13 = vor.u32 1.1754944e-38, %v2221_v12  ;;  %vm2220_vm15 = vcmp.eq.f32.partialorder %v2219_v5, 8.507059e+37 }
0x3bf9   :  { %v3111_v3 = vpop.eup %3110 }
0x3bfa   :  { %v2211_v8 = vmul.f32 %v3111_v3, %v2209_v2  ;;  %vm2216_vm12 = vweird.f32 %v3111_v3 }
0x3bfb   :  { %vm2217_vm14 = vmor %vm2215_vm13, %vm2216_vm12 }
0x3bfc   :  { %v2212_v10 = vsub.f32 1.0, %v2211_v8 }
0x3bfe   :  { %v2213_v11 = vmul.f32 %v3111_v3, %v2212_v10 }
0x3c00   :  { %v2214_v4 = vadd.f32 %v3111_v3, %v2213_v11 }
0x3c02   :  { %v2218_v6 = vsel %vm2217_vm14, %v3111_v3, %v2214_v4 }
0x3c03   :  { %v2223_v15 = vsel %vm2220_vm15, %v2222_v13, %v2218_v6 }
0x3c04   :  { %v2226_v17 = vmul.f32 %v2223_v15, %v2163_v49 }
0x3c49   :  { %v2229_v14 = vpop.permute.xlu2 %2228 }
0x3c4a   :  { %v2231_v16 = vmul.f32 %v2229_v14, %v2223_v15 }
0x3c4c   :  { %2233 = vrot.lane.b32.xlu0 %v2231_v16, %s3246_s2 }
0x3cbe   :  { %v2234_v18 = vpop.permute.xlu0 %2233 }
0x3cbf   :  { %v2236_v19 = vadd.f32 %v2234_v18, %v2226_v17 }
0x3cc1   :  { %3112 = vtanh.f32 %v2236_v19 }
0x3cc7   :  { %v3113_v20 = vpop.eup %3112 }
0x3cc8   :  { %2239 = vrot.lane.b32.xlu1 %v3113_v20, %s3245_s0 }
0x3d3a   :  { %v2240_v21 = vpop.permute.xlu1 %2239 }
0x3d3b   :  { %v2242_v7 = vmul.f32 %v2240_v21, %v2223_v15 }
0x3d3d   :  { %v2243_v22 = vadd.f32 %v2242_v7, %v2170_v53  ;;  %v3747_v27 = vmax.f32 %v2171_v54, %v2242_v7  ;;  %2252 = vrot.lane.b32.xlu2 %v2242_v7, %s3246_s2 }
0x3d97   :  { %v2253_v9 = vpop.permute.xlu2 %2252 }
0x3d98   :  { %2871 = vmatmul.msk.f32.vlgmr.msra.gmra.mxu3 %vm187_vm7, %v2253_v9  ;;  %v2389_v9 = vld [vmem:[#allocation4 + $0x18] sm:$0x30] }
0x3d99   :  { %v2391_v29 = vrot.slane %v2389_v9, 2  ;;  %v2535_v9 = vld [vmem:[#allocation4 + $0x18] sm:$0x3] }
0x3d9b   :  { %v2393_v30 = vadd.f32 %v2391_v29, %v2388_v28  ;;  %v2534_v28 = vld [vmem:[#allocation4 + $0x30] sm:$0xc0]  ;;  %v2537_v29 = vrot.slane %v2535_v9, 2 }
0x3d9d   :  { %v2398_v31 = vrot.slane %v2393_v30, 2  ;;  %v2539_v30 = vadd.f32 %v2537_v29, %v2534_v28  ;;  %v2896_v28 = vld [vmem:[#allocation5] ss:$0 sm:$0xff] }
0x3d9e   :  { %v2752_v29 = vld [vmem:[%s3837_s13] sm:$0xff] }
0x3d9f   :  { %2776 = vmatpush.msra.mxu3 %v2752_v29 }
0x3e1b   :  { %v2276_v33 = vpop.f32.mrf.mxu3 }
0x3e1c   :  { %v2277_v34 = vadd.f32 %v2276_v33, %v2255_v32 }
0x3e1e   :  { %3114 = vtanh.f32 %v2277_v34  ;;  %v2872_v36 = vmul.f32 -1.442695, %v2277_v34 }
0x3e20   :  { %3116 = vpow2.f32 %v2872_v36 }
0x3e24   :  { %v3115_v35 = vpop.eup %3114 }
0x3e25   :  { %2301 = vrot.lane.b32.xlu0 %v3115_v35, %s3245_s0 }
0x3e26   :  { %v3117_v37 = vpop.eup %3116 }
0x3e27   :  { %v2282_v23 = vadd.f32 1.0, %v3117_v37 }
0x3e29   :  { %3118 = vrcp.f32 %v2282_v23  ;;  %v2294_v40 = vand.u32 2147483648, %v2282_v23  ;;  %vm2288_vm6 = vweird.f32 %v2282_v23  ;;  %v2292_v41 = vand.u32 2147483647, %v2282_v23 }
0x3e2b   :  { %v2295_v43 = vor.u32 1.1754944e-38, %v2294_v40  ;;  %vm2293_vm1 = vcmp.eq.f32.partialorder %v2292_v41, 8.507059e+37 }
0x3e2f   :  { %v3119_v38 = vpop.eup %3118 }
0x3e30   :  { %v2284_v24 = vmul.f32 %v3119_v38, %v2282_v23  ;;  %vm2289_vm0 = vweird.f32 %v3119_v38 }
0x3e31   :  { %vm2290_vm8 = vmor %vm2288_vm6, %vm2289_vm0 }
0x3e32   :  { %v2285_v25 = vsub.f32 1.0, %v2284_v24 }
0x3e34   :  { %v2286_v39 = vmul.f32 %v3119_v38, %v2285_v25 }
0x3e36   :  { %v2287_v26 = vadd.f32 %v3119_v38, %v2286_v39 }
0x3e38   :  { %v2291_v42 = vsel %vm2290_vm8, %v3119_v38, %v2287_v26 }
0x3e39   :  { %v2296_v45 = vsel %vm2293_vm1, %v2295_v43, %v2291_v42 }
0x3e3a   :  { %v2299_v47 = vmul.f32 %v2296_v45, %v2236_v19 }
0x3e97   :  { %v2302_v44 = vpop.permute.xlu0 %2301 }
0x3e98   :  { %v2304_v46 = vmul.f32 %v2302_v44, %v2296_v45 }
0x3e9a   :  { %2306 = vrot.lane.b32.xlu1 %v2304_v46, %s3246_s2 }
0x3f0c   :  { %v2307_v48 = vpop.permute.xlu1 %2306 }
0x3f0d   :  { %v2309_v49 = vadd.f32 %v2307_v48, %v2299_v47 }
0x3f0f   :  { %3120 = vtanh.f32 %v2309_v49 }
0x3f15   :  { %v3121_v50 = vpop.eup %3120 }
0x3f16   :  { %2312 = vrot.lane.b32.xlu2 %v3121_v50, %s3245_s0 }
0x3f70   :  { %v2313_v51 = vpop.permute.xlu2 %2312 }
0x3f71   :  { %v2315_v52 = vmul.f32 %v2313_v51, %v2296_v45 }
0x3f73   :  { %v2316_v53 = vadd.f32 %v2315_v52, %v2243_v22  ;;  %v2317_v54 = vmax.f32 %v3747_v27, %v2315_v52  ;;  %2325 = vrot.lane.b32.xlu0 %v2315_v52, %s3246_s2 }
0x3fe5   :  { %v2326_v55 = vpop.permute.xlu0 %2325 }
0x3fe6   :  { %2873 = vmatmul.msk.f32.vlgmr.msrb.gmra.mxu0 %vm187_vm7, %v2326_v55  ;;  %v2462_v55 = vld [vmem:[#allocation4 + $0x18] sm:$0xc] }
0x3fe7   :  { %v2464_v57 = vrot.slane %v2462_v55, 6 }
0x3fe9   :  { %v2466_v58 = vadd.f32 %v2464_v57, %v2461_v56 }
0x4063   :  { %v2346_v60 = vpop.f32.mrf.mxu0 }
0x4064   :  { %v2347_v61 = vadd.f32 %v2346_v60, %v2323_v59  ;;  %v2471_v59 = vrot.slane %v2466_v58, 4 }
0x4066   :  { %3122 = vtanh.f32 %v2347_v61  ;;  %v2874_v63 = vmul.f32 -1.442695, %v2347_v61 }
0x4068   :  { %3124 = vpow2.f32 %v2874_v63 }
0x406c   :  { %v3123_v62 = vpop.eup %3122 }
0x406d   :  { %2371 = vrot.lane.b32.xlu1 %v3123_v62, %s3245_s0 }
0x406e   :  { %v3125_v0 = vpop.eup %3124 }
0x406f   :  { %v2352_v1 = vadd.f32 1.0, %v3125_v0 }
0x4071   :  { %3126 = vrcp.f32 %v2352_v1  ;;  %v2364_v4 = vand.u32 2147483648, %v2352_v1  ;;  %vm2358_vm3 = vweird.f32 %v2352_v1  ;;  %v2362_v12 = vand.u32 2147483647, %v2352_v1 }
0x4073   :  { %v2365_v6 = vor.u32 1.1754944e-38, %v2364_v4  ;;  %vm2363_vm5 = vcmp.eq.f32.partialorder %v2362_v12, 8.507059e+37 }
0x4077   :  { %v3127_v2 = vpop.eup %3126 }
0x4078   :  { %v2354_v3 = vmul.f32 %v3127_v2, %v2352_v1  ;;  %vm2359_vm2 = vweird.f32 %v3127_v2 }
0x4079   :  { %vm2360_vm4 = vmor %vm2358_vm3, %vm2359_vm2  ;;  %vm2651_vm3 = vcmask 1043456  }
0x407a   :  { %v2355_v8 = vsub.f32 1.0, %v2354_v3 }
0x407c   :  { %v2356_v10 = vmul.f32 %v3127_v2, %v2355_v8 }
0x407e   :  { %v2357_v11 = vadd.f32 %v3127_v2, %v2356_v10 }
0x4080   :  { %v2361_v5 = vsel %vm2360_vm4, %v3127_v2, %v2357_v11  ;;  %vm2647_vm4 = vcmask 31744  }
0x4081   :  { %v2366_v14 = vsel %vm2363_vm5, %v2365_v6, %v2361_v5 }
0x4082   :  { %v2369_v16 = vmul.f32 %v2366_v14, %v2309_v49 }
0x40df   :  { %v2372_v13 = vpop.permute.xlu1 %2371 }
0x40e0   :  { %v2374_v15 = vmul.f32 %v2372_v13, %v2366_v14 }
0x40e2   :  { %2376 = vrot.lane.b32.xlu2 %v2374_v15, %s3246_s2 }
0x413c   :  { %v2377_v17 = vpop.permute.xlu2 %2376 }
0x413d   :  { %v2379_v18 = vadd.f32 %v2377_v17, %v2369_v16 }
0x413f   :  { %3128 = vtanh.f32 %v2379_v18 }
0x4145   :  { %v3129_v19 = vpop.eup %3128 }
0x4146   :  { %2382 = vrot.lane.b32.xlu0 %v3129_v19, %s3245_s0 }
0x41b8   :  { %v2383_v20 = vpop.permute.xlu0 %2382 }
0x41b9   :  { %v2385_v21 = vmul.f32 %v2383_v20, %v2366_v14 }
0x41bb   :  { %v2386_v7 = vadd.f32 %v2385_v21, %v2316_v53  ;;  %v3760_v22 = vmax.f32 %v2317_v54, %v2385_v21  ;;  %2395 = vrot.lane.b32.xlu1 %v2385_v21, %s3246_s2 }
0x422d   :  { %v2396_v27 = vpop.permute.xlu1 %2395 }
0x422e   :  { %2875 = vmatmul.msk.f32.vlgmr.msrb.gmra.mxu1 %vm187_vm7, %v2396_v27 }
0x42ab   :  { %v2419_v32 = vpop.f32.mrf.mxu1 }
0x42ac   :  { %v2420_v33 = vadd.f32 %v2419_v32, %v2398_v31  ;;  %v2544_v31 = vrot.slane %v2539_v30, 6 }
0x42ae   :  { %3130 = vtanh.f32 %v2420_v33  ;;  %v2876_v35 = vmul.f32 -1.442695, %v2420_v33 }
0x42b0   :  { %3132 = vpow2.f32 %v2876_v35 }
0x42b4   :  { %v3131_v34 = vpop.eup %3130 }
0x42b5   :  { %2444 = vrot.lane.b32.xlu2 %v3131_v34, %s3245_s0 }
0x42b6   :  { %v3133_v36 = vpop.eup %3132 }
0x42b7   :  { %v2425_v37 = vadd.f32 1.0, %v3133_v36 }
0x42b9   :  { %3134 = vrcp.f32 %v2425_v37  ;;  %v2437_v26 = vand.u32 2147483648, %v2425_v37  ;;  %vm2431_vm10 = vweird.f32 %v2425_v37  ;;  %v2435_v40 = vand.u32 2147483647, %v2425_v37 }
0x42bb   :  { %v2438_v42 = vor.u32 1.1754944e-38, %v2437_v26  ;;  %vm2436_vm12 = vcmp.eq.f32.partialorder %v2435_v40, 8.507059e+37 }
0x42bf   :  { %v3135_v23 = vpop.eup %3134 }
0x42c0   :  { %v2427_v38 = vmul.f32 %v3135_v23, %v2425_v37  ;;  %vm2432_vm9 = vweird.f32 %v3135_v23 }
0x42c1   :  { %vm2433_vm11 = vmor %vm2431_vm10, %vm2432_vm9 }
0x42c2   :  { %v2428_v24 = vsub.f32 1.0, %v2427_v38 }
0x42c4   :  { %v2429_v25 = vmul.f32 %v3135_v23, %v2428_v24 }
0x42c6   :  { %v2430_v39 = vadd.f32 %v3135_v23, %v2429_v25 }
0x42c8   :  { %v2434_v41 = vsel %vm2433_vm11, %v3135_v23, %v2430_v39 }
0x42c9   :  { %v2439_v44 = vsel %vm2436_vm12, %v2438_v42, %v2434_v41 }
0x42ca   :  { %v2442_v46 = vmul.f32 %v2439_v44, %v2379_v18 }
0x430f   :  { %v2445_v43 = vpop.permute.xlu2 %2444 }
0x4310   :  { %v2447_v45 = vmul.f32 %v2445_v43, %v2439_v44 }
0x4312   :  { %2449 = vrot.lane.b32.xlu0 %v2447_v45, %s3246_s2 }
0x4384   :  { %v2450_v47 = vpop.permute.xlu0 %2449 }
0x4385   :  { %v2452_v48 = vadd.f32 %v2450_v47, %v2442_v46 }
0x4387   :  { %3136 = vtanh.f32 %v2452_v48 }
0x438d   :  { %v3137_v49 = vpop.eup %3136 }
0x438e   :  { %2455 = vrot.lane.b32.xlu1 %v3137_v49, %s3245_s0 }
0x4400   :  { %v2456_v50 = vpop.permute.xlu1 %2455 }
0x4401   :  { %v2458_v51 = vmul.f32 %v2456_v50, %v2439_v44  ;;  %v2611_v50 = vld [vmem:[%s3831_s7 + $0x18] sm:$0xff] }
0x4402   :  { %2633 = vmatpush.msra.mxu0 %v2611_v50 }
0x4403   :  { %v2459_v52 = vadd.f32 %v2458_v51, %v2386_v7  ;;  %v2460_v53 = vmax.f32 %v3760_v22, %v2458_v51  ;;  %2468 = vrot.lane.b32.xlu2 %v2458_v51, %s3246_s2  ;;  %v2610_v51 = vld [vmem:[%s3831_s7 + $0x10] sm:$0xff] }
0x4404   :  { %2634 = vmatpush.msra.mxu0 %v2610_v51 }
0x445d   :  { %v2469_v54 = vpop.permute.xlu2 %2468 }
0x445e   :  { %2877 = vmatmul.msk.f32.vlgmr.msrb.gmra.mxu2 %vm187_vm7, %v2469_v54 }
0x44e1   :  { %v2492_v60 = vpop.f32.mrf.mxu2 }
0x44e2   :  { %v2493_v61 = vadd.f32 %v2492_v60, %v2471_v59  ;;  %v2642_v59 = vld [vmem:[%s3833_s9] sm:$0xf] }
0x44e3   :  { %2882 = vmatpush.msk.msra.mxu1 %vm2651_vm3, %v2642_v59 }
0x44e4   :  { %3138 = vtanh.f32 %v2493_v61  ;;  %v2878_v63 = vmul.f32 -1.442695, %v2493_v61  ;;  %v2894_v61 = vld [vmem:[%s3832_s8] ss:$0 sm:$0xff]  ;;  %s3247_s8 = smov 96  }
0x44e6   :  { %3140 = vpow2.f32 %v2878_v63 }
0x44ea   :  { %v3139_v62 = vpop.eup %3138 }
0x44eb   :  { %2517 = vrot.lane.b32.xlu0 %v3139_v62, %s3245_s0 }
0x44ec   :  { %v3141_v0 = vpop.eup %3140 }
0x44ed   :  { %v2498_v1 = vadd.f32 1.0, %v3141_v0 }
0x44ef   :  { %3142 = vrcp.f32 %v2498_v1  ;;  %v2510_v4 = vand.u32 2147483648, %v2498_v1  ;;  %vm2504_vm14 = vweird.f32 %v2498_v1  ;;  %v2508_v12 = vand.u32 2147483647, %v2498_v1 }
0x44f1   :  { %v2511_v6 = vor.u32 1.1754944e-38, %v2510_v4  ;;  %vm2509_vm0 = vcmp.eq.f32.partialorder %v2508_v12, 8.507059e+37 }
0x44f5   :  { %v3143_v2 = vpop.eup %3142 }
0x44f6   :  { %v2500_v3 = vmul.f32 %v3143_v2, %v2498_v1  ;;  %vm2505_vm13 = vweird.f32 %v3143_v2  ;;  %v2895_v1 = vld [vmem:[%s3834_s10] ss:$0 sm:$0xff] }
0x44f7   :  { %vm2506_vm15 = vmor %vm2504_vm14, %vm2505_vm13  ;;  %vm2757_vm13 = vcmask 64512   ;;  %vm2781_vm14 = vcmask 9216  }
0x44f8   :  { %v2501_v8 = vsub.f32 1.0, %v2500_v3 }
0x44fa   :  { %v2502_v10 = vmul.f32 %v3143_v2, %v2501_v8 }
0x44fc   :  { %v2503_v11 = vadd.f32 %v3143_v2, %v2502_v10 }
0x44fe   :  { %v2507_v5 = vsel %vm2506_vm15, %v3143_v2, %v2503_v11 }
0x44ff   :  { %v2512_v14 = vsel %vm2509_vm0, %v2511_v6, %v2507_v5 }
0x4500   :  { %v2515_v16 = vmul.f32 %v2512_v14, %v2452_v48 }
0x455d   :  { %v2518_v13 = vpop.permute.xlu0 %2517 }
0x455e   :  { %v2520_v15 = vmul.f32 %v2518_v13, %v2512_v14 }
0x4560   :  { %2522 = vrot.lane.b32.xlu1 %v2520_v15, %s3246_s2 }
0x45d2   :  { %v2523_v17 = vpop.permute.xlu1 %2522 }
0x45d3   :  { %v2525_v18 = vadd.f32 %v2523_v17, %v2515_v16 }
0x45d5   :  { %3144 = vtanh.f32 %v2525_v18 }
0x45db   :  { %v3145_v19 = vpop.eup %3144 }
0x45dc   :  { %2528 = vrot.lane.b32.xlu2 %v3145_v19, %s3245_s0  ;;  %v2702_v19 = vld [vmem:[%s3835_s11 + $0x18] sm:$0xff] }
0x45dd   :  { %2724 = vmatpush.msra.mxu2 %v2702_v19 }
0x4636   :  { %v2529_v20 = vpop.permute.xlu2 %2528 }
0x4637   :  { %v2531_v21 = vmul.f32 %v2529_v20, %v2512_v14  ;;  %v2701_v20 = vld [vmem:[%s3835_s11 + $0x10] sm:$0xff] }
0x4638   :  { %2725 = vmatpush.msra.mxu2 %v2701_v20 }
0x4639   :  { %2541 = vrot.lane.b32.xlu0 %v2531_v21, %s3246_s2  ;;  %v2532_v7 = vadd.f32 %v2531_v21, %v2459_v52  ;;  %v3774_v22 = vmax.f32 %v2460_v53, %v2531_v21  ;;  %v2609_v52 = vld [vmem:[%s3831_s7 + $0x8] sm:$0xff]  ;;  %v2608_v53 = vld [vmem:[%s3831_s7] sm:$0xff] }
0x463a   :  { %2635 = vmatpush.msra.mxu0 %v2609_v52  ;;  %v2700_v21 = vld [vmem:[%s3835_s11 + $0x8] sm:$0xff] }
0x463b   :  { %2726 = vmatpush.msra.mxu2 %v2700_v21 }
0x463c   :  { %2636 = vmatpush.msra.mxu0 %v2608_v53 }
0x46ab   :  { %v2542_v27 = vpop.permute.xlu0 %2541 }
0x46ac   :  { %2879 = vmatmul.msk.f32.vlgmr.msrb.gmra.mxu3 %vm187_vm7, %v2542_v27 }
0x472f   :  { %v2565_v32 = vpop.f32.mrf.mxu3 }
0x4730   :  { %v2566_v33 = vadd.f32 %v2565_v32, %v2544_v31 }
0x4732   :  { %3146 = vtanh.f32 %v2566_v33  ;;  %v2880_v35 = vmul.f32 -1.442695, %v2566_v33 }
0x4734   :  { %3148 = vpow2.f32 %v2880_v35 }
0x4738   :  { %v3147_v34 = vpop.eup %3146 }
0x4739   :  { %2590 = vrot.lane.b32.xlu1 %v3147_v34, %s3245_s0 }
0x473a   :  { %v3149_v36 = vpop.eup %3148 }
0x473b   :  { %v2571_v37 = vadd.f32 1.0, %v3149_v36 }
0x473d   :  { %3150 = vrcp.f32 %v2571_v37  ;;  %v2583_v26 = vand.u32 2147483648, %v2571_v37  ;;  %vm2577_vm8 = vweird.f32 %v2571_v37  ;;  %v2581_v40 = vand.u32 2147483647, %v2571_v37 }
0x473f   :  { %v2584_v42 = vor.u32 1.1754944e-38, %v2583_v26  ;;  %vm2582_vm2 = vcmp.eq.f32.partialorder %v2581_v40, 8.507059e+37 }
0x4743   :  { %v3151_v23 = vpop.eup %3150 }
0x4744   :  { %v2573_v38 = vmul.f32 %v3151_v23, %v2571_v37  ;;  %vm2578_vm6 = vweird.f32 %v3151_v23 }
0x4745   :  { %vm2579_vm1 = vmor %vm2577_vm8, %vm2578_vm6 }
0x4746   :  { %v2574_v24 = vsub.f32 1.0, %v2573_v38 }
0x4748   :  { %v2575_v25 = vmul.f32 %v3151_v23, %v2574_v24 }
0x474a   :  { %v2576_v39 = vadd.f32 %v3151_v23, %v2575_v25 }
0x474c   :  { %v2580_v41 = vsel %vm2579_vm1, %v3151_v23, %v2576_v39 }
0x474d   :  { %v2585_v44 = vsel %vm2582_vm2, %v2584_v42, %v2580_v41 }
0x474e   :  { %v2588_v46 = vmul.f32 %v2585_v44, %v2525_v18 }
0x47ab   :  { %v2591_v43 = vpop.permute.xlu1 %2590 }
0x47ac   :  { %v2593_v45 = vmul.f32 %v2591_v43, %v2585_v44 }
0x47ae   :  { %2595 = vrot.lane.b32.xlu2 %v2593_v45, %s3246_s2  ;;  %v2897_v45 = vld [vmem:[#allocation8] ss:$0 sm:$0xff] }
0x4808   :  { %v2596_v47 = vpop.permute.xlu2 %2595 }
0x4809   :  { %v2598_v48 = vadd.f32 %v2596_v47, %v2588_v46 }
0x480b   :  { %3152 = vtanh.f32 %v2598_v48 }
0x4811   :  { %v3153_v49 = vpop.eup %3152 }
0x4812   :  { %2601 = vrot.lane.b32.xlu0 %v3153_v49, %s3245_s0 }
0x4884   :  { %v2602_v54 = vpop.permute.xlu0 %2601 }
0x4885   :  { %v2604_v55 = vmul.f32 %v2602_v54, %v2585_v44 }
0x4887   :  { %v2605_v56 = vadd.f32 %v2604_v55, %v2532_v7  ;;  %v2606_v57 = vmax.f32 %v3774_v22, %v2604_v55  ;;  %v2699_v7 = vld [vmem:[%s3835_s11] sm:$0xff]  ;;  %s3248_s11 = smov [#allocation10]  }
0x4888   :  { %2727 = vmatpush.msra.mxu2 %v2699_v7  ;;  %s2788_s13 = sshll.u32 %s3248_s11, 4  ;;  %s2789_s13 = int_to_ptr.vmem [resolvable:$true] %s2788_s13 }
0x4889   :  { %v2607_v58 = vmul.f32 0.0625, %v2605_v56 }
0x488b   :  { %2617 = vrot.lane.b32.xlu1 %v2607_v58, %s3246_s2 }
0x48fd   :  { %v2618_v60 = vpop.permute.xlu1 %2617 }
0x48fe   :  { %2881 = vmatmul.msk.f32.vlgmr.msra.gmra.mxu0 %vm187_vm7, %v2618_v60 }
0x497b   :  { %v2638_v62 = vpop.f32.mrf.mxu0 }
0x497c   :  { %v2639_v63 = vadd.f32 %v2894_v61, %v2638_v62 }
0x497e   :  { %v2641_v0 = vmax.f32 %v2639_v63, 0.0 }
0x4980   :  { %2883 = vmatmul.msk.f32.vlgmr.msra.gmra.mxu1 %vm2647_vm4, %v2641_v0 }
0x49fd   :  { %v2672_v2 = vpop.f32.mrf.mxu1 }
0x49fe   :  { %v2673_v3 = vadd.f32 %v2895_v1, %v2672_v2 }
0x4a00   :  { %v2884_v8 = vmul.f32 -1.442695, %v2673_v3 }
0x4a02   :  { %3154 = vpow2.f32 %v2884_v8 }
0x4a08   :  { %v3155_v10 = vpop.eup %3154 }
0x4a09   :  { %v2678_v11 = vadd.f32 1.0, %v3155_v10 }
0x4a0b   :  { %3156 = vrcp.f32 %v2678_v11  ;;  %v2690_v6 = vand.u32 2147483648, %v2678_v11  ;;  %v2688_v14 = vand.u32 2147483647, %v2678_v11  ;;  %vm2684_vm9 = vweird.f32 %v2678_v11 }
0x4a0d   :  { %v2691_v16 = vor.u32 1.1754944e-38, %v2690_v6  ;;  %vm2689_vm11 = vcmp.eq.f32.partialorder %v2688_v14, 8.507059e+37 }
0x4a11   :  { %v3157_v4 = vpop.eup %3156 }
0x4a12   :  { %v2680_v12 = vmul.f32 %v3157_v4, %v2678_v11  ;;  %vm2685_vm5 = vweird.f32 %v3157_v4 }
0x4a13   :  { %vm2686_vm10 = vmor %vm2684_vm9, %vm2685_vm5 }
0x4a14   :  { %v2681_v5 = vsub.f32 1.0, %v2680_v12 }
0x4a16   :  { %v2682_v13 = vmul.f32 %v3157_v4, %v2681_v5 }
0x4a18   :  { %v2683_v15 = vadd.f32 %v3157_v4, %v2682_v13 }
0x4a1a   :  { %v2687_v17 = vsel %vm2686_vm10, %v3157_v4, %v2683_v15 }
0x4a1b   :  { %v2692_v18 = vsel %vm2689_vm11, %v2691_v16, %v2687_v17 }
0x4a1c   :  { %2695 = vrot.lane.b32.xlu2 %v2692_v18, %s3247_s8 }
0x4a76   :  { %v2696_v22 = vpop.permute.xlu2 %2695 }
0x4a77   :  { %v2698_v27 = vmul.f32 %v2696_v22, %v2606_v57 }
0x4a79   :  { %2708 = vrot.lane.b32.xlu0 %v2698_v27, %s3246_s2 }
0x4aeb   :  { %v2709_v9 = vpop.permute.xlu0 %2708 }
0x4aec   :  { %2885 = vmatmul.msk.f32.vlgmr.msra.gmra.mxu2 %vm187_vm7, %v2709_v9 }
0x4b6f   :  { %v2729_v30 = vpop.f32.mrf.mxu2 }
0x4b70   :  { %v2730_v31 = vadd.f32 %v2896_v28, %v2729_v30 }
0x4b72   :  { %v2735_v32 = vand.u32 2147483647, %v2730_v31  ;;  %v2732_v26 = vmax.f32 %v2730_v31, 0.0  ;;  %vm2733_vm12 = vcmp.ne.f32.partialorder %v2730_v31, %v2730_v31 }
0x4b74   :  { %v2736_v33 = vsub.f32 0.0, %v2735_v32 }
0x4b76   :  { %v2737_v34 = vmul.f32 1.442695, %v2736_v33 }
0x4b78   :  { %3158 = vpow2.f32 %v2737_v34 }
0x4b7e   :  { %v3159_v35 = vpop.eup %3158 }
0x4b7f   :  { %v2739_v36 = vadd.f32 1.0, %v3159_v35  ;;  %v2742_v37 = vmul.f32 -0.5, %v3159_v35  ;;  %v2745_v38 = vand.u32 2147483647, %v3159_v35 }
0x4b81   :  { %3160 = vlog2.f32 %v2739_v36  ;;  %v2743_v23 = vadd.f32 1.0, %v2742_v37  ;;  %vm2746_vm7 = vcmp.lt.f32.partialorder %v2745_v38, 0.0004427343 }
0x4b83   :  { %v2744_v39 = vmul.f32 %v3159_v35, %v2743_v23 }
0x4b87   :  { %v3161_v24 = vpop.eup %3160 }
0x4b88   :  { %v2741_v25 = vmul.f32 0.6931472, %v3161_v24 }
0x4b8a   :  { %v2747_v40 = vsel %vm2746_vm7, %v2744_v39, %v2741_v25 }
0x4b8b   :  { %v2748_v41 = vadd.f32 %v2747_v40, %v2732_v26 }
0x4b8d   :  { %v2749_v42 = vsel %vm2733_vm12, %v2730_v31, %v2748_v41 }
0x4b8e   :  { %3162 = vtanh.f32 %v2749_v42 }
0x4b94   :  { %v3163_v43 = vpop.eup %3162 }
0x4b95   :  { %v2751_v44 = vmul.f32 %v3163_v43, %v2730_v31 }
0x4b97   :  { %2886 = vmatmul.msk.f32.vlgmr.msra.gmra.mxu3 %vm2757_vm13, %v2751_v44 }
0x4c1a   :  { %v2778_v46 = vpop.f32.mrf.mxu3 }
0x4c1b   :  { %v2779_v47 = vadd.f32 %v2897_v45, %v2778_v46 }
0x4c1d   :  { %2782 = vst.msk [vmem:[#allocation10] sm:$0x3] %vm2781_vm14, %v2779_v47 }
0x4c1e   :  { %2793 = dma.vmem_to_hbm [thread:$0]  %s2789_s13, 32, %s2791_s16, [#allocation7]  }
0x4c1f   :  { %3240 = dma.done.wait [#allocation7], 32  }
0x4c20   :  { %3241 = vsyncadd [#allocation7], 4294967264 }
0x4c21   :  { %2798 = vsyncpa [#allocation6], 1 }
0x4c22   :  { %2799 = vsyncpa [#allocation9], 1 }
0x4c23   :  { %2800 = vsyncpa [#allocation7], 1 }

</bundles_post_ra>
